<compile_context>
chip_gen: v7x
topology: tpu7x:2x2x1
jax: 0.10.0
libtpu: 0.0.40
codegen_flags: <defaults>
</compile_context>

<pallas_src>
import functools

import jax
import jax.numpy as jnp
from jax.experimental import pallas as pl
from jax.experimental.pallas import tpu as pltpu


# ----------------------- fused LSTM + FC + log_softmax kernel -----------------------
def lstm_fc_kernel(x_ref, w_ih_ref, w_hh_ref, b_ref, w_fc_ref, b_fc_ref,
                   out_ref, h_scr):
    # x_ref:    (BB*T, Hp? no, E) bf16  embedded tokens, rows in batch-major order b*T + t
    # w_ih_ref: (E, 4*Hp)    bf16  input->hidden weights (padded, gate blocks of Hp)
    # w_hh_ref: (Hp, 4*Hp)   bf16  hidden->hidden weights (padded)
    # b_ref:    (1, 4*Hp)    f32   b_ih + b_hh (padded lanes = 0)
    # w_fc_ref: (Hp, Cp)     bf16  fc weights (padded lanes/rows = 0)
    # b_fc_ref: (1, Cp)      f32   fc bias (padded lanes = -1e30 so they vanish)
    # out_ref:  (BB*T, Cp)   f32   log-probs, rows in batch-major order b*T + t
    # h_scr:    (BB, T, Hp)  f32   VMEM scratch holding per-step hidden states
    N, E = x_ref.shape
    BB, T, Hp = h_scr.shape
    G = w_hh_ref.shape[1]
    f32, bf16 = jnp.float32, jnp.bfloat16

    # ---- Phase 1: hoisted input projection for ALL timesteps (one MXU matmul) ----
    # Rows stay batch-major (b*T + t); the reshape below only splits the
    # second-minor dim (layout-preserving, no permutation matmuls needed).
    xg = jnp.dot(x_ref[...], w_ih_ref[...], preferred_element_type=f32) + b_ref[...]
    xg3 = xg.reshape(BB, T, G)

    # ---- Phase 2: recurrence; only h @ W_hh remains on the serial path ----------
    # Fully unrolled: T is small & static, giving the LLO scheduler full
    # visibility across steps.
    # TODO(synk): for T beyond ~32 switch to lax.fori_loop(..., unroll=8) to
    # bound code size / compile time.
    h = jnp.zeros((BB, Hp), f32)
    c = jnp.zeros((BB, Hp), f32)
    for t in range(T):
        gates = xg3[:, t, :] + jnp.dot(
            h.astype(bf16), w_hh_ref[...], preferred_element_type=f32)  # (BB, 4*Hp)
        # Gate slices are 128-lane aligned (Hp == 128*k) -> free vreg views.
        i = jax.nn.sigmoid(gates[:, 0 * Hp:1 * Hp])
        f = jax.nn.sigmoid(gates[:, 1 * Hp:2 * Hp])
        g = jnp.tanh(gates[:, 2 * Hp:3 * Hp])
        o = jax.nn.sigmoid(gates[:, 3 * Hp:4 * Hp])
        c = f * c + i * g
        h = o * jnp.tanh(c)
        # Write each step's h to VMEM scratch: live vreg state stays {h, c, gates}.
        h_scr[:, t, :] = h

    # ---- Phase 3: fused Linear + log_softmax epilogue, one lane-dense store ------
    h_bt = h_scr[...].reshape(N, Hp)                      # rows = b*T + t
    logits = jnp.dot(h_bt.astype(bf16), w_fc_ref[...],
                     preferred_element_type=f32) + b_fc_ref[...]      # (N, Cp)
    m = jnp.max(logits, axis=1, keepdims=True)
    z = logits - m
    lse = jnp.log(jnp.sum(jnp.exp(z), axis=1, keepdims=True))
    out_ref[...] = z - lse


# ------------------------------------ wrapper ----------------------------------------
def _round_up(n, m):
    return ((n + m - 1) // m) * m


def _pick_block_b(B):
    """Batch rows per kernel block.

    Big enough to feed the MXU well per recurrence step, but keeps >= 2 grid
    blocks once the batch is non-trivial (so v7x megacore can shard across both
    TensorCores), capped at 128 rows to bound VMEM per block (v7x has 64 MiB).
    """
    if B <= 8:
        return 8
    half = _round_up((B + 1) // 2, 8)
    return min(128, half)


@functools.partial(jax.jit, static_argnames=("num_tags",))
def net_forward(tokens, kp, *, num_tags):
    emb = kp["emb"]                       # (V, E) bf16
    w_ih, w_hh, b = kp["w_ih"], kp["w_hh"], kp["b"]
    w_fc, b_fc = kp["w_fc"], kp["b_fc"]

    B, T = tokens.shape
    E = emb.shape[1]
    Hp, G = w_hh.shape
    Cp = w_fc.shape[1]

    BB = _pick_block_b(B)
    B_pad = _round_up(B, BB)
    if B_pad != B:
        tokens = jnp.pad(tokens, ((0, B_pad - B), (0, 0)))

    # Embedding lookup (bf16 gather halves x's HBM bytes); rows are batch-major
    # b*T + t, so no relayout is needed inside the kernel.
    # TODO(synk): fuse the gather into the kernel via PrefetchScalarGridSpec +
    # pl.Element row indexing once B*T*E is large enough for the extra HBM pass
    # to matter.
    x = jnp.take(emb, tokens.reshape(-1), axis=0)          # (B_pad*T, E) bf16

    out_padded = pl.pallas_call(
        lstm_fc_kernel,
        out_shape=jax.ShapeDtypeStruct((B_pad * T, Cp), jnp.float32),
        grid_spec=pltpu.PrefetchScalarGridSpec(
            num_scalar_prefetch=0,
            grid=(B_pad // BB,),
            in_specs=[
                pl.BlockSpec((BB * T, E), lambda i: (i, 0)),   # per-block batch slab
                pl.BlockSpec((E, G), lambda i: (0, 0)),        # weights stay resident
                pl.BlockSpec((Hp, G), lambda i: (0, 0)),
                pl.BlockSpec((1, G), lambda i: (0, 0)),
                pl.BlockSpec((Hp, Cp), lambda i: (0, 0)),
                pl.BlockSpec((1, Cp), lambda i: (0, 0)),
            ],
            out_specs=pl.BlockSpec((BB * T, Cp), lambda i: (i, 0)),
            scratch_shapes=[pltpu.VMEM((BB, T, Hp), jnp.float32)],
        ),
        compiler_params=pltpu.CompilerParams(
            dimension_semantics=("parallel",),   # batch grid -> megacore on v7x
        ),
    )(x, w_ih, w_hh, b, w_fc, b_fc)

    # Slice away batch-padding rows and lane-padding columns.
    return out_padded[:B * T, :num_tags]


# ------------------------------- parameter handling ----------------------------------
def init_raw_params(key, vocab_size, embedding_dim, lstm_hidden_dim, number_of_tags):
    """PyTorch-layout raw f32 parameters (gate order i | f | g | o)."""
    E, H, C = embedding_dim, lstm_hidden_dim, number_of_tags
    ks = jax.random.split(key, 7)
    k = 1.0 / (H ** 0.5)
    return dict(
        emb=jax.random.normal(ks[0], (vocab_size, E), jnp.float32),
        w_ih=jax.random.uniform(ks[1], (4 * H, E), jnp.float32, -k, k),
        w_hh=jax.random.uniform(ks[2], (4 * H, H), jnp.float32, -k, k),
        b_ih=jax.random.uniform(ks[3], (4 * H,), jnp.float32, -k, k),
        b_hh=jax.random.uniform(ks[4], (4 * H,), jnp.float32, -k, k),
        w_fc=jax.random.uniform(ks[5], (C, H), jnp.float32, -k, k),
        b_fc=jax.random.uniform(ks[6], (C,), jnp.float32, -k, k),
    )


def pack_params(raw):
    """Pad to lane-dense TPU layouts and cast matmul operands to bf16."""
    E = raw["w_ih"].shape[1]
    H = raw["w_hh"].shape[1]
    C = raw["w_fc"].shape[0]
    Hp = _round_up(H, 128)     # lane-aligned gate blocks & hidden lanes
    Cp = _round_up(C, 128)     # lane-dense log_softmax output
    G = 4 * Hp

    w_ih_p = jnp.zeros((E, G), jnp.float32)
    w_hh_p = jnp.zeros((Hp, G), jnp.float32)
    b_p = jnp.zeros((1, G), jnp.float32)
    b_sum = raw["b_ih"] + raw["b_hh"]
    for k in range(4):  # PyTorch gate order i | f | g | o
        w_ih_p = w_ih_p.at[:, k * Hp:k * Hp + H].set(raw["w_ih"][k * H:(k + 1) * H, :].T)
        w_hh_p = w_hh_p.at[:H, k * Hp:k * Hp + H].set(raw["w_hh"][k * H:(k + 1) * H, :].T)
        b_p = b_p.at[0, k * Hp:k * Hp + H].set(b_sum[k * H:(k + 1) * H])

    w_fc_p = jnp.zeros((Hp, Cp), jnp.float32).at[:H, :C].set(raw["w_fc"].T)
    # Padded logit columns get a huge negative f32 bias so they vanish under log_softmax.
    b_fc_p = jnp.full((1, Cp), -1e30, jnp.float32).at[0, :C].set(raw["b_fc"])

    return dict(
        emb=raw["emb"].astype(jnp.bfloat16),   # stream activations in bf16
        w_ih=w_ih_p.astype(jnp.bfloat16),
        w_hh=w_hh_p.astype(jnp.bfloat16),
        b=b_p,
        w_fc=w_fc_p.astype(jnp.bfloat16),
        b_fc=b_fc_p,
    )


# ------------------------------ pure-JAX reference -----------------------------------
def reference_forward(tokens, raw):
    """f32 re-implementation of Net.forward, for numerical checking."""
    x = jnp.take(raw["emb"], tokens, axis=0)           # (B, T, E)
    B, T, _ = x.shape
    H = raw["w_hh"].shape[1]
    w_ih_t, w_hh_t = raw["w_ih"].T, raw["w_hh"].T
    b = raw["b_ih"] + raw["b_hh"]

    def step(carry, x_t):
        h, c = carry
        gates = x_t @ w_ih_t + h @ w_hh_t + b
        i, f, g, o = jnp.split(gates, 4, axis=-1)
        i, f, o = jax.nn.sigmoid(i), jax.nn.sigmoid(f), jax.nn.sigmoid(o)
        g = jnp.tanh(g)
        c = f * c + i * g
        h = o * jnp.tanh(c)
        return (h, c), h

    init = (jnp.zeros((B, H), jnp.float32), jnp.zeros((B, H), jnp.float32))
    _, hs = jax.lax.scan(step, init, jnp.swapaxes(x, 0, 1))   # (T, B, H)
    s = jnp.swapaxes(hs, 0, 1).reshape(B * T, H)
    logits = s @ raw["w_fc"].T + raw["b_fc"]
    return jax.nn.log_softmax(logits, axis=1)


# --------------------------------------- main ----------------------------------------
if __name__ == "__main__":
    vocab_size, embedding_dim, lstm_hidden_dim, number_of_tags = 16, 32, 32, 8
    B, T = 2, 8

    key = jax.random.PRNGKey(0)
    k_tok, k_par = jax.random.split(key)
    tokens = jax.random.randint(k_tok, (B, T), 0, vocab_size, dtype=jnp.int32)
    raw = init_raw_params(k_par, vocab_size, embedding_dim, lstm_hidden_dim, number_of_tags)
    kparams = pack_params(raw)

    out = net_forward(tokens, kparams, num_tags=number_of_tags)
    out = jax.block_until_ready(out)

    # Sanity: shape, finiteness, log_softmax normalization, and match vs f32 reference.
    assert out.shape == (B * T, number_of_tags)
    assert bool(jnp.all(jnp.isfinite(out)))
    row_lse = jax.scipy.special.logsumexp(out, axis=1)
    assert bool(jnp.allclose(row_lse, 0.0, atol=1e-4))
    ref = reference_forward(tokens, raw)
    assert bool(jnp.allclose(out, ref, atol=5e-2)), float(jnp.max(jnp.abs(out - ref)))

    print("KERNEL_OK")
</pallas_src>

<mosaic_0001>
module attributes {stable_mosaic.version = 11 : i64} {
  func.func @lstm_fc_kernel(%arg0: i32, %arg1: memref<64x32xbf16, #tpu.memory_space<vmem>>, %arg2: memref<32x512xbf16, #tpu.memory_space<vmem>>, %arg3: memref<128x512xbf16, #tpu.memory_space<vmem>>, %arg4: memref<1x512xf32, #tpu.memory_space<vmem>>, %arg5: memref<128x128xbf16, #tpu.memory_space<vmem>>, %arg6: memref<1x128xf32, #tpu.memory_space<vmem>>, %arg7: memref<64x128xf32, #tpu.memory_space<vmem>>, %arg8: memref<8x8x128xf32, #tpu.memory_space<vmem>>) attributes {dimension_semantics = [#tpu.dimension_semantics<parallel>], iteration_bounds = array<i64: 1>, scalar_prefetch = 0 : i64, scratch_operands = 1 : i64, tpu.core_type = #tpu.core_type<tc>, window_params = [{transform_indices = @transform_0, window_bounds = array<i64: 64, 32>}, {pipeline_mode = #tpu.pipeline_mode<synchronous>, transform_indices = @transform_1, window_bounds = array<i64: 32, 512>}, {pipeline_mode = #tpu.pipeline_mode<synchronous>, transform_indices = @transform_2, window_bounds = array<i64: 128, 512>}, {pipeline_mode = #tpu.pipeline_mode<synchronous>, transform_indices = @transform_3, window_bounds = array<i64: 1, 512>}, {pipeline_mode = #tpu.pipeline_mode<synchronous>, transform_indices = @transform_4, window_bounds = array<i64: 128, 128>}, {pipeline_mode = #tpu.pipeline_mode<synchronous>, transform_indices = @transform_5, window_bounds = array<i64: 1, 128>}, {transform_indices = @transform_6, window_bounds = array<i64: 64, 128>}]} {
    %c0 = arith.constant 0 : index
    %c0_0 = arith.constant 0 : index
    %0 = vector.load %arg1[%c0, %c0_0] : memref<64x32xbf16, #tpu.memory_space<vmem>>, vector<64x32xbf16>
    %c0_1 = arith.constant 0 : index
    %c0_2 = arith.constant 0 : index
    %1 = vector.load %arg2[%c0_1, %c0_2] : memref<32x512xbf16, #tpu.memory_space<vmem>>, vector<32x512xbf16>
    %cst = arith.constant dense<0.000000e+00> : vector<64x512xf32>
    %2 = tpu.matmul %0, %1, %cst {dimension_numbers = #tpu.dot_dimension_numbers<[1], [0], [0], [1], [0, 0, 1, 1], [], []>} : vector<64x32xbf16>, vector<32x512xbf16>, vector<64x512xf32> -> vector<64x512xf32>
    %c0_3 = arith.constant 0 : index
    %c0_4 = arith.constant 0 : index
    %3 = vector.load %arg4[%c0_3, %c0_4] : memref<1x512xf32, #tpu.memory_space<vmem>>, vector<1x512xf32>
    %4 = vector.broadcast %3 : vector<1x512xf32> to vector<64x512xf32>
    %5 = arith.addf %2, %4 : vector<64x512xf32>
    %6 = vector.shape_cast %5 : vector<64x512xf32> to vector<8x8x512xf32>
    %cst_5 = arith.constant 0.000000e+00 : f32
    %7 = vector.broadcast %cst_5 : f32 to vector<8x128xf32>
    %cst_6 = arith.constant 0.000000e+00 : f32
    %8 = vector.broadcast %cst_6 : f32 to vector<8x128xf32>
    %9 = vector.extract_strided_slice %6 {offsets = [0, 0, 0], sizes = [8, 1, 512], strides = [1, 1, 1]} : vector<8x8x512xf32> to vector<8x1x512xf32>
    %10 = vector.shape_cast %9 : vector<8x1x512xf32> to vector<8x512xf32>
    %11 = arith.truncf %7 : vector<8x128xf32> to vector<8x128xbf16>
    %c0_7 = arith.constant 0 : index
    %c0_8 = arith.constant 0 : index
    %12 = vector.load %arg3[%c0_7, %c0_8] : memref<128x512xbf16, #tpu.memory_space<vmem>>, vector<128x512xbf16>
    %cst_9 = arith.constant dense<0.000000e+00> : vector<8x512xf32>
    %13 = tpu.matmul %11, %12, %cst_9 {dimension_numbers = #tpu.dot_dimension_numbers<[1], [0], [0], [1], [0, 0, 1, 1], [], []>} : vector<8x128xbf16>, vector<128x512xbf16>, vector<8x512xf32> -> vector<8x512xf32>
    %14 = arith.addf %10, %13 : vector<8x512xf32>
    %15 = vector.extract_strided_slice %14 {offsets = [0, 0], sizes = [8, 128], strides = [1, 1]} : vector<8x512xf32> to vector<8x128xf32>
    %16 = arith.negf %15 : vector<8x128xf32>
    %17 = math.exp %16 : vector<8x128xf32>
    %cst_10 = arith.constant 1.000000e+00 : f32
    %18 = vector.broadcast %cst_10 : f32 to vector<8x128xf32>
    %19 = arith.addf %18, %17 : vector<8x128xf32>
    %20 = arith.divf %18, %19 : vector<8x128xf32>
    %21 = vector.extract_strided_slice %14 {offsets = [0, 128], sizes = [8, 128], strides = [1, 1]} : vector<8x512xf32> to vector<8x128xf32>
    %22 = arith.negf %21 : vector<8x128xf32>
    %23 = math.exp %22 : vector<8x128xf32>
    %cst_11 = arith.constant 1.000000e+00 : f32
    %24 = vector.broadcast %cst_11 : f32 to vector<8x128xf32>
    %25 = arith.addf %24, %23 : vector<8x128xf32>
    %26 = arith.divf %24, %25 : vector<8x128xf32>
    %27 = vector.extract_strided_slice %14 {offsets = [0, 256], sizes = [8, 128], strides = [1, 1]} : vector<8x512xf32> to vector<8x128xf32>
    %28 = math.tanh %27 : vector<8x128xf32>
    %29 = vector.extract_strided_slice %14 {offsets = [0, 384], sizes = [8, 128], strides = [1, 1]} : vector<8x512xf32> to vector<8x128xf32>
    %30 = arith.negf %29 : vector<8x128xf32>
    %31 = math.exp %30 : vector<8x128xf32>
    %cst_12 = arith.constant 1.000000e+00 : f32
    %32 = vector.broadcast %cst_12 : f32 to vector<8x128xf32>
    %33 = arith.addf %32, %31 : vector<8x128xf32>
    %34 = arith.divf %32, %33 : vector<8x128xf32>
    %35 = arith.mulf %26, %8 : vector<8x128xf32>
    %36 = arith.mulf %20, %28 : vector<8x128xf32>
    %37 = arith.addf %35, %36 : vector<8x128xf32>
    %38 = math.tanh %37 : vector<8x128xf32>
    %39 = arith.mulf %34, %38 : vector<8x128xf32>
    %c0_13 = arith.constant 0 : index
    %c0_14 = arith.constant 0 : index
    %c0_15 = arith.constant 0 : index
    %40 = vector.load %arg8[%c0_13, %c0_14, %c0_15] : memref<8x8x128xf32, #tpu.memory_space<vmem>>, vector<8x1x128xf32>
    %41 = vector.shape_cast %40 : vector<8x1x128xf32> to vector<8x128xf32>
    %42 = vector.shape_cast %39 : vector<8x128xf32> to vector<8x1x128xf32>
    tpu.vector_store %arg8[%c0_13, %c0_14, %c0_15], %42 {strides = array<i32>} : memref<8x8x128xf32, #tpu.memory_space<vmem>>, vector<8x1x128xf32>,
    %43 = vector.extract_strided_slice %6 {offsets = [0, 1, 0], sizes = [8, 1, 512], strides = [1, 1, 1]} : vector<8x8x512xf32> to vector<8x1x512xf32>
    %44 = vector.shape_cast %43 : vector<8x1x512xf32> to vector<8x512xf32>
    %45 = arith.truncf %39 : vector<8x128xf32> to vector<8x128xbf16>
    %c0_16 = arith.constant 0 : index
    %c0_17 = arith.constant 0 : index
    %46 = vector.load %arg3[%c0_16, %c0_17] : memref<128x512xbf16, #tpu.memory_space<vmem>>, vector<128x512xbf16>
    %cst_18 = arith.constant dense<0.000000e+00> : vector<8x512xf32>
    %47 = tpu.matmul %45, %46, %cst_18 {dimension_numbers = #tpu.dot_dimension_numbers<[1], [0], [0], [1], [0, 0, 1, 1], [], []>} : vector<8x128xbf16>, vector<128x512xbf16>, vector<8x512xf32> -> vector<8x512xf32>
    %48 = arith.addf %44, %47 : vector<8x512xf32>
    %49 = vector.extract_strided_slice %48 {offsets = [0, 0], sizes = [8, 128], strides = [1, 1]} : vector<8x512xf32> to vector<8x128xf32>
    %50 = arith.negf %49 : vector<8x128xf32>
    %51 = math.exp %50 : vector<8x128xf32>
    %cst_19 = arith.constant 1.000000e+00 : f32
    %52 = vector.broadcast %cst_19 : f32 to vector<8x128xf32>
    %53 = arith.addf %52, %51 : vector<8x128xf32>
    %54 = arith.divf %52, %53 : vector<8x128xf32>
    %55 = vector.extract_strided_slice %48 {offsets = [0, 128], sizes = [8, 128], strides = [1, 1]} : vector<8x512xf32> to vector<8x128xf32>
    %56 = arith.negf %55 : vector<8x128xf32>
    %57 = math.exp %56 : vector<8x128xf32>
    %cst_20 = arith.constant 1.000000e+00 : f32
    %58 = vector.broadcast %cst_20 : f32 to vector<8x128xf32>
    %59 = arith.addf %58, %57 : vector<8x128xf32>
    %60 = arith.divf %58, %59 : vector<8x128xf32>
    %61 = vector.extract_strided_slice %48 {offsets = [0, 256], sizes = [8, 128], strides = [1, 1]} : vector<8x512xf32> to vector<8x128xf32>
    %62 = math.tanh %61 : vector<8x128xf32>
    %63 = vector.extract_strided_slice %48 {offsets = [0, 384], sizes = [8, 128], strides = [1, 1]} : vector<8x512xf32> to vector<8x128xf32>
    %64 = arith.negf %63 : vector<8x128xf32>
    %65 = math.exp %64 : vector<8x128xf32>
    %cst_21 = arith.constant 1.000000e+00 : f32
    %66 = vector.broadcast %cst_21 : f32 to vector<8x128xf32>
    %67 = arith.addf %66, %65 : vector<8x128xf32>
    %68 = arith.divf %66, %67 : vector<8x128xf32>
    %69 = arith.mulf %60, %37 : vector<8x128xf32>
    %70 = arith.mulf %54, %62 : vector<8x128xf32>
    %71 = arith.addf %69, %70 : vector<8x128xf32>
    %72 = math.tanh %71 : vector<8x128xf32>
    %73 = arith.mulf %68, %72 : vector<8x128xf32>
    %c0_22 = arith.constant 0 : index
    %c1 = arith.constant 1 : index
    %c0_23 = arith.constant 0 : index
    %74 = vector.load %arg8[%c0_22, %c1, %c0_23] : memref<8x8x128xf32, #tpu.memory_space<vmem>>, vector<8x1x128xf32>
    %75 = vector.shape_cast %74 : vector<8x1x128xf32> to vector<8x128xf32>
    %76 = vector.shape_cast %73 : vector<8x128xf32> to vector<8x1x128xf32>
    tpu.vector_store %arg8[%c0_22, %c1, %c0_23], %76 {strides = array<i32>} : memref<8x8x128xf32, #tpu.memory_space<vmem>>, vector<8x1x128xf32>,
    %77 = vector.extract_strided_slice %6 {offsets = [0, 2, 0], sizes = [8, 1, 512], strides = [1, 1, 1]} : vector<8x8x512xf32> to vector<8x1x512xf32>
    %78 = vector.shape_cast %77 : vector<8x1x512xf32> to vector<8x512xf32>
    %79 = arith.truncf %73 : vector<8x128xf32> to vector<8x128xbf16>
    %c0_24 = arith.constant 0 : index
    %c0_25 = arith.constant 0 : index
    %80 = vector.load %arg3[%c0_24, %c0_25] : memref<128x512xbf16, #tpu.memory_space<vmem>>, vector<128x512xbf16>
    %cst_26 = arith.constant dense<0.000000e+00> : vector<8x512xf32>
    %81 = tpu.matmul %79, %80, %cst_26 {dimension_numbers = #tpu.dot_dimension_numbers<[1], [0], [0], [1], [0, 0, 1, 1], [], []>} : vector<8x128xbf16>, vector<128x512xbf16>, vector<8x512xf32> -> vector<8x512xf32>
    %82 = arith.addf %78, %81 : vector<8x512xf32>
    %83 = vector.extract_strided_slice %82 {offsets = [0, 0], sizes = [8, 128], strides = [1, 1]} : vector<8x512xf32> to vector<8x128xf32>
    %84 = arith.negf %83 : vector<8x128xf32>
    %85 = math.exp %84 : vector<8x128xf32>
    %cst_27 = arith.constant 1.000000e+00 : f32
    %86 = vector.broadcast %cst_27 : f32 to vector<8x128xf32>
    %87 = arith.addf %86, %85 : vector<8x128xf32>
    %88 = arith.divf %86, %87 : vector<8x128xf32>
    %89 = vector.extract_strided_slice %82 {offsets = [0, 128], sizes = [8, 128], strides = [1, 1]} : vector<8x512xf32> to vector<8x128xf32>
    %90 = arith.negf %89 : vector<8x128xf32>
    %91 = math.exp %90 : vector<8x128xf32>
    %cst_28 = arith.constant 1.000000e+00 : f32
    %92 = vector.broadcast %cst_28 : f32 to vector<8x128xf32>
    %93 = arith.addf %92, %91 : vector<8x128xf32>
    %94 = arith.divf %92, %93 : vector<8x128xf32>
    %95 = vector.extract_strided_slice %82 {offsets = [0, 256], sizes = [8, 128], strides = [1, 1]} : vector<8x512xf32> to vector<8x128xf32>
    %96 = math.tanh %95 : vector<8x128xf32>
    %97 = vector.extract_strided_slice %82 {offsets = [0, 384], sizes = [8, 128], strides = [1, 1]} : vector<8x512xf32> to vector<8x128xf32>
    %98 = arith.negf %97 : vector<8x128xf32>
    %99 = math.exp %98 : vector<8x128xf32>
    %cst_29 = arith.constant 1.000000e+00 : f32
    %100 = vector.broadcast %cst_29 : f32 to vector<8x128xf32>
    %101 = arith.addf %100, %99 : vector<8x128xf32>
    %102 = arith.divf %100, %101 : vector<8x128xf32>
    %103 = arith.mulf %94, %71 : vector<8x128xf32>
    %104 = arith.mulf %88, %96 : vector<8x128xf32>
    %105 = arith.addf %103, %104 : vector<8x128xf32>
    %106 = math.tanh %105 : vector<8x128xf32>
    %107 = arith.mulf %102, %106 : vector<8x128xf32>
    %c0_30 = arith.constant 0 : index
    %c2 = arith.constant 2 : index
    %c0_31 = arith.constant 0 : index
    %108 = vector.load %arg8[%c0_30, %c2, %c0_31] : memref<8x8x128xf32, #tpu.memory_space<vmem>>, vector<8x1x128xf32>
    %109 = vector.shape_cast %108 : vector<8x1x128xf32> to vector<8x128xf32>
    %110 = vector.shape_cast %107 : vector<8x128xf32> to vector<8x1x128xf32>
    tpu.vector_store %arg8[%c0_30, %c2, %c0_31], %110 {strides = array<i32>} : memref<8x8x128xf32, #tpu.memory_space<vmem>>, vector<8x1x128xf32>,
    %111 = vector.extract_strided_slice %6 {offsets = [0, 3, 0], sizes = [8, 1, 512], strides = [1, 1, 1]} : vector<8x8x512xf32> to vector<8x1x512xf32>
    %112 = vector.shape_cast %111 : vector<8x1x512xf32> to vector<8x512xf32>
    %113 = arith.truncf %107 : vector<8x128xf32> to vector<8x128xbf16>
    %c0_32 = arith.constant 0 : index
    %c0_33 = arith.constant 0 : index
    %114 = vector.load %arg3[%c0_32, %c0_33] : memref<128x512xbf16, #tpu.memory_space<vmem>>, vector<128x512xbf16>
    %cst_34 = arith.constant dense<0.000000e+00> : vector<8x512xf32>
    %115 = tpu.matmul %113, %114, %cst_34 {dimension_numbers = #tpu.dot_dimension_numbers<[1], [0], [0], [1], [0, 0, 1, 1], [], []>} : vector<8x128xbf16>, vector<128x512xbf16>, vector<8x512xf32> -> vector<8x512xf32>
    %116 = arith.addf %112, %115 : vector<8x512xf32>
    %117 = vector.extract_strided_slice %116 {offsets = [0, 0], sizes = [8, 128], strides = [1, 1]} : vector<8x512xf32> to vector<8x128xf32>
    %118 = arith.negf %117 : vector<8x128xf32>
    %119 = math.exp %118 : vector<8x128xf32>
    %cst_35 = arith.constant 1.000000e+00 : f32
    %120 = vector.broadcast %cst_35 : f32 to vector<8x128xf32>
    %121 = arith.addf %120, %119 : vector<8x128xf32>
    %122 = arith.divf %120, %121 : vector<8x128xf32>
    %123 = vector.extract_strided_slice %116 {offsets = [0, 128], sizes = [8, 128], strides = [1, 1]} : vector<8x512xf32> to vector<8x128xf32>
    %124 = arith.negf %123 : vector<8x128xf32>
    %125 = math.exp %124 : vector<8x128xf32>
    %cst_36 = arith.constant 1.000000e+00 : f32
    %126 = vector.broadcast %cst_36 : f32 to vector<8x128xf32>
    %127 = arith.addf %126, %125 : vector<8x128xf32>
    %128 = arith.divf %126, %127 : vector<8x128xf32>
    %129 = vector.extract_strided_slice %116 {offsets = [0, 256], sizes = [8, 128], strides = [1, 1]} : vector<8x512xf32> to vector<8x128xf32>
    %130 = math.tanh %129 : vector<8x128xf32>
    %131 = vector.extract_strided_slice %116 {offsets = [0, 384], sizes = [8, 128], strides = [1, 1]} : vector<8x512xf32> to vector<8x128xf32>
    %132 = arith.negf %131 : vector<8x128xf32>
    %133 = math.exp %132 : vector<8x128xf32>
    %cst_37 = arith.constant 1.000000e+00 : f32
    %134 = vector.broadcast %cst_37 : f32 to vector<8x128xf32>
    %135 = arith.addf %134, %133 : vector<8x128xf32>
    %136 = arith.divf %134, %135 : vector<8x128xf32>
    %137 = arith.mulf %128, %105 : vector<8x128xf32>
    %138 = arith.mulf %122, %130 : vector<8x128xf32>
    %139 = arith.addf %137, %138 : vector<8x128xf32>
    %140 = math.tanh %139 : vector<8x128xf32>
    %141 = arith.mulf %136, %140 : vector<8x128xf32>
    %c0_38 = arith.constant 0 : index
    %c3 = arith.constant 3 : index
    %c0_39 = arith.constant 0 : index
    %142 = vector.load %arg8[%c0_38, %c3, %c0_39] : memref<8x8x128xf32, #tpu.memory_space<vmem>>, vector<8x1x128xf32>
    %143 = vector.shape_cast %142 : vector<8x1x128xf32> to vector<8x128xf32>
    %144 = vector.shape_cast %141 : vector<8x128xf32> to vector<8x1x128xf32>
    tpu.vector_store %arg8[%c0_38, %c3, %c0_39], %144 {strides = array<i32>} : memref<8x8x128xf32, #tpu.memory_space<vmem>>, vector<8x1x128xf32>,
    %145 = vector.extract_strided_slice %6 {offsets = [0, 4, 0], sizes = [8, 1, 512], strides = [1, 1, 1]} : vector<8x8x512xf32> to vector<8x1x512xf32>
    %146 = vector.shape_cast %145 : vector<8x1x512xf32> to vector<8x512xf32>
    %147 = arith.truncf %141 : vector<8x128xf32> to vector<8x128xbf16>
    %c0_40 = arith.constant 0 : index
    %c0_41 = arith.constant 0 : index
    %148 = vector.load %arg3[%c0_40, %c0_41] : memref<128x512xbf16, #tpu.memory_space<vmem>>, vector<128x512xbf16>
    %cst_42 = arith.constant dense<0.000000e+00> : vector<8x512xf32>
    %149 = tpu.matmul %147, %148, %cst_42 {dimension_numbers = #tpu.dot_dimension_numbers<[1], [0], [0], [1], [0, 0, 1, 1], [], []>} : vector<8x128xbf16>, vector<128x512xbf16>, vector<8x512xf32> -> vector<8x512xf32>
    %150 = arith.addf %146, %149 : vector<8x512xf32>
    %151 = vector.extract_strided_slice %150 {offsets = [0, 0], sizes = [8, 128], strides = [1, 1]} : vector<8x512xf32> to vector<8x128xf32>
    %152 = arith.negf %151 : vector<8x128xf32>
    %153 = math.exp %152 : vector<8x128xf32>
    %cst_43 = arith.constant 1.000000e+00 : f32
    %154 = vector.broadcast %cst_43 : f32 to vector<8x128xf32>
    %155 = arith.addf %154, %153 : vector<8x128xf32>
    %156 = arith.divf %154, %155 : vector<8x128xf32>
    %157 = vector.extract_strided_slice %150 {offsets = [0, 128], sizes = [8, 128], strides = [1, 1]} : vector<8x512xf32> to vector<8x128xf32>
    %158 = arith.negf %157 : vector<8x128xf32>
    %159 = math.exp %158 : vector<8x128xf32>
    %cst_44 = arith.constant 1.000000e+00 : f32
    %160 = vector.broadcast %cst_44 : f32 to vector<8x128xf32>
    %161 = arith.addf %160, %159 : vector<8x128xf32>
    %162 = arith.divf %160, %161 : vector<8x128xf32>
    %163 = vector.extract_strided_slice %150 {offsets = [0, 256], sizes = [8, 128], strides = [1, 1]} : vector<8x512xf32> to vector<8x128xf32>
    %164 = math.tanh %163 : vector<8x128xf32>
    %165 = vector.extract_strided_slice %150 {offsets = [0, 384], sizes = [8, 128], strides = [1, 1]} : vector<8x512xf32> to vector<8x128xf32>
    %166 = arith.negf %165 : vector<8x128xf32>
    %167 = math.exp %166 : vector<8x128xf32>
    %cst_45 = arith.constant 1.000000e+00 : f32
    %168 = vector.broadcast %cst_45 : f32 to vector<8x128xf32>
    %169 = arith.addf %168, %167 : vector<8x128xf32>
    %170 = arith.divf %168, %169 : vector<8x128xf32>
    %171 = arith.mulf %162, %139 : vector<8x128xf32>
    %172 = arith.mulf %156, %164 : vector<8x128xf32>
    %173 = arith.addf %171, %172 : vector<8x128xf32>
    %174 = math.tanh %173 : vector<8x128xf32>
    %175 = arith.mulf %170, %174 : vector<8x128xf32>
    %c0_46 = arith.constant 0 : index
    %c4 = arith.constant 4 : index
    %c0_47 = arith.constant 0 : index
    %176 = vector.load %arg8[%c0_46, %c4, %c0_47] : memref<8x8x128xf32, #tpu.memory_space<vmem>>, vector<8x1x128xf32>
    %177 = vector.shape_cast %176 : vector<8x1x128xf32> to vector<8x128xf32>
    %178 = vector.shape_cast %175 : vector<8x128xf32> to vector<8x1x128xf32>
    tpu.vector_store %arg8[%c0_46, %c4, %c0_47], %178 {strides = array<i32>} : memref<8x8x128xf32, #tpu.memory_space<vmem>>, vector<8x1x128xf32>,
    %179 = vector.extract_strided_slice %6 {offsets = [0, 5, 0], sizes = [8, 1, 512], strides = [1, 1, 1]} : vector<8x8x512xf32> to vector<8x1x512xf32>
    %180 = vector.shape_cast %179 : vector<8x1x512xf32> to vector<8x512xf32>
    %181 = arith.truncf %175 : vector<8x128xf32> to vector<8x128xbf16>
    %c0_48 = arith.constant 0 : index
    %c0_49 = arith.constant 0 : index
    %182 = vector.load %arg3[%c0_48, %c0_49] : memref<128x512xbf16, #tpu.memory_space<vmem>>, vector<128x512xbf16>
    %cst_50 = arith.constant dense<0.000000e+00> : vector<8x512xf32>
    %183 = tpu.matmul %181, %182, %cst_50 {dimension_numbers = #tpu.dot_dimension_numbers<[1], [0], [0], [1], [0, 0, 1, 1], [], []>} : vector<8x128xbf16>, vector<128x512xbf16>, vector<8x512xf32> -> vector<8x512xf32>
    %184 = arith.addf %180, %183 : vector<8x512xf32>
    %185 = vector.extract_strided_slice %184 {offsets = [0, 0], sizes = [8, 128], strides = [1, 1]} : vector<8x512xf32> to vector<8x128xf32>
    %186 = arith.negf %185 : vector<8x128xf32>
    %187 = math.exp %186 : vector<8x128xf32>
    %cst_51 = arith.constant 1.000000e+00 : f32
    %188 = vector.broadcast %cst_51 : f32 to vector<8x128xf32>
    %189 = arith.addf %188, %187 : vector<8x128xf32>
    %190 = arith.divf %188, %189 : vector<8x128xf32>
    %191 = vector.extract_strided_slice %184 {offsets = [0, 128], sizes = [8, 128], strides = [1, 1]} : vector<8x512xf32> to vector<8x128xf32>
    %192 = arith.negf %191 : vector<8x128xf32>
    %193 = math.exp %192 : vector<8x128xf32>
    %cst_52 = arith.constant 1.000000e+00 : f32
    %194 = vector.broadcast %cst_52 : f32 to vector<8x128xf32>
    %195 = arith.addf %194, %193 : vector<8x128xf32>
    %196 = arith.divf %194, %195 : vector<8x128xf32>
    %197 = vector.extract_strided_slice %184 {offsets = [0, 256], sizes = [8, 128], strides = [1, 1]} : vector<8x512xf32> to vector<8x128xf32>
    %198 = math.tanh %197 : vector<8x128xf32>
    %199 = vector.extract_strided_slice %184 {offsets = [0, 384], sizes = [8, 128], strides = [1, 1]} : vector<8x512xf32> to vector<8x128xf32>
    %200 = arith.negf %199 : vector<8x128xf32>
    %201 = math.exp %200 : vector<8x128xf32>
    %cst_53 = arith.constant 1.000000e+00 : f32
    %202 = vector.broadcast %cst_53 : f32 to vector<8x128xf32>
    %203 = arith.addf %202, %201 : vector<8x128xf32>
    %204 = arith.divf %202, %203 : vector<8x128xf32>
    %205 = arith.mulf %196, %173 : vector<8x128xf32>
    %206 = arith.mulf %190, %198 : vector<8x128xf32>
    %207 = arith.addf %205, %206 : vector<8x128xf32>
    %208 = math.tanh %207 : vector<8x128xf32>
    %209 = arith.mulf %204, %208 : vector<8x128xf32>
    %c0_54 = arith.constant 0 : index
    %c5 = arith.constant 5 : index
    %c0_55 = arith.constant 0 : index
    %210 = vector.load %arg8[%c0_54, %c5, %c0_55] : memref<8x8x128xf32, #tpu.memory_space<vmem>>, vector<8x1x128xf32>
    %211 = vector.shape_cast %210 : vector<8x1x128xf32> to vector<8x128xf32>
    %212 = vector.shape_cast %209 : vector<8x128xf32> to vector<8x1x128xf32>
    tpu.vector_store %arg8[%c0_54, %c5, %c0_55], %212 {strides = array<i32>} : memref<8x8x128xf32, #tpu.memory_space<vmem>>, vector<8x1x128xf32>,
    %213 = vector.extract_strided_slice %6 {offsets = [0, 6, 0], sizes = [8, 1, 512], strides = [1, 1, 1]} : vector<8x8x512xf32> to vector<8x1x512xf32>
    %214 = vector.shape_cast %213 : vector<8x1x512xf32> to vector<8x512xf32>
    %215 = arith.truncf %209 : vector<8x128xf32> to vector<8x128xbf16>
    %c0_56 = arith.constant 0 : index
    %c0_57 = arith.constant 0 : index
    %216 = vector.load %arg3[%c0_56, %c0_57] : memref<128x512xbf16, #tpu.memory_space<vmem>>, vector<128x512xbf16>
    %cst_58 = arith.constant dense<0.000000e+00> : vector<8x512xf32>
    %217 = tpu.matmul %215, %216, %cst_58 {dimension_numbers = #tpu.dot_dimension_numbers<[1], [0], [0], [1], [0, 0, 1, 1], [], []>} : vector<8x128xbf16>, vector<128x512xbf16>, vector<8x512xf32> -> vector<8x512xf32>
    %218 = arith.addf %214, %217 : vector<8x512xf32>
    %219 = vector.extract_strided_slice %218 {offsets = [0, 0], sizes = [8, 128], strides = [1, 1]} : vector<8x512xf32> to vector<8x128xf32>
    %220 = arith.negf %219 : vector<8x128xf32>
    %221 = math.exp %220 : vector<8x128xf32>
    %cst_59 = arith.constant 1.000000e+00 : f32
    %222 = vector.broadcast %cst_59 : f32 to vector<8x128xf32>
    %223 = arith.addf %222, %221 : vector<8x128xf32>
    %224 = arith.divf %222, %223 : vector<8x128xf32>
    %225 = vector.extract_strided_slice %218 {offsets = [0, 128], sizes = [8, 128], strides = [1, 1]} : vector<8x512xf32> to vector<8x128xf32>
    %226 = arith.negf %225 : vector<8x128xf32>
    %227 = math.exp %226 : vector<8x128xf32>
    %cst_60 = arith.constant 1.000000e+00 : f32
    %228 = vector.broadcast %cst_60 : f32 to vector<8x128xf32>
    %229 = arith.addf %228, %227 : vector<8x128xf32>
    %230 = arith.divf %228, %229 : vector<8x128xf32>
    %231 = vector.extract_strided_slice %218 {offsets = [0, 256], sizes = [8, 128], strides = [1, 1]} : vector<8x512xf32> to vector<8x128xf32>
    %232 = math.tanh %231 : vector<8x128xf32>
    %233 = vector.extract_strided_slice %218 {offsets = [0, 384], sizes = [8, 128], strides = [1, 1]} : vector<8x512xf32> to vector<8x128xf32>
    %234 = arith.negf %233 : vector<8x128xf32>
    %235 = math.exp %234 : vector<8x128xf32>
    %cst_61 = arith.constant 1.000000e+00 : f32
    %236 = vector.broadcast %cst_61 : f32 to vector<8x128xf32>
    %237 = arith.addf %236, %235 : vector<8x128xf32>
    %238 = arith.divf %236, %237 : vector<8x128xf32>
    %239 = arith.mulf %230, %207 : vector<8x128xf32>
    %240 = arith.mulf %224, %232 : vector<8x128xf32>
    %241 = arith.addf %239, %240 : vector<8x128xf32>
    %242 = math.tanh %241 : vector<8x128xf32>
    %243 = arith.mulf %238, %242 : vector<8x128xf32>
    %c0_62 = arith.constant 0 : index
    %c6 = arith.constant 6 : index
    %c0_63 = arith.constant 0 : index
    %244 = vector.load %arg8[%c0_62, %c6, %c0_63] : memref<8x8x128xf32, #tpu.memory_space<vmem>>, vector<8x1x128xf32>
    %245 = vector.shape_cast %244 : vector<8x1x128xf32> to vector<8x128xf32>
    %246 = vector.shape_cast %243 : vector<8x128xf32> to vector<8x1x128xf32>
    tpu.vector_store %arg8[%c0_62, %c6, %c0_63], %246 {strides = array<i32>} : memref<8x8x128xf32, #tpu.memory_space<vmem>>, vector<8x1x128xf32>,
    %247 = vector.extract_strided_slice %6 {offsets = [0, 7, 0], sizes = [8, 1, 512], strides = [1, 1, 1]} : vector<8x8x512xf32> to vector<8x1x512xf32>
    %248 = vector.shape_cast %247 : vector<8x1x512xf32> to vector<8x512xf32>
    %249 = arith.truncf %243 : vector<8x128xf32> to vector<8x128xbf16>
    %c0_64 = arith.constant 0 : index
    %c0_65 = arith.constant 0 : index
    %250 = vector.load %arg3[%c0_64, %c0_65] : memref<128x512xbf16, #tpu.memory_space<vmem>>, vector<128x512xbf16>
    %cst_66 = arith.constant dense<0.000000e+00> : vector<8x512xf32>
    %251 = tpu.matmul %249, %250, %cst_66 {dimension_numbers = #tpu.dot_dimension_numbers<[1], [0], [0], [1], [0, 0, 1, 1], [], []>} : vector<8x128xbf16>, vector<128x512xbf16>, vector<8x512xf32> -> vector<8x512xf32>
    %252 = arith.addf %248, %251 : vector<8x512xf32>
    %253 = vector.extract_strided_slice %252 {offsets = [0, 0], sizes = [8, 128], strides = [1, 1]} : vector<8x512xf32> to vector<8x128xf32>
    %254 = arith.negf %253 : vector<8x128xf32>
    %255 = math.exp %254 : vector<8x128xf32>
    %cst_67 = arith.constant 1.000000e+00 : f32
    %256 = vector.broadcast %cst_67 : f32 to vector<8x128xf32>
    %257 = arith.addf %256, %255 : vector<8x128xf32>
    %258 = arith.divf %256, %257 : vector<8x128xf32>
    %259 = vector.extract_strided_slice %252 {offsets = [0, 128], sizes = [8, 128], strides = [1, 1]} : vector<8x512xf32> to vector<8x128xf32>
    %260 = arith.negf %259 : vector<8x128xf32>
    %261 = math.exp %260 : vector<8x128xf32>
    %cst_68 = arith.constant 1.000000e+00 : f32
    %262 = vector.broadcast %cst_68 : f32 to vector<8x128xf32>
    %263 = arith.addf %262, %261 : vector<8x128xf32>
    %264 = arith.divf %262, %263 : vector<8x128xf32>
    %265 = vector.extract_strided_slice %252 {offsets = [0, 256], sizes = [8, 128], strides = [1, 1]} : vector<8x512xf32> to vector<8x128xf32>
    %266 = math.tanh %265 : vector<8x128xf32>
    %267 = vector.extract_strided_slice %252 {offsets = [0, 384], sizes = [8, 128], strides = [1, 1]} : vector<8x512xf32> to vector<8x128xf32>
    %268 = arith.negf %267 : vector<8x128xf32>
    %269 = math.exp %268 : vector<8x128xf32>
    %cst_69 = arith.constant 1.000000e+00 : f32
    %270 = vector.broadcast %cst_69 : f32 to vector<8x128xf32>
    %271 = arith.addf %270, %269 : vector<8x128xf32>
    %272 = arith.divf %270, %271 : vector<8x128xf32>
    %273 = arith.mulf %264, %241 : vector<8x128xf32>
    %274 = arith.mulf %258, %266 : vector<8x128xf32>
    %275 = arith.addf %273, %274 : vector<8x128xf32>
    %276 = math.tanh %275 : vector<8x128xf32>
    %277 = arith.mulf %272, %276 : vector<8x128xf32>
    %c0_70 = arith.constant 0 : index
    %c7 = arith.constant 7 : index
    %c0_71 = arith.constant 0 : index
    %278 = vector.load %arg8[%c0_70, %c7, %c0_71] : memref<8x8x128xf32, #tpu.memory_space<vmem>>, vector<8x1x128xf32>
    %279 = vector.shape_cast %278 : vector<8x1x128xf32> to vector<8x128xf32>
    %280 = vector.shape_cast %277 : vector<8x128xf32> to vector<8x1x128xf32>
    tpu.vector_store %arg8[%c0_70, %c7, %c0_71], %280 {strides = array<i32>} : memref<8x8x128xf32, #tpu.memory_space<vmem>>, vector<8x1x128xf32>,
    %c0_72 = arith.constant 0 : index
    %c0_73 = arith.constant 0 : index
    %c0_74 = arith.constant 0 : index
    %281 = vector.load %arg8[%c0_72, %c0_73, %c0_74] : memref<8x8x128xf32, #tpu.memory_space<vmem>>, vector<8x8x128xf32>
    %282 = vector.shape_cast %281 : vector<8x8x128xf32> to vector<64x128xf32>
    %283 = arith.truncf %282 : vector<64x128xf32> to vector<64x128xbf16>
    %c0_75 = arith.constant 0 : index
    %c0_76 = arith.constant 0 : index
    %284 = vector.load %arg5[%c0_75, %c0_76] : memref<128x128xbf16, #tpu.memory_space<vmem>>, vector<128x128xbf16>
    %cst_77 = arith.constant dense<0.000000e+00> : vector<64x128xf32>
    %285 = tpu.matmul %283, %284, %cst_77 {dimension_numbers = #tpu.dot_dimension_numbers<[1], [0], [0], [1], [0, 0, 1, 1], [], []>} : vector<64x128xbf16>, vector<128x128xbf16>, vector<64x128xf32> -> vector<64x128xf32>
    %c0_78 = arith.constant 0 : index
    %c0_79 = arith.constant 0 : index
    %286 = vector.load %arg6[%c0_78, %c0_79] : memref<1x128xf32, #tpu.memory_space<vmem>>, vector<1x128xf32>
    %287 = vector.broadcast %286 : vector<1x128xf32> to vector<64x128xf32>
    %288 = arith.addf %285, %287 : vector<64x128xf32>
    %cst_80 = arith.constant dense<0xFF800000> : vector<64xf32>
    %289 = vector.multi_reduction <maximumf>, %288, %cst_80 [1] : vector<64x128xf32> to vector<64xf32>
    %290 = vector.shape_cast %289 : vector<64xf32> to vector<64x1xf32>
    %291 = vector.broadcast %290 : vector<64x1xf32> to vector<64x128xf32>
    %292 = arith.subf %288, %291 : vector<64x128xf32>
    %293 = math.exp %292 : vector<64x128xf32>
    %cst_81 = arith.constant dense<0.000000e+00> : vector<64xf32>
    %294 = vector.multi_reduction <add>, %293, %cst_81 [1] : vector<64x128xf32> to vector<64xf32>
    %295 = vector.shape_cast %294 : vector<64xf32> to vector<64x1xf32>
    %296 = math.log %295 : vector<64x1xf32>
    %297 = vector.broadcast %296 : vector<64x1xf32> to vector<64x128xf32>
    %298 = arith.subf %292, %297 : vector<64x128xf32>
    %c0_82 = arith.constant 0 : index
    %c0_83 = arith.constant 0 : index
    %299 = vector.load %arg7[%c0_82, %c0_83] : memref<64x128xf32, #tpu.memory_space<vmem>>, vector<64x128xf32>
    tpu.vector_store %arg7[%c0_82, %c0_83], %298 {strides = array<i32>} : memref<64x128xf32, #tpu.memory_space<vmem>>, vector<64x128xf32>,
    return
  }
  func.func @transform_0(%arg0: i32) -> (i32, i32) {
    %c0_i32 = arith.constant 0 : i32
    %c0_i32_0 = arith.constant 0 : i32
    return %arg0, %c0_i32 : i32, i32
  }
  func.func @transform_1(%arg0: i32) -> (i32, i32) {
    %c0_i32 = arith.constant 0 : i32
    %c0_i32_0 = arith.constant 0 : i32
    %c0_i32_1 = arith.constant 0 : i32
    return %c0_i32, %c0_i32_0 : i32, i32
  }
  func.func @transform_2(%arg0: i32) -> (i32, i32) {
    %c0_i32 = arith.constant 0 : i32
    %c0_i32_0 = arith.constant 0 : i32
    %c0_i32_1 = arith.constant 0 : i32
    return %c0_i32, %c0_i32_0 : i32, i32
  }
  func.func @transform_3(%arg0: i32) -> (i32, i32) {
    %c0_i32 = arith.constant 0 : i32
    %c0_i32_0 = arith.constant 0 : i32
    %c0_i32_1 = arith.constant 0 : i32
    return %c0_i32, %c0_i32_0 : i32, i32
  }
  func.func @transform_4(%arg0: i32) -> (i32, i32) {
    %c0_i32 = arith.constant 0 : i32
    %c0_i32_0 = arith.constant 0 : i32
    %c0_i32_1 = arith.constant 0 : i32
    return %c0_i32, %c0_i32_0 : i32, i32
  }
  func.func @transform_5(%arg0: i32) -> (i32, i32) {
    %c0_i32 = arith.constant 0 : i32
    %c0_i32_0 = arith.constant 0 : i32
    %c0_i32_1 = arith.constant 0 : i32
    return %c0_i32, %c0_i32_0 : i32, i32
  }
  func.func @transform_6(%arg0: i32) -> (i32, i32) {
    %c0_i32 = arith.constant 0 : i32
    %c0_i32_0 = arith.constant 0 : i32
    return %arg0, %c0_i32 : i32, i32
  }
}

</mosaic_0001>

<bundles_post_ra>
// kernel: net_forward.1
= control target key start
LH: loop header
LB: loop body
LE: loop exit
PB: predicated region body
PF: predicated region fallthrough
CT: control target
= control target key end

     0   :  { %v9381_v1 = vmov 0   ;;  %vm122_vm0 = vcmask 261120   ;;  %v42_v51 = vlaneseq  ;;  %vm908_vm1 = vcmask 1041409   ;;  %s9374_s1 = inlined_call_operand.vmem [shape: bf16[32,512], index: 1, kind: input, shape index: {}]   ;;  %s9375_s2 = inlined_call_operand.vmem [shape: bf16[128,512], index: 2, kind: input, shape index: {}]   ;;  %s9376_s0 = inlined_call_operand.vmem [shape: bf16[64,32], index: 0, kind: input, shape index: {}]   ;;  %s9377_s3 = inlined_call_operand.vmem [shape: f32[1,512], index: 3, kind: input, shape index: {}]   ;;  %s9378_s4 = inlined_call_operand.vmem [shape: bf16[128,128], index: 4, kind: input, shape index: {}]   ;;  %s9379_s5 = inlined_call_operand.vmem [shape: f32[1,128], index: 5, kind: input, shape index: {}]   ;;  %s9380_s6 = inlined_call_operand.vmem [shape: f32[64,128], index: 6, kind: output, shape index: {}]  }
   0x1   :  { %v6050_v0 = vld [vmem:[%s9374_s1 + $0x4] ss:$16 sps:$4 sm:$0xff]   ;;  %167 = vmatprep.mubr.bf16.mxu1 %v9381_v1  ;;  %505 = vmatprep.mubr.bf16.mxu0 %v9381_v1  ;;  %v6054_v3 = vld [vmem:[%s9374_s1] ss:$16 sps:$4 sm:$0xff]   ;;  %v6063_v10 = vld [vmem:[%s9374_s1 + $0x8] ss:$16 sps:$4 sm:$0xff]  }
   0x2   :  { %v6052_v2 = vld [vmem:[%s9375_s2 + $0x4] ss:$16 sps:$4 sm:$0xff]   ;;  %135 = vmatprep.subr.bf16.mxu1 %v6050_v0  ;;  %v6055_v4 = vld [vmem:[%s9375_s2] ss:$16 sps:$4 sm:$0xff]   ;;  %v6065_v11 = vld [vmem:[%s9374_s1 + $0xc] ss:$16 sps:$4 sm:$0xff]  }
   0x3   :  { %473 = vmatprep.subr.bf16.mxu0 %v6052_v2  ;;  %v6056_v5 = vld [vmem:[%s9374_s1 + $0x24] ss:$16 sps:$4 sm:$0xff]   ;;  %136 = vmatpush1.bf16.msra.mxu1 %v6054_v3  ;;  %v6060_v7 = vld [vmem:[%s9374_s1 + $0x20] ss:$16 sps:$4 sm:$0xff]   ;;  %v6072_v17 = vld [vmem:[%s9376_s0 + $0x8] sm:$0xff]   ;;  %v7516_v54 = vshrl.u32 %v42_v51, 7 }
   0x4   :  { %474 = vmatpush1.bf16.msra.mxu0 %v6055_v4  ;;  %v6058_v6 = vld [vmem:[%s9375_s2 + $0x24] ss:$16 sps:$4 sm:$0xff]   ;;  %137 = vmatprep.subr.bf16.mxu1 %v6056_v5  ;;  %v6061_v8 = vld [vmem:[%s9375_s2 + $0x20] ss:$16 sps:$4 sm:$0xff]   ;;  %v6082_v19 = vld [vmem:[%s9374_s1 + $0x2c] ss:$16 sps:$4 sm:$0xff]  }
   0x5   :  { %475 = vmatprep.subr.bf16.mxu0 %v6058_v6  ;;  %v6062_v9 = vld [vmem:[%s9376_s0] sm:$0xff]   ;;  %v6080_v21 = vld [vmem:[%s9374_s1 + $0x28] ss:$16 sps:$4 sm:$0xff]   ;;  %v7436_v24 = vld [vmem:[%s9375_s2 + $0xc] ss:$16 sps:$4 sm:$0xff]   ;;  %v44_v57 = vsub.s32 0, %v7516_v54 }
   0x6   :  { %v6066_v12 = vld [vmem:[%s9375_s2 + $0x44] ss:$16 sps:$4 sm:$0xff]   ;;  %v6068_v13 = vld [vmem:[%s9375_s2 + $0x40] ss:$16 sps:$4 sm:$0xff]   ;;  %v6089_v29 = vld [vmem:[%s9376_s0 + $0x18] sm:$0xff]   ;;  %v48_v62 = vsub.s32 1, %v7516_v54 }
   0x7   :  { %138 = vmatpush1.bf16.msra.mxu1 %v6060_v7  ;;  %v6069_v14 = vld [vmem:[%s9375_s2 + $0x64] ss:$16 sps:$4 sm:$0xff]   ;;  %v6071_v15 = vld [vmem:[%s9375_s2 + $0x60] ss:$16 sps:$4 sm:$0xff]   ;;  %v6090_v30 = vld [vmem:[%s9375_s2 + $0x8] ss:$16 sps:$4 sm:$0xff]  }
   0x8   :  { %476 = vmatpush1.bf16.msra.mxu0 %v6061_v8  ;;  %208 = vmatprep.subr.bf16.mxu1 %v6065_v11  ;;  %v6073_v16 = vld [vmem:[%s9375_s2 + $0x84] ss:$16 sps:$4 sm:$0xff]   ;;  %v6075_v18 = vld [vmem:[%s9375_s2 + $0x80] ss:$16 sps:$4 sm:$0xff]   ;;  %v6095_v31 = vld [vmem:[%s9375_s2 + $0x2c] ss:$16 sps:$4 sm:$0xff]  }
   0x9   :  { %477 = vmatprep.subr.bf16.mxu0 %v6066_v12  ;;  %v6076_v20 = vld [vmem:[%s9375_s2 + $0xa4] ss:$16 sps:$4 sm:$0xff]   ;;  %v6078_v22 = vld [vmem:[%s9375_s2 + $0xa0] ss:$16 sps:$4 sm:$0xff]   ;;  %v6093_v32 = vld [vmem:[%s9375_s2 + $0x28] ss:$16 sps:$4 sm:$0xff]  }
   0xa   :  { %5548 = vmatmul.mubr.msk.bf16.vlgmr.msra.gmra.mrb[0].mxu1 %vm122_vm0, %v6062_v9  ;;  %v6083_v23 = vld [vmem:[%s9375_s2 + $0xc4] ss:$16 sps:$4 sm:$0xff]   ;;  %v6085_v26 = vld [vmem:[%s9375_s2 + $0xc0] ss:$16 sps:$4 sm:$0xff]   ;;  %v6098_v33 = vld [vmem:[%s9375_s2 + $0x4c] ss:$16 sps:$4 sm:$0xff]  }
   0xb   :  { %209 = vmatpush1.bf16.msra.mxu1 %v6063_v10  ;;  %177 = vmatprep.mubr.bf16.mxu1 %v9381_v1  ;;  %v6079_v25 = vld [vmem:[%s9376_s0 + $0x10] sm:$0xff]   ;;  %v6096_v34 = vld [vmem:[%s9375_s2 + $0x48] ss:$16 sps:$4 sm:$0xff]   ;;  %v6101_v35 = vld [vmem:[%s9375_s2 + $0x6c] ss:$16 sps:$4 sm:$0xff]   ;;  %vm911_vm2 = vcmask 1042434  }
   0xc   :  { %478 = vmatpush1.bf16.msra.mxu0 %v6068_v13  ;;  %210 = vmatprep.subr.bf16.mxu1 %v6082_v19  ;;  %v6086_v27 = vld [vmem:[%s9375_s2 + $0xe4] ss:$16 sps:$4 sm:$0xff]   ;;  %v6088_v28 = vld [vmem:[%s9375_s2 + $0xe0] ss:$16 sps:$4 sm:$0xff]   ;;  %v6099_v36 = vld [vmem:[%s9375_s2 + $0x68] ss:$16 sps:$4 sm:$0xff]  }
   0xd   :  { %479 = vmatprep.subr.bf16.mxu0 %v6069_v14  ;;  %v6104_v37 = vld [vmem:[%s9375_s2 + $0x8c] ss:$16 sps:$4 sm:$0xff]   ;;  %v6102_v38 = vld [vmem:[%s9375_s2 + $0x88] ss:$16 sps:$4 sm:$0xff]   ;;  %v7522_v59 = vld [vmem:[%s9377_s3] sm:$0xf] }
   0xe   :  { %v6107_v39 = vld [vmem:[%s9375_s2 + $0xac] ss:$16 sps:$4 sm:$0xff]   ;;  %v6105_v40 = vld [vmem:[%s9375_s2 + $0xa8] ss:$16 sps:$4 sm:$0xff]   ;;  %v7525_v61 = vrot.slane %v7522_v59, %v44_v57  ;;  %vm914_vm3 = vcmask 1043459   ;;  %vm917_vm4 = vcmask 1044484  }
   0xf   :  { %211 = vmatpush1.bf16.msra.mxu1 %v6080_v21  ;;  %v6110_v41 = vld [vmem:[%s9375_s2 + $0xcc] ss:$16 sps:$4 sm:$0xff]   ;;  %v6108_v42 = vld [vmem:[%s9375_s2 + $0xc8] ss:$16 sps:$4 sm:$0xff]   ;;  %vm920_vm5 = vcmask 1045509   ;;  %vm923_vm6 = vcmask 1046534  }
  0x10   :  { %480 = vmatpush1.bf16.msra.mxu0 %v6071_v15  ;;  %514 = vmatprep.subr.bf16.mxu1 %v7436_v24  ;;  %v6113_v43 = vld [vmem:[%s9375_s2 + $0xec] ss:$16 sps:$4 sm:$0xff]   ;;  %v6111_v44 = vld [vmem:[%s9375_s2 + $0xe8] ss:$16 sps:$4 sm:$0xff]   ;;  %vm926_vm7 = vcmask 1047559  }
  0x11   :  { %481 = vmatprep.subr.bf16.mxu0 %v6073_v16 }
  0x12   :  { %5549 = vmatmul.mubr.msk.bf16.gmra.mrb[4].mxu1 %vm122_vm0, %v6072_v17 }
  0x13   :  { %187 = vmatprep.mubr.bf16.mxu1 %v9381_v1 }
  0x14   :  { %482 = vmatpush1.bf16.msra.mxu0 %v6075_v18 }
  0x15   :  { %483 = vmatprep.subr.bf16.mxu0 %v6076_v20 }
  0x18   :  { %484 = vmatpush1.bf16.msra.mxu0 %v6078_v22 }
  0x19   :  { %485 = vmatprep.subr.bf16.mxu0 %v6083_v23 }
  0x1a   :  { %5550 = vmatmul.mubr.msk.bf16.gmra.mrb[8].mxu1 %vm122_vm0, %v6079_v25 }
  0x1b   :  { %197 = vmatprep.mubr.bf16.mxu1 %v9381_v1 }
  0x1c   :  { %486 = vmatpush1.bf16.msra.mxu0 %v6085_v26 }
  0x1d   :  { %487 = vmatprep.subr.bf16.mxu0 %v6086_v27 }
  0x20   :  { %488 = vmatpush1.bf16.msra.mxu0 %v6088_v28 }
  0x21   :  { %1090 = vmatprep.subr.bf16.mxu0 %v6052_v2 }
  0x22   :  { %5551 = vmatmul.mubr.msk.bf16.gmra.mrb[12].mxu1 %vm122_vm0, %v6089_v29 }
  0x23   :  { %506 = vmatmul.mubr.bf16.vlgmr.msra.gmra.mrb[0].mxu0 %v9381_v1  ;;  %240 = vmatprep.mubr.bf16.mxu1 %v9381_v1 }
  0x24   :  { %1091 = vmatpush1.bf16.msra.mxu0 %v6055_v4  ;;  %1122 = vmatprep.mubr.bf16.mxu0 %v9381_v1 }
  0x25   :  { %1092 = vmatprep.subr.bf16.mxu0 %v6058_v6 }
  0x28   :  { %1093 = vmatpush1.bf16.msra.mxu0 %v6061_v8 }
  0x29   :  { %1094 = vmatprep.subr.bf16.mxu0 %v6066_v12 }
  0x2a   :  { %5552 = vmatmul.mubr.msk.bf16.vlgmr.msra.gmra.mrb[16].mxu1 %vm122_vm0, %v6062_v9 }
  0x2b   :  { %515 = vmatpush1.bf16.msra.mxu1 %v6090_v30  ;;  %250 = vmatprep.mubr.bf16.mxu1 %v9381_v1 }
  0x2c   :  { %516 = vmatprep.subr.bf16.mxu1 %v6095_v31  ;;  %1095 = vmatpush1.bf16.msra.mxu0 %v6068_v13  ;;  %v7546_v13 = vrot.slane %v7522_v59, %v48_v62 }
  0x2d   :  { %1096 = vmatprep.subr.bf16.mxu0 %v6069_v14 }
  0x2f   :  { %517 = vmatpush1.bf16.msra.mxu1 %v6093_v32 }
  0x30   :  { %518 = vmatprep.subr.bf16.mxu1 %v6098_v33  ;;  %1097 = vmatpush1.bf16.msra.mxu0 %v6071_v15 }
  0x31   :  { %1098 = vmatprep.subr.bf16.mxu0 %v6073_v16 }
  0x32   :  { %5553 = vmatmul.mubr.msk.bf16.gmra.mrb[20].mxu1 %vm122_vm0, %v6072_v17 }
  0x33   :  { %519 = vmatpush1.bf16.msra.mxu1 %v6096_v34  ;;  %260 = vmatprep.mubr.bf16.mxu1 %v9381_v1 }
  0x34   :  { %520 = vmatprep.subr.bf16.mxu1 %v6101_v35  ;;  %1099 = vmatpush1.bf16.msra.mxu0 %v6075_v18 }
  0x35   :  { %1100 = vmatprep.subr.bf16.mxu0 %v6076_v20 }
  0x37   :  { %521 = vmatpush1.bf16.msra.mxu1 %v6099_v36 }
  0x38   :  { %522 = vmatprep.subr.bf16.mxu1 %v6104_v37  ;;  %1101 = vmatpush1.bf16.msra.mxu0 %v6078_v22 }
  0x39   :  { %1102 = vmatprep.subr.bf16.mxu0 %v6083_v23 }
  0x3a   :  { %5554 = vmatmul.mubr.msk.bf16.gmra.mrb[24].mxu1 %vm122_vm0, %v6079_v25 }
  0x3b   :  { %523 = vmatpush1.bf16.msra.mxu1 %v6102_v38  ;;  %270 = vmatprep.mubr.bf16.mxu1 %v9381_v1 }
  0x3c   :  { %524 = vmatprep.subr.bf16.mxu1 %v6107_v39  ;;  %1103 = vmatpush1.bf16.msra.mxu0 %v6085_v26 }
  0x3d   :  { %1104 = vmatprep.subr.bf16.mxu0 %v6086_v27 }
  0x3f   :  { %525 = vmatpush1.bf16.msra.mxu1 %v6105_v40 }
  0x40   :  { %526 = vmatprep.subr.bf16.mxu1 %v6110_v41  ;;  %1105 = vmatpush1.bf16.msra.mxu0 %v6088_v28 }
  0x42   :  { %5555 = vmatmul.mubr.msk.bf16.gmra.mrb[28].mxu1 %vm122_vm0, %v6089_v29 }
  0x43   :  { %527 = vmatpush1.bf16.msra.mxu1 %v6108_v42  ;;  %546 = vmatprep.mubr.bf16.mxu1 %v9381_v1 }
  0x44   :  { %528 = vmatprep.subr.bf16.mxu1 %v6113_v43 }
  0x47   :  { %529 = vmatpush1.bf16.msra.mxu1 %v6111_v44 }
  0x48   :  { %1131 = vmatprep.subr.bf16.mxu1 %v7436_v24 }
  0x4a   :  { %547 = vmatmul.mubr.bf16.vlgmr.msra.gmra.mrb[32].mxu1 %v9381_v1 }
  0x4b   :  { %1132 = vmatpush1.bf16.msra.mxu1 %v6090_v30  ;;  %1163 = vmatprep.mubr.bf16.mxu1 %v9381_v1 }
  0x4c   :  { %1133 = vmatprep.subr.bf16.mxu1 %v6095_v31 }
  0x4f   :  { %1134 = vmatpush1.bf16.msra.mxu1 %v6093_v32 }
  0x50   :  { %1135 = vmatprep.subr.bf16.mxu1 %v6098_v33 }
  0x53   :  { %1136 = vmatpush1.bf16.msra.mxu1 %v6096_v34 }
  0x54   :  { %1137 = vmatprep.subr.bf16.mxu1 %v6101_v35 }
  0x57   :  { %1138 = vmatpush1.bf16.msra.mxu1 %v6099_v36 }
  0x58   :  { %1139 = vmatprep.subr.bf16.mxu1 %v6104_v37 }
  0x5b   :  { %1140 = vmatpush1.bf16.msra.mxu1 %v6102_v38 }
  0x5c   :  { %1141 = vmatprep.subr.bf16.mxu1 %v6107_v39 }
  0x5f   :  { %1142 = vmatpush1.bf16.msra.mxu1 %v6105_v40 }
  0x60   :  { %1143 = vmatprep.subr.bf16.mxu1 %v6110_v41 }
  0x63   :  { %1144 = vmatpush1.bf16.msra.mxu1 %v6108_v42 }
  0x64   :  { %1145 = vmatprep.subr.bf16.mxu1 %v6113_v43 }
  0x67   :  { %1146 = vmatpush1.bf16.msra.mxu1 %v6111_v44 }
  0xdd   :  { %v169_v45 = vpop.f32.mrb[0].mxu1 }
  0xde   :  { %v171_v46 = vpop.f32.mrb[1].mxu1  ;;  %v7534_v5 = vadd.f32 %v169_v45, %v7525_v61 }
  0xdf   :  { %v173_v47 = vpop.f32.mrb[2].mxu1  ;;  %v7569_v25 = vadd.f32 %v171_v46, %v7546_v13 }
  0xe0   :  { %v175_v48 = vpop.f32.mrb[3].mxu1  ;;  %v7540_v9 = vadd.f32 %v173_v47, %v7525_v61 }
  0xe1   :  { %9510 = vst [vmem:[#allocation3_spill] sm:$0xff] %v7569_v25  ;;  %v7578_v30 = vadd.f32 %v175_v48, %v7546_v13 }
  0xe3   :  { %9512 = vst [vmem:[#allocation5_spill] sm:$0xff] %v7578_v30 }
  0xe5   :  { %v179_v49 = vpop.f32.mrb[4].mxu1 }
  0xe6   :  { %v181_v50 = vpop.f32.mrb[5].mxu1  ;;  %v7549_v14 = vadd.f32 %v179_v49, %v7525_v61 }
  0xe7   :  { %v183_v52 = vpop.f32.mrb[6].mxu1  ;;  %v7581_v31 = vadd.f32 %v181_v50, %v7546_v13 }
  0xe8   :  { %v185_v53 = vpop.f32.mrb[7].mxu1  ;;  %v7555_v17 = vadd.f32 %v183_v52, %v7525_v61 }
  0xe9   :  { %9513 = vst [vmem:[#allocation6_spill] sm:$0xff] %v7581_v31  ;;  %v7587_v35 = vadd.f32 %v185_v53, %v7546_v13 }
  0xeb   :  { %9514 = vst [vmem:[#allocation7_spill] sm:$0xff] %v7587_v35 }
  0xed   :  { %v189_v55 = vpop.f32.mrb[8].mxu1 }
  0xee   :  { %v191_v56 = vpop.f32.mrb[9].mxu1  ;;  %v7559_v19 = vadd.f32 %v189_v55, %v7525_v61 }
  0xef   :  { %v193_v58 = vpop.f32.mrb[10].mxu1  ;;  %v7594_v40 = vadd.f32 %v191_v56, %v7546_v13 }
  0xf0   :  { %v195_v60 = vpop.f32.mrb[11].mxu1  ;;  %v7572_v26 = vadd.f32 %v193_v58, %v7525_v61 }
  0xf1   :  { %9515 = vst [vmem:[#allocation8_spill] sm:$0xff] %v7594_v40  ;;  %v7604_v48 = vadd.f32 %v195_v60, %v7546_v13 }
  0xf2   :  { %9511 = vst [vmem:[#allocation4_spill] sm:$0xff] %v7572_v26 }
  0xf3   :  { %9516 = vst [vmem:[#allocation9_spill] sm:$0xff] %v7604_v48 }
  0xf5   :  { %v199_v63 = vpop.f32.mrb[12].mxu1 }
  0xf6   :  { %v7528_v0 = vpop.f32.mrb[0].mxu0  ;;  %v201_v3 = vpop.f32.mrb[13].mxu1  ;;  %v7564_v22 = vadd.f32 %v199_v63, %v7525_v61 }
  0xf7   :  { %v559_v2 = vrot.slane %v7528_v0, 1  ;;  %v7531_v4 = vpop.f32.mrb[1].mxu0  ;;  %v563_v6 = vrot.slane %v7528_v0, 2  ;;  %v7537_v7 = vpop.f32.mrb[14].mxu1  ;;  %v567_v10 = vrot.slane %v7528_v0, 3  ;;  %v571_v15 = vrot.slane %v7528_v0, 4 }
  0xf8   :  { %v511_v8 = vpop.f32.mrb[2].mxu0  ;;  %v7543_v11 = vpop.f32.mrb[15].mxu1  ;;  %v619_v16 = vadd.f32 %v7528_v0, %v7534_v5  ;;  %v575_v20 = vrot.slane %v7528_v0, 5  ;;  %v579_v23 = vrot.slane %v7528_v0, 6  ;;  %v560_v33 = vrot.slane %v7531_v4, 1 }
  0xf9   :  { %v512_v12 = vpop.f32.mrb[3].mxu0  ;;  %v623_v18 = vadd.f32 %v559_v2, %v7540_v9  ;;  %v627_v21 = vadd.f32 %v563_v6, %v7549_v14  ;;  %v631_v24 = vadd.f32 %v567_v10, %v7555_v17  ;;  %v635_v27 = vadd.f32 %v571_v15, %v7559_v19 }
  0xfa   :  { %v5588_v28 = vmul.f32 -1.442695, %v619_v16  ;;  %v639_v36 = vadd.f32 %v575_v20, %v7572_v26  ;;  %v564_v38 = vrot.slane %v7531_v4, 2  ;;  %v643_v41 = vadd.f32 %v579_v23, %v7564_v22 }
  0xfb   :  { %v5589_v32 = vmul.f32 -1.442695, %v623_v18  ;;  %v5590_v37 = vmul.f32 -1.442695, %v627_v21  ;;  %v5591_v42 = vmul.f32 -1.442695, %v631_v24  ;;  %v620_v47 = vadd.f32 %v7531_v4, %v7569_v25 }
  0xfc   :  { %v568_v43 = vrot.slane %v7531_v4, 3  ;;  %6266 = vpow2.f32 %v5588_v28  ;;  %v5592_v45 = vmul.f32 -1.442695, %v635_v27  ;;  %v572_v46 = vrot.slane %v7531_v4, 4 }
  0xfd   :  { %v7575_v29 = vpop.f32.mrb[16].mxu1  ;;  %6268 = vpow2.f32 %v5589_v32  ;;  %v576_v49 = vrot.slane %v7531_v4, 5  ;;  %v624_v50 = vadd.f32 %v560_v33, %v7578_v30  ;;  %v5593_v51 = vmul.f32 -1.442695, %v639_v36 }
  0xfe   :  { %v7584_v34 = vpop.f32.mrb[17].mxu1  ;;  %6270 = vpow2.f32 %v5590_v37  ;;  %v7609_v52 = vadd.f32 %v201_v3, %v7546_v13  ;;  %v628_v53 = vadd.f32 %v564_v38, %v7581_v31  ;;  %v5594_v55 = vmul.f32 -1.442695, %v643_v41 }
  0xff   :  { %v7591_v39 = vpop.f32.mrb[18].mxu1  ;;  %6272 = vpow2.f32 %v5591_v42  ;;  %v580_v56 = vrot.slane %v7531_v4, 6  ;;  %v632_v57 = vadd.f32 %v568_v43, %v7587_v35  ;;  %v636_v58 = vadd.f32 %v572_v46, %v7594_v40 }
 0x100   :  { %v7598_v44 = vpop.f32.mrb[19].mxu1  ;;  %9517 = vst [vmem:[#allocation10_spill] sm:$0xff] %v7609_v52  ;;  %6274 = vpow2.f32 %v5592_v45  ;;  %v5596_v60 = vmul.f32 -1.442695, %v620_v47  ;;  %v640_v63 = vadd.f32 %v576_v49, %v7604_v48  ;;  %v5597_v2 = vmul.f32 -1.442695, %v624_v50 }
 0x101   :  { %6276 = vpow2.f32 %v5593_v51  ;;  %v5598_v3 = vmul.f32 -1.442695, %v628_v53  ;;  %v644_v10 = vadd.f32 %v580_v56, %v7609_v52  ;;  %v5599_v12 = vmul.f32 -1.442695, %v632_v57 }
 0x102   :  { %6278 = vpow2.f32 %v5594_v55  ;;  %v5600_v16 = vmul.f32 -1.442695, %v636_v58  ;;  %v5601_v18 = vmul.f32 -1.442695, %v640_v63  ;;  %v583_v21 = vrot.slane %v7528_v0, 7 }
 0x103   :  { %6280 = vpow2.f32 %v5596_v60  ;;  %v7628_v23 = vadd.f32 %v7537_v7, %v7525_v61  ;;  %v5602_v27 = vmul.f32 -1.442695, %v644_v10  ;;  %v52_v46 = vsub.s32 2, %v7516_v54 }
 0x104   :  { %6282 = vpow2.f32 %v5597_v2  ;;  %v56_v50 = vsub.s32 3, %v7516_v54  ;;  %v584_v57 = vrot.slane %v7531_v4, 7  ;;  %v7644_v58 = vadd.f32 %v7543_v11, %v7546_v13 }
 0x105   :  { %v7615_v62 = vpop.f32.mrb[20].mxu1  ;;  %6284 = vpow2.f32 %v5598_v3  ;;  %v647_v0 = vadd.f32 %v583_v21, %v7628_v23  ;;  %v53_v2 = vrot.slane %v7522_v59, %v52_v46 }
 0x106   :  { %v7618_v6 = vpop.f32.mrb[21].mxu1  ;;  %v6267_v20 = vpop.eup %6266  ;;  %6286 = vpow2.f32 %v5599_v12  ;;  %9518 = vst [vmem:[#allocation11_spill] sm:$0xff] %v7644_v58  ;;  %v7648_v12 = vrot.slane %v7522_v59, %v56_v50  ;;  %v648_v21 = vadd.f32 %v584_v57, %v7644_v58 }
 0x107   :  { %v7620_v8 = vpop.f32.mrb[22].mxu1  ;;  %v6269_v24 = vpop.eup %6268  ;;  %6288 = vpow2.f32 %v5600_v16  ;;  %v675_v36 = vadd.f32 1.0, %v6267_v20  ;;  %v5595_v53 = vmul.f32 -1.442695, %v647_v0 }
 0x108   :  { %v7623_v15 = vpop.f32.mrb[23].mxu1  ;;  %v6271_v28 = vpop.eup %6270  ;;  %6290 = vpow2.f32 %v5601_v18  ;;  %v676_v41 = vadd.f32 1.0, %v6269_v24  ;;  %v7667_v0 = vadd.f32 %v7598_v44, %v7648_v12 }
 0x109   :  { %v6273_v33 = vpop.eup %6272  ;;  %v677_v61 = vadd.f32 1.0, %v6271_v28  ;;  %6292 = vpow2.f32 %v5602_v27  ;;  %v7656_v28 = vadd.f32 %v7575_v29, %v53_v2  ;;  %v7685_v44 = vadd.f32 %v7623_v15, %v7648_v12 }
 0x10a   :  { %v6275_v38 = vpop.eup %6274  ;;  %v678_v45 = vadd.f32 1.0, %v6273_v33  ;;  %6294 = vrcp.f32 %v675_v36  ;;  %v7660_v36 = vadd.f32 %v7584_v34, %v7648_v12  ;;  %9521 = vst [vmem:[#allocation14_spill] sm:$0xff] %v7667_v0  ;;  %v7676_v34 = vadd.f32 %v7618_v6, %v7648_v12 }
 0x10b   :  { %v6277_v43 = vpop.eup %6276  ;;  %v679_v49 = vadd.f32 1.0, %v6275_v38  ;;  %6296 = vrcp.f32 %v676_v41  ;;  %v7663_v38 = vadd.f32 %v7591_v39, %v53_v2  ;;  %v7679_v39 = vadd.f32 %v7620_v8, %v53_v2 }
 0x10c   :  { %v6279_v47 = vpop.eup %6278  ;;  %v680_v56 = vadd.f32 1.0, %v6277_v43  ;;  %6298 = vrcp.f32 %v677_v61  ;;  %9519 = vst [vmem:[#allocation12_spill] sm:$0xff] %v7660_v36  ;;  %v7670_v61 = vadd.f32 %v7615_v62, %v53_v2  ;;  %v5603_v43 = vmul.f32 -1.442695, %v648_v21  ;;  %9523 = vst [vmem:[#allocation16_spill] sm:$0xff] %v7676_v34 }
 0x10d   :  { %v7630_v32 = vpop.f32.mrb[24].mxu1  ;;  %v6281_v51 = vpop.eup %6280  ;;  %v681_v63 = vadd.f32 1.0, %v6279_v47  ;;  %6300 = vrcp.f32 %v678_v45  ;;  %9520 = vst [vmem:[#allocation13_spill] sm:$0xff] %v7663_v38  ;;  %9524 = vst [vmem:[#allocation17_spill] sm:$0xff] %v7679_v39 }
 0x10e   :  { %v7632_v37 = vpop.f32.mrb[25].mxu1  ;;  %v6283_v55 = vpop.eup %6282  ;;  %6302 = vrcp.f32 %v679_v49  ;;  %v723_v54 = vadd.f32 1.0, %v6281_v51  ;;  %9522 = vst [vmem:[#allocation15_spill] sm:$0xff] %v7670_v61  ;;  %v7688_v62 = vadd.f32 %v7630_v32, %v53_v2 }
 0x10f   :  { %v7635_v42 = vpop.f32.mrb[26].mxu1  ;;  %v6285_v60 = vpop.eup %6284  ;;  %v724_v4 = vadd.f32 1.0, %v6283_v55  ;;  %6304 = vpow2.f32 %v5595_v53  ;;  %v7698_v55 = vadd.f32 %v7632_v37, %v7648_v12 }
 0x110   :  { %v7637_v7 = vpop.f32.mrb[27].mxu1  ;;  %v6287_v10 = vpop.eup %6286  ;;  %6306 = vrcp.f32 %v680_v56  ;;  %v725_v13 = vadd.f32 1.0, %v6285_v60  ;;  %9525 = vst [vmem:[#allocation18_spill] sm:$0xff] %v7688_v62  ;;  %v7701_v15 = vadd.f32 %v7635_v42, %v53_v2 }
 0x111   :  { %v6289_v18 = vpop.eup %6288  ;;  %6308 = vrcp.f32 %v681_v63  ;;  %v726_v27 = vadd.f32 1.0, %v6287_v10 }
 0x112   :  { %v6291_v11 = vpop.eup %6290  ;;  %v727_v33 = vadd.f32 1.0, %v6289_v18  ;;  %6310 = vrcp.f32 %v723_v54  ;;  %9526 = vst [vmem:[#allocation19_spill] sm:$0xff] %v7701_v15 }
 0x113   :  { %v6293_v59 = vpop.eup %6292  ;;  %v728_v41 = vadd.f32 1.0, %v6291_v11  ;;  %6312 = vrcp.f32 %v724_v4 }
 0x114   :  { %v7672_v29 = vpop.eup %6294  ;;  %6314 = vrcp.f32 %v725_v13  ;;  %v729_v46 = vadd.f32 1.0, %v6293_v59 }
 0x115   :  { %v272_v3 = vpop.f32.mrb[28].mxu1  ;;  %v7681_v45 = vpop.eup %6296  ;;  %6316 = vrcp.f32 %v726_v27 }
 0x116   :  { %v7650_v16 = vpop.f32.mrb[29].mxu1  ;;  %v7690_v49 = vpop.eup %6298  ;;  %6318 = vrcp.f32 %v727_v33  ;;  %v7703_v32 = vadd.f32 %v272_v3, %v53_v2 }
 0x117   :  { %v276_v20 = vpop.f32.mrb[30].mxu1  ;;  %v7694_v53 = vpop.eup %6300  ;;  %6320 = vrcp.f32 %v728_v41 }
 0x118   :  { %v7653_v24 = vpop.f32.mrb[31].mxu1  ;;  %9527 = vst [vmem:[#allocation20_spill] sm:$0xff] %v7703_v32  ;;  %v7705_v57 = vpop.eup %6302  ;;  %6322 = vpow2.f32 %v5603_v43  ;;  %v7708_v4 = vadd.f32 %v276_v20, %v53_v2 }
 0x119   :  { %v6305_v18 = vpop.eup %6304  ;;  %6324 = vrcp.f32 %v729_v46 }
 0x11a   :  { %9528 = vst [vmem:[#allocation21_spill] sm:$0xff] %v7708_v4  ;;  %v7711_v42 = vpop.eup %6306  ;;  %v682_v3 = vadd.f32 1.0, %v6305_v18 }
 0x11b   :  { %v7715_v59 = vpop.eup %6308 }
 0x11c   :  { %v6311_v20 = vpop.eup %6310 }
 0x11d   :  { %v548_v47 = vpop.f32.mrb[32].mxu1 }
 0x11e   :  { %v561_v6 = vrot.slane %v548_v47, 1  ;;  %v565_v50 = vrot.slane %v548_v47, 2  ;;  %v569_v51 = vrot.slane %v548_v47, 3  ;;  %v7692_v8 = vpop.f32.mrb[33].mxu1  ;;  %v573_v60 = vrot.slane %v548_v47, 4 }
 0x11f   :  { %v552_v56 = vpop.f32.mrb[34].mxu1  ;;  %v577_v63 = vrot.slane %v548_v47, 5  ;;  %v621_v10 = vadd.f32 %v548_v47, %v7656_v28  ;;  %v581_v37 = vrot.slane %v548_v47, 6  ;;  %v585_v13 = vrot.slane %v548_v47, 7 }
 0x120   :  { %v553_v54 = vpop.f32.mrb[35].mxu1  ;;  %v625_v11 = vadd.f32 %v561_v6, %v7663_v38  ;;  %v629_v21 = vadd.f32 %v565_v50, %v7670_v61  ;;  %v633_v27 = vadd.f32 %v569_v51, %v7679_v39  ;;  %v562_v33 = vrot.slane %v7692_v8, 1  ;;  %v6313_v6 = vpop.eup %6312 }
 0x121   :  { %6326 = vtanh.f32 %v621_v10  ;;  %v566_v41 = vrot.slane %v7692_v8, 2  ;;  %v570_v2 = vrot.slane %v7692_v8, 3  ;;  %v637_v43 = vadd.f32 %v573_v60, %v7688_v62  ;;  %v6315_v10 = vpop.eup %6314 }
 0x122   :  { %6328 = vrcp.f32 %v682_v3  ;;  %v641_v46 = vadd.f32 %v577_v63, %v7701_v15  ;;  %v574_v47 = vrot.slane %v7692_v8, 4  ;;  %v578_v50 = vrot.slane %v7692_v8, 5  ;;  %v6317_v18 = vpop.eup %6316 }
 0x123   :  { %6330 = vtanh.f32 %v625_v11  ;;  %v622_v51 = vadd.f32 %v7692_v8, %v7660_v36  ;;  %v626_v56 = vadd.f32 %v562_v33, %v7667_v0  ;;  %v7729_v54 = vadd.f32 %v7637_v7, %v7648_v12  ;;  %v6319_v36 = vpop.eup %6318 }
 0x124   :  { %v645_v60 = vadd.f32 %v581_v37, %v7703_v32  ;;  %6332 = vtanh.f32 %v629_v21  ;;  %v630_v63 = vadd.f32 %v566_v41, %v7676_v34  ;;  %v649_v11 = vadd.f32 %v585_v13, %v7708_v4  ;;  %v6321_v7 = vpop.eup %6320 }
 0x125   :  { %9529 = vst [vmem:[#allocation22_spill] sm:$0xff] %v7729_v54  ;;  %6334 = vtanh.f32 %v633_v27  ;;  %v582_v3 = vrot.slane %v7692_v8, 6  ;;  %v634_v1 = vadd.f32 %v570_v2, %v7685_v44  ;;  %v638_v33 = vadd.f32 %v574_v47, %v7698_v55  ;;  %v6323_v13 = vpop.eup %6322 }
 0x126   :  { %6336 = vtanh.f32 %v637_v43  ;;  %v5604_v0 = vmul.f32 -1.442695, %v622_v51  ;;  %v7739_v37 = vadd.f32 %v7650_v16, %v7648_v12  ;;  %v642_v21 = vadd.f32 %v578_v50, %v7729_v54  ;;  %v6325_v2 = vpop.eup %6324 }
 0x127   :  { %6338 = vtanh.f32 %v641_v46  ;;  %v5605_v41 = vmul.f32 -1.442695, %v626_v56  ;;  %v586_v27 = vrot.slane %v7692_v8, 7  ;;  %v5606_v34 = vmul.f32 -1.442695, %v630_v63 }
 0x128   :  { %9530 = vst [vmem:[#allocation23_spill] sm:$0xff] %v7739_v37  ;;  %6340 = vtanh.f32 %v645_v60  ;;  %v646_v43 = vadd.f32 %v582_v3, %v7739_v37  ;;  %v5607_v47 = vmul.f32 -1.442695, %v634_v1  ;;  %v7746_v51 = vadd.f32 %v7653_v24, %v7648_v12 }
 0x129   :  { %6342 = vtanh.f32 %v649_v11  ;;  %v5608_v16 = vmul.f32 -1.442695, %v638_v33  ;;  %v5609_v50 = vmul.f32 -1.442695, %v642_v21  ;;  %v803_v54 = vmul.f32 0.0, %v6311_v20 }
 0x12a   :  { %9531 = vst [vmem:[#allocation24_spill] sm:$0xff] %v7746_v51  ;;  %6344 = vpow2.f32 %v5604_v0  ;;  %v650_v8 = vadd.f32 %v586_v27, %v7746_v51  ;;  %v804_v11 = vmul.f32 0.0, %v6313_v6  ;;  %v5610_v1 = vmul.f32 -1.442695, %v646_v43 }
 0x12b   :  { %v6327_v46 = vpop.eup %6326  ;;  %6346 = vpow2.f32 %v5605_v41  ;;  %v805_v37 = vmul.f32 0.0, %v6315_v10  ;;  %v806_v33 = vmul.f32 0.0, %v6317_v18  ;;  %v807_v21 = vmul.f32 0.0, %v6319_v36 }
 0x12c   :  { %v6329_v56 = vpop.eup %6328  ;;  %v811_v60 = vmul.f32 %v6327_v46, %v7672_v29  ;;  %6348 = vpow2.f32 %v5606_v34  ;;  %v5611_v6 = vmul.f32 -1.442695, %v650_v8  ;;  %v730_v27 = vadd.f32 1.0, %v6323_v13 }
 0x12d   :  { %v6331_v63 = vpop.eup %6330  ;;  %6350 = vpow2.f32 %v5607_v47  ;;  %v808_v36 = vmul.f32 0.0, %v6321_v7  ;;  %v809_v47 = vmul.f32 0.0, %v6325_v2 }
 0x12e   :  { %v6333_v3 = vpop.eup %6332  ;;  %v812_v12 = vmul.f32 %v6331_v63, %v7681_v45  ;;  %v7751_v24 = vadd.f32 %v811_v60, %v803_v54  ;;  %6352 = vpow2.f32 %v5608_v16 }
 0x12f   :  { %v6335_v0 = vpop.eup %6334  ;;  %v813_v20 = vmul.f32 %v6333_v3, %v7690_v49  ;;  %6354 = vpow2.f32 %v5609_v50 }
 0x130   :  { %v6337_v29 = vpop.eup %6336  ;;  %v814_v34 = vmul.f32 %v6335_v0, %v7694_v53  ;;  %v7755_v41 = vadd.f32 %v812_v12, %v804_v11  ;;  %6356 = vtanh.f32 %v7751_v24 }
 0x131   :  { %v6339_v10 = vpop.eup %6338  ;;  %v815_v45 = vmul.f32 %v6337_v29, %v7705_v57  ;;  %v7759_v54 = vadd.f32 %v813_v20, %v805_v37  ;;  %6358 = vpow2.f32 %v5610_v1 }
 0x132   :  { %v6341_v18 = vpop.eup %6340  ;;  %v816_v49 = vmul.f32 %v6339_v10, %v7711_v42  ;;  %v7762_v43 = vadd.f32 %v814_v34, %v806_v33  ;;  %6360 = vtanh.f32 %v7755_v41 }
 0x133   :  { %v6343_v53 = vpop.eup %6342  ;;  %6362 = vtanh.f32 %v7759_v54  ;;  %v817_v16 = vmul.f32 %v6341_v18, %v7715_v59  ;;  %v7767_v46 = vadd.f32 %v815_v45, %v807_v21 }
 0x134   :  { %v6345_v57 = vpop.eup %6344  ;;  %6364 = vpow2.f32 %v5611_v6  ;;  %v818_v37 = vmul.f32 %v6343_v53, %v6329_v56  ;;  %v7769_v13 = vadd.f32 %v816_v49, %v808_v36 }
 0x135   :  { %v6347_v7 = vpop.eup %6346  ;;  %v779_v50 = vadd.f32 1.0, %v6345_v57  ;;  %6366 = vrcp.f32 %v730_v27  ;;  %v7771_v42 = vadd.f32 %v817_v16, %v809_v47 }
 0x136   :  { %v6349_v60 = vpop.eup %6348  ;;  %v780_v8 = vadd.f32 1.0, %v6347_v7  ;;  %6368 = vtanh.f32 %v7762_v43 }
 0x137   :  { %v6351_v2 = vpop.eup %6350  ;;  %v781_v63 = vadd.f32 1.0, %v6349_v60  ;;  %6370 = vrcp.f32 %v779_v50 }
 0x138   :  { %v6353_v59 = vpop.eup %6352  ;;  %v782_v11 = vadd.f32 1.0, %v6351_v2  ;;  %6372 = vrcp.f32 %v780_v8 }
 0x139   :  { %v6355_v1 = vpop.eup %6354  ;;  %v783_v3 = vadd.f32 1.0, %v6353_v59  ;;  %6374 = vrcp.f32 %v781_v63 }
 0x13a   :  { %v6357_v56 = vpop.eup %6356  ;;  %v784_v12 = vadd.f32 1.0, %v6355_v1  ;;  %6376 = vrcp.f32 %v782_v11 }
 0x13b   :  { %v6359_v0 = vpop.eup %6358  ;;  %6378 = vrcp.f32 %v783_v3 }
 0x13c   :  { %v6361_v33 = vpop.eup %6360  ;;  %v785_v21 = vadd.f32 1.0, %v6359_v0  ;;  %6380 = vrcp.f32 %v784_v12 }
 0x13d   :  { %v6363_v20 = vpop.eup %6362  ;;  %6382 = vtanh.f32 %v7767_v46 }
 0x13e   :  { %v6365_v29 = vpop.eup %6364  ;;  %6384 = vrcp.f32 %v785_v21 }
 0x13f   :  { %v6367_v34 = vpop.eup %6366  ;;  %v786_v6 = vadd.f32 1.0, %v6365_v29  ;;  %6386 = vtanh.f32 %v7769_v13 }
 0x140   :  { %v6369_v10 = vpop.eup %6368  ;;  %v810_v45 = vmul.f32 0.0, %v6367_v34  ;;  %6388 = vtanh.f32 %v7771_v42 }
 0x141   :  { %v6371_v27 = vpop.eup %6370  ;;  %6390 = vrcp.f32 %v786_v6 }
 0x142   :  { %v6373_v18 = vpop.eup %6372  ;;  %v7777_v36 = vadd.f32 %v818_v37, %v810_v45  ;;  %v835_v49 = vmul.f32 %v6371_v27, %v6357_v56 }
 0x143   :  { %v6375_v53 = vpop.eup %6374  ;;  %v836_v47 = vmul.f32 %v6373_v18, %v6361_v33 }
 0x144   :  { %v6377_v16 = vpop.eup %6376  ;;  %6392 = vtanh.f32 %v7777_v36  ;;  %v837_v57 = vmul.f32 %v6375_v53, %v6363_v20  ;;  %843 = vst [vmem:[#allocation2] sm:$0x1] %v835_v49  ;;  %v851_v60 = vpack.c.bf16 %v835_v49, %v835_v49 }
 0x145   :  { %v6379_v7 = vpop.eup %6378  ;;  %v838_v50 = vmul.f32 %v6377_v16, %v6369_v10  ;;  %844 = vst [vmem:[#allocation2 + $0x8] sm:$0x1] %v836_v47  ;;  %v852_v8 = vpack.c.bf16 %v836_v47, %v836_v47 }
 0x146   :  { %v6381_v2 = vpop.eup %6380  ;;  %845 = vst [vmem:[#allocation2 + $0x10] sm:$0x1] %v837_v57  ;;  %v853_v63 = vpack.c.bf16 %v837_v57, %v837_v57  ;;  %v899_v0 = vunpack.c.l.b16 %v851_v60 }
 0x147   :  { %v6383_v59 = vpop.eup %6382  ;;  %846 = vst [vmem:[#allocation2 + $0x18] sm:$0x1] %v838_v50  ;;  %v854_v37 = vpack.c.bf16 %v838_v50, %v838_v50  ;;  %v900_v11 = vunpack.c.l.b16 %v852_v8 }
 0x148   :  { %v6385_v1 = vpop.eup %6384  ;;  %v839_v3 = vmul.f32 %v6383_v59, %v6379_v7  ;;  %v901_v56 = vunpack.c.l.b16 %v853_v63 }
 0x149   :  { %v6387_v12 = vpop.eup %6386  ;;  %v902_v33 = vunpack.c.l.b16 %v854_v37  ;;  %v907_v21 = vrot.slane %v900_v11, 7 }
 0x14a   :  { %v6389_v20 = vpop.eup %6388  ;;  %v840_v29 = vmul.f32 %v6387_v12, %v6381_v2  ;;  %847 = vst [vmem:[#allocation2 + $0x20] sm:$0x1] %v839_v3  ;;  %v855_v34 = vpack.c.bf16 %v839_v3, %v839_v3  ;;  %v910_v6 = vrot.slane %v901_v56, 6 }
 0x14b   :  { %v841_v10 = vmul.f32 %v6389_v20, %v6385_v1  ;;  %v909_v45 = vsel %vm908_vm1, %v907_v21, %v899_v0  ;;  %v913_v27 = vrot.slane %v902_v33, 5  ;;  %v6391_v18 = vpop.eup %6390  ;;  %v9532_v21 = vmov 0   ;;  %v7792_v20 = vld [vmem:[%s9375_s2] ss:$16 sps:$4 sm:$0xff]  }
 0x14c   :  { %848 = vst [vmem:[#allocation2 + $0x28] sm:$0x1] %v840_v29  ;;  %v856_v49 = vpack.c.bf16 %v840_v29, %v840_v29  ;;  %v903_v53 = vunpack.c.l.b16 %v855_v34  ;;  %v912_v47 = vsel %vm911_vm2, %v910_v6, %v909_v45  ;;  %v6116_v29 = vld [vmem:[%s9375_s2 + $0x4] ss:$16 sps:$4 sm:$0xff]   ;;  %v7800_v34 = vld [vmem:[%s9375_s2 + $0x8] ss:$16 sps:$4 sm:$0xff]  }
 0x14d   :  { %849 = vst [vmem:[#allocation2 + $0x30] sm:$0x1] %v841_v10  ;;  %v857_v16 = vpack.c.bf16 %v841_v10, %v841_v10  ;;  %v915_v57 = vsel %vm914_vm3, %v913_v27, %v912_v47  ;;  %v6119_v6 = vld [vmem:[%s9375_s2 + $0xc] ss:$16 sps:$4 sm:$0xff]   ;;  %v7808_v10 = vld [vmem:[%s9375_s2 + $0x24] ss:$16 sps:$4 sm:$0xff]   ;;  %1724 = vmatprep.subr.bf16.mxu0 %v6116_v29 }
 0x14e   :  { %v6393_v7 = vpop.eup %6392  ;;  %v904_v50 = vunpack.c.l.b16 %v856_v49  ;;  %v916_v60 = vrot.slane %v903_v53, 4  ;;  %v7813_v45 = vld [vmem:[%s9375_s2 + $0x2c] ss:$16 sps:$4 sm:$0xff]   ;;  %1765 = vmatprep.subr.bf16.mxu1 %v6119_v6  ;;  %v7819_v27 = vld [vmem:[%s9375_s2 + $0x20] ss:$16 sps:$4 sm:$0xff]  }
 0x14f   :  { %v842_v8 = vmul.f32 %v6393_v7, %v6391_v18  ;;  %v905_v2 = vunpack.c.l.b16 %v857_v16  ;;  %9533 = vst [vmem:[#allocation25_spill] sm:$0xff] %v7819_v27  ;;  %v7826_v18 = vld [vmem:[%s9375_s2 + $0x28] ss:$16 sps:$4 sm:$0xff]   ;;  %v7831_v49 = vld [vmem:[%s9375_s2 + $0x44] ss:$16 sps:$4 sm:$0xff]  }
 0x150   :  { %v918_v63 = vsel %vm917_vm4, %v916_v60, %v915_v57  ;;  %v919_v59 = vrot.slane %v904_v50, 3  ;;  %9534 = vst [vmem:[#allocation26_spill] sm:$0xff] %v7826_v18  ;;  %9535 = vst [vmem:[#allocation27_spill] sm:$0xff] %v7831_v49  ;;  %v7837_v53 = vld [vmem:[%s9375_s2 + $0x4c] ss:$16 sps:$4 sm:$0xff]  }
 0x151   :  { %850 = vst [vmem:[#allocation2 + $0x38] sm:$0x1] %v842_v8  ;;  %v858_v37 = vpack.c.bf16 %v842_v8, %v842_v8  ;;  %v922_v11 = vrot.slane %v905_v2, 2  ;;  %9536 = vst [vmem:[#allocation28_spill] sm:$0xff] %v7837_v53  ;;  %v7843_v47 = vld [vmem:[%s9375_s2 + $0x40] ss:$16 sps:$4 sm:$0xff]  }
 0x152   :  { %v921_v1 = vsel %vm920_vm5, %v919_v59, %v918_v63  ;;  %9537 = vst [vmem:[#allocation29_spill] sm:$0xff] %v7843_v47  ;;  %v7850_v16 = vld [vmem:[%s9375_s2 + $0x48] ss:$16 sps:$4 sm:$0xff]   ;;  %v7855_v57 = vld [vmem:[%s9375_s2 + $0x64] ss:$16 sps:$4 sm:$0xff]  }
 0x153   :  { %v906_v3 = vunpack.c.l.b16 %v858_v37  ;;  %v924_v56 = vsel %vm923_vm6, %v922_v11, %v921_v1  ;;  %9538 = vst [vmem:[#allocation30_spill] sm:$0xff] %v7850_v16  ;;  %9539 = vst [vmem:[#allocation31_spill] sm:$0xff] %v7855_v57  ;;  %v7861_v7 = vld [vmem:[%s9375_s2 + $0x6c] ss:$16 sps:$4 sm:$0xff]   ;;  %v7867_v50 = vld [vmem:[%s9375_s2 + $0x60] ss:$16 sps:$4 sm:$0xff]  }
 0x154   :  { %9540 = vst [vmem:[#allocation32_spill] sm:$0xff] %v7861_v7  ;;  %9541 = vst [vmem:[#allocation33_spill] sm:$0xff] %v7867_v50  ;;  %v7874_v60 = vld [vmem:[%s9375_s2 + $0x68] ss:$16 sps:$4 sm:$0xff]   ;;  %v7879_v8 = vld [vmem:[%s9375_s2 + $0x84] ss:$16 sps:$4 sm:$0xff]  }
 0x155   :  { %v925_v12 = vrot.slane %v906_v3, 1  ;;  %9542 = vst [vmem:[#allocation34_spill] sm:$0xff] %v7874_v60  ;;  %9543 = vst [vmem:[#allocation35_spill] sm:$0xff] %v7879_v8  ;;  %v7885_v2 = vld [vmem:[%s9375_s2 + $0x8c] ss:$16 sps:$4 sm:$0xff]  }
 0x156   :  { %9544 = vst [vmem:[#allocation36_spill] sm:$0xff] %v7885_v2  ;;  %v7891_v63 = vld [vmem:[%s9375_s2 + $0x80] ss:$16 sps:$4 sm:$0xff]   ;;  %v7898_v59 = vld [vmem:[%s9375_s2 + $0x88] ss:$16 sps:$4 sm:$0xff]  }
 0x157   :  { %v927_v0 = vsel %vm926_vm7, %v925_v12, %v924_v56  ;;  %9545 = vst [vmem:[#allocation37_spill] sm:$0xff] %v7891_v63  ;;  %9546 = vst [vmem:[#allocation38_spill] sm:$0xff] %v7898_v59  ;;  %v7903_v37 = vld [vmem:[%s9375_s2 + $0xa4] ss:$16 sps:$4 sm:$0xff]   ;;  %v7909_v11 = vld [vmem:[%s9375_s2 + $0xac] ss:$16 sps:$4 sm:$0xff]  }
 0x158   :  { %v928_v33 = vpack.c.b16 %v927_v0, %v927_v0  ;;  %9547 = vst [vmem:[#allocation39_spill] sm:$0xff] %v7903_v37  ;;  %9548 = vst [vmem:[#allocation40_spill] sm:$0xff] %v7909_v11  ;;  %v7915_v1 = vld [vmem:[%s9375_s2 + $0xa0] ss:$16 sps:$4 sm:$0xff]   ;;  %v7922_v3 = vld [vmem:[%s9375_s2 + $0xa8] ss:$16 sps:$4 sm:$0xff]  }
 0x159   :  { %9549 = vst [vmem:[#allocation41_spill] sm:$0xff] %v7915_v1  ;;  %9550 = vst [vmem:[#allocation42_spill] sm:$0xff] %v7922_v3  ;;  %v7927_v56 = vld [vmem:[%s9375_s2 + $0xc4] ss:$16 sps:$4 sm:$0xff]   ;;  %v7933_v12 = vld [vmem:[%s9375_s2 + $0xcc] ss:$16 sps:$4 sm:$0xff]  }
 0x15a   :  { %1123 = vmatmul.mubr.bf16.vlgmr.msra.gmra.mrb[4].mxu0 %v928_v33  ;;  %1164 = vmatmul.mubr.bf16.vlgmr.msra.gmra.mrb[36].mxu1 %v928_v33  ;;  %9551 = vst [vmem:[#allocation43_spill] sm:$0xff] %v7927_v56  ;;  %9552 = vst [vmem:[#allocation44_spill] sm:$0xff] %v7933_v12  ;;  %v7939_v0 = vld [vmem:[%s9375_s2 + $0xc0] ss:$16 sps:$4 sm:$0xff]   ;;  %v7946_v33 = vld [vmem:[%s9375_s2 + $0xc8] ss:$16 sps:$4 sm:$0xff]  }
 0x15b   :  { %1756 = vmatprep.mubr.bf16.mxu0 %v9532_v21  ;;  %1797 = vmatprep.mubr.bf16.mxu1 %v9532_v21  ;;  %9553 = vst [vmem:[#allocation45_spill] sm:$0xff] %v7939_v0  ;;  %9554 = vst [vmem:[#allocation46_spill] sm:$0xff] %v7946_v33 }
 0x15c   :  { %1725 = vmatpush1.bf16.msra.mxu0 %v7792_v20  ;;  %1766 = vmatpush1.bf16.msra.mxu1 %v7800_v34 }
 0x15d   :  { %1726 = vmatprep.subr.bf16.mxu0 %v7808_v10  ;;  %1767 = vmatprep.subr.bf16.mxu1 %v7813_v45 }
 0x160   :  { %1727 = vmatpush1.bf16.msra.mxu0 %v7819_v27  ;;  %1768 = vmatpush1.bf16.msra.mxu1 %v7826_v18 }
 0x161   :  { %1728 = vmatprep.subr.bf16.mxu0 %v7831_v49  ;;  %1769 = vmatprep.subr.bf16.mxu1 %v7837_v53 }
 0x164   :  { %1729 = vmatpush1.bf16.msra.mxu0 %v7843_v47  ;;  %1770 = vmatpush1.bf16.msra.mxu1 %v7850_v16 }
 0x165   :  { %1730 = vmatprep.subr.bf16.mxu0 %v7855_v57  ;;  %1771 = vmatprep.subr.bf16.mxu1 %v7861_v7 }
 0x168   :  { %1731 = vmatpush1.bf16.msra.mxu0 %v7867_v50  ;;  %1772 = vmatpush1.bf16.msra.mxu1 %v7874_v60 }
 0x169   :  { %1732 = vmatprep.subr.bf16.mxu0 %v7879_v8  ;;  %1773 = vmatprep.subr.bf16.mxu1 %v7885_v2 }
 0x16c   :  { %1733 = vmatpush1.bf16.msra.mxu0 %v7891_v63  ;;  %1774 = vmatpush1.bf16.msra.mxu1 %v7898_v59 }
 0x16d   :  { %1734 = vmatprep.subr.bf16.mxu0 %v7903_v37  ;;  %1775 = vmatprep.subr.bf16.mxu1 %v7909_v11  ;;  %v7951_v11 = vld [vmem:[%s9375_s2 + $0xe4] ss:$16 sps:$4 sm:$0xff]  }
 0x16e   :  { %9555 = vst [vmem:[#allocation47_spill] sm:$0xff] %v7951_v11 }
 0x170   :  { %1735 = vmatpush1.bf16.msra.mxu0 %v7915_v1  ;;  %1776 = vmatpush1.bf16.msra.mxu1 %v7922_v3  ;;  %v7957_v1 = vld [vmem:[%s9375_s2 + $0xec] ss:$16 sps:$4 sm:$0xff]  }
 0x171   :  { %1736 = vmatprep.subr.bf16.mxu0 %v7927_v56  ;;  %1777 = vmatprep.subr.bf16.mxu1 %v7933_v12  ;;  %9556 = vst [vmem:[#allocation48_spill] sm:$0xff] %v7957_v1  ;;  %v7963_v56 = vld [vmem:[%s9375_s2 + $0xe0] ss:$16 sps:$4 sm:$0xff]   ;;  %v7970_v12 = vld [vmem:[%s9375_s2 + $0xe8] ss:$16 sps:$4 sm:$0xff]  }
 0x172   :  { %9557 = vst [vmem:[#allocation49_spill] sm:$0xff] %v7963_v56  ;;  %9558 = vst [vmem:[#allocation50_spill] sm:$0xff] %v7970_v12 }
 0x174   :  { %1737 = vmatpush1.bf16.msra.mxu0 %v7939_v0  ;;  %1778 = vmatpush1.bf16.msra.mxu1 %v7946_v33 }
 0x175   :  { %1738 = vmatprep.subr.bf16.mxu0 %v7951_v11  ;;  %1779 = vmatprep.subr.bf16.mxu1 %v7957_v1 }
 0x178   :  { %1739 = vmatpush1.bf16.msra.mxu0 %v7963_v56  ;;  %1780 = vmatpush1.bf16.msra.mxu1 %v7970_v12 }
 0x179   :  { %2358 = vmatprep.subr.bf16.mxu0 %v6116_v29  ;;  %2399 = vmatprep.subr.bf16.mxu1 %v6119_v6 }
 0x22d   :  { %v1124_v0 = vpop.f32.mrb[4].mxu0  ;;  %v7975_v3 = vpop.f32.mrb[36].mxu1 }
 0x22e   :  { %v1176_v37 = vrot.slane %v1124_v0, 7  ;;  %v1180_v33 = vrot.slane %v1124_v0, 1  ;;  %v1184_v59 = vrot.slane %v1124_v0, 2  ;;  %v1188_v11 = vrot.slane %v1124_v0, 3  ;;  %v7977_v63 = vpop.f32.mrb[5].mxu0  ;;  %v7979_v2 = vpop.f32.mrb[37].mxu1 }
 0x22f   :  { %v1192_v8 = vrot.slane %v1124_v0, 4  ;;  %v1196_v60 = vrot.slane %v1124_v0, 5  ;;  %v1200_v1 = vrot.slane %v1124_v0, 6  ;;  %v1240_v56 = vadd.f32 %v1124_v0, %v7540_v9  ;;  %v1128_v50 = vpop.f32.mrb[6].mxu0  ;;  %v1169_v12 = vpop.f32.mrb[38].mxu1 }
 0x230   :  { %v1236_v29 = vadd.f32 %v1176_v37, %v7534_v5  ;;  %v1244_v6 = vadd.f32 %v1180_v33, %v7549_v14  ;;  %v1248_v7 = vadd.f32 %v1184_v59, %v7555_v17  ;;  %v1252_v57 = vadd.f32 %v1188_v11, %v7559_v19  ;;  %v1129_v16 = vpop.f32.mrb[7].mxu0  ;;  %v1170_v47 = vpop.f32.mrb[39].mxu1 }
 0x231   :  { %v1256_v53 = vadd.f32 %v1192_v8, %v7572_v26  ;;  %v1260_v49 = vadd.f32 %v1196_v60, %v7564_v22  ;;  %v5645_v18 = vmul.f32 -1.442695, %v1240_v56  ;;  %v1264_v27 = vadd.f32 %v1200_v1, %v7628_v23 }
 0x232   :  { %v5644_v0 = vmul.f32 -1.442695, %v1236_v29  ;;  %v5646_v50 = vmul.f32 -1.442695, %v1244_v6  ;;  %v5647_v12 = vmul.f32 -1.442695, %v1248_v7 }
 0x233   :  { %6394 = vpow2.f32 %v5645_v18  ;;  %v5648_v37 = vmul.f32 -1.442695, %v1252_v57  ;;  %v5649_v33 = vmul.f32 -1.442695, %v1256_v53  ;;  %v1178_v59 = vrot.slane %v7975_v3, 7 }
 0x234   :  { %6396 = vpow2.f32 %v5644_v0  ;;  %v5650_v11 = vmul.f32 -1.442695, %v1260_v49  ;;  %v1182_v47 = vrot.slane %v7975_v3, 1  ;;  %v5651_v16 = vmul.f32 -1.442695, %v1264_v27 }
 0x235   :  { %6398 = vpow2.f32 %v5646_v50  ;;  %v1186_v60 = vrot.slane %v7975_v3, 2  ;;  %v1190_v8 = vrot.slane %v7975_v3, 3  ;;  %v1238_v1 = vadd.f32 %v1178_v59, %v7656_v28 }
 0x236   :  { %6400 = vpow2.f32 %v5647_v12  ;;  %v1242_v18 = vadd.f32 %v7975_v3, %v7663_v38  ;;  %v1246_v53 = vadd.f32 %v1182_v47, %v7670_v61  ;;  %v1194_v27 = vrot.slane %v7975_v3, 4 }
 0x237   :  { %6402 = vpow2.f32 %v5648_v37  ;;  %v1250_v49 = vadd.f32 %v1186_v60, %v7679_v39  ;;  %v1254_v57 = vadd.f32 %v1190_v8, %v7688_v62  ;;  %v1198_v56 = vrot.slane %v7975_v3, 5 }
 0x238   :  { %6404 = vpow2.f32 %v5649_v33  ;;  %v1177_v12 = vrot.slane %v7977_v63, 7  ;;  %v1202_v59 = vrot.slane %v7975_v3, 6  ;;  %v1181_v8 = vrot.slane %v7977_v63, 1 }
 0x239   :  { %6406 = vpow2.f32 %v5650_v11  ;;  %v1258_v11 = vadd.f32 %v1194_v27, %v7701_v15  ;;  %v1262_v60 = vadd.f32 %v1198_v56, %v7703_v32  ;;  %v1193_v3 = vrot.slane %v7977_v63, 4 }
 0x23a   :  { %6408 = vpow2.f32 %v5651_v16  ;;  %v1237_v27 = vadd.f32 %v1177_v12, %v7569_v25  ;;  %v1197_v56 = vrot.slane %v7977_v63, 5 }
 0x23b   :  { %6410 = vtanh.f32 %v1238_v1 }
 0x23c   :  { %6412 = vtanh.f32 %v1242_v18  ;;  %v5652_v25 = vmul.f32 -1.442695, %v1237_v27 }
 0x23d   :  { %v6395_v7 = vpop.eup %6394  ;;  %6414 = vtanh.f32 %v1246_v53  ;;  %v1185_v53 = vrot.slane %v7977_v63, 2 }
 0x23e   :  { %v6397_v29 = vpop.eup %6396  ;;  %v1293_v6 = vadd.f32 1.0, %v6395_v7  ;;  %6416 = vtanh.f32 %v1250_v49  ;;  %v1189_v49 = vrot.slane %v7977_v63, 3 }
 0x23f   :  { %v6399_v0 = vpop.eup %6398  ;;  %v1292_v50 = vadd.f32 1.0, %v6397_v29  ;;  %6418 = vtanh.f32 %v1254_v57  ;;  %v1249_v12 = vadd.f32 %v1185_v53, %v7587_v35  ;;  %v1183_v53 = vrot.slane %v7979_v2, 1 }
 0x240   :  { %v6401_v37 = vpop.eup %6400  ;;  %v1294_v33 = vadd.f32 1.0, %v6399_v0  ;;  %6420 = vrcp.f32 %v1293_v6  ;;  %v1241_v0 = vadd.f32 %v7977_v63, %v7578_v30  ;;  %v1179_v30 = vrot.slane %v7979_v2, 7 }
 0x241   :  { %v6403_v47 = vpop.eup %6402  ;;  %v1295_v16 = vadd.f32 1.0, %v6401_v37  ;;  %6422 = vrcp.f32 %v1292_v50 }
 0x242   :  { %v6405_v1 = vpop.eup %6404  ;;  %v1296_v18 = vadd.f32 1.0, %v6403_v47  ;;  %6424 = vrcp.f32 %v1294_v33  ;;  %v1201_v33 = vrot.slane %v7977_v63, 6  ;;  %v1245_v47 = vadd.f32 %v1181_v8, %v7581_v31 }
 0x243   :  { %v6407_v57 = vpop.eup %6406  ;;  %v1297_v7 = vadd.f32 1.0, %v6405_v1  ;;  %6426 = vrcp.f32 %v1295_v16  ;;  %v1266_v1 = vadd.f32 %v1202_v59, %v7708_v4  ;;  %v1261_v63 = vadd.f32 %v1197_v56, %v7609_v52  ;;  %v9559_v56 = vld [vmem:[#allocation12_spill] sm:$0xff] }
 0x244   :  { %v6409_v29 = vpop.eup %6408  ;;  %v1298_v6 = vadd.f32 1.0, %v6407_v57  ;;  %6428 = vrcp.f32 %v1296_v18  ;;  %v1253_v18 = vadd.f32 %v1189_v49, %v7594_v40  ;;  %v5653_v8 = vmul.f32 -1.442695, %v1241_v0 }
 0x245   :  { %v6411_v50 = vpop.eup %6410  ;;  %v1299_v37 = vadd.f32 1.0, %v6409_v29  ;;  %6430 = vrcp.f32 %v1297_v7  ;;  %v1257_v7 = vadd.f32 %v1193_v3, %v7604_v48  ;;  %v1265_v59 = vadd.f32 %v1201_v33, %v7644_v58 }
 0x246   :  { %v6413_v16 = vpop.eup %6412  ;;  %6432 = vrcp.f32 %v1298_v6  ;;  %v5654_v6 = vmul.f32 -1.442695, %v1245_v47  ;;  %v5656_v27 = vmul.f32 -1.442695, %v1253_v18  ;;  %v1187_v40 = vrot.slane %v7979_v2, 2  ;;  %v9560_v47 = vld [vmem:[#allocation14_spill] sm:$0xff] }
 0x247   :  { %v6415_v57 = vpop.eup %6414  ;;  %6434 = vrcp.f32 %v1299_v37  ;;  %v5655_v37 = vmul.f32 -1.442695, %v1249_v12  ;;  %v1191_v3 = vrot.slane %v7979_v2, 3  ;;  %v1239_v0 = vadd.f32 %v1179_v30, %v9559_v56 }
 0x248   :  { %v6417_v32 = vpop.eup %6416  ;;  %6436 = vtanh.f32 %v1258_v11  ;;  %v5657_v33 = vmul.f32 -1.442695, %v1257_v7  ;;  %v5658_v58 = vmul.f32 -1.442695, %v1261_v63  ;;  %v5659_v30 = vmul.f32 -1.442695, %v1265_v59 }
 0x249   :  { %v6419_v29 = vpop.eup %6418  ;;  %6438 = vtanh.f32 %v1262_v60  ;;  %v1255_v7 = vadd.f32 %v1191_v3, %v7698_v55 }
 0x24a   :  { %v6421_v49 = vpop.eup %6420  ;;  %6440 = vtanh.f32 %v1266_v1  ;;  %v1243_v1 = vadd.f32 %v7979_v2, %v9560_v47  ;;  %v5660_v47 = vmul.f32 -1.442695, %v1239_v0 }
 0x24b   :  { %v6423_v35 = vpop.eup %6422  ;;  %v8024_v11 = vmul.f32 %v6421_v49, %v6413_v16  ;;  %6442 = vpow2.f32 %v5652_v25  ;;  %v9561_v16 = vld [vmem:[#allocation16_spill] sm:$0xff] }
 0x24c   :  { %v6425_v60 = vpop.eup %6424  ;;  %v8028_v52 = vmul.f32 %v6423_v35, %v6411_v50  ;;  %6444 = vpow2.f32 %v5653_v8  ;;  %v1247_v49 = vadd.f32 %v1183_v53, %v9561_v16  ;;  %v1251_v35 = vadd.f32 %v1187_v40, %v7685_v44 }
 0x24d   :  { %v6427_v12 = vpop.eup %6426  ;;  %v8032_v18 = vmul.f32 %v6425_v60, %v6415_v57  ;;  %6446 = vpow2.f32 %v5654_v6  ;;  %v5661_v6 = vmul.f32 -1.442695, %v1243_v1  ;;  %v5664_v40 = vmul.f32 -1.442695, %v1255_v7 }
 0x24e   :  { %v6429_v25 = vpop.eup %6428  ;;  %v8035_v48 = vmul.f32 %v6427_v12, %v6417_v32  ;;  %6448 = vpow2.f32 %v5655_v37  ;;  %v5662_v53 = vmul.f32 -1.442695, %v1247_v49  ;;  %v5663_v32 = vmul.f32 -1.442695, %v1251_v35 }
 0x24f   :  { %v6431_v50 = vpop.eup %6430  ;;  %v8038_v8 = vmul.f32 %v6429_v25, %v6419_v29  ;;  %6450 = vpow2.f32 %v5656_v27  ;;  %v1195_v27 = vrot.slane %v7979_v2, 4  ;;  %v1203_v49 = vrot.slane %v7979_v2, 6 }
 0x250   :  { %v6433_v57 = vpop.eup %6432  ;;  %6452 = vpow2.f32 %v5657_v33  ;;  %v1199_v33 = vrot.slane %v7979_v2, 5 }
 0x251   :  { %v6435_v63 = vpop.eup %6434  ;;  %6454 = vpow2.f32 %v5658_v58 }
 0x252   :  { %v6437_v60 = vpop.eup %6436  ;;  %6456 = vpow2.f32 %v5659_v30 }
 0x253   :  { %v6439_v37 = vpop.eup %6438  ;;  %v8041_v59 = vmul.f32 %v6437_v60, %v6431_v50  ;;  %6458 = vpow2.f32 %v5660_v47  ;;  %v9562_v50 = vld [vmem:[#allocation22_spill] sm:$0xff]  ;;  %v9563_v60 = vld [vmem:[#allocation23_spill] sm:$0xff] }
 0x254   :  { %v6441_v29 = vpop.eup %6440  ;;  %6460 = vpow2.f32 %v5661_v6  ;;  %v8044_v3 = vmul.f32 %v6439_v37, %v6433_v57  ;;  %v1259_v7 = vadd.f32 %v1195_v27, %v9562_v50 }
 0x255   :  { %v6443_v0 = vpop.eup %6442  ;;  %6462 = vpow2.f32 %v5662_v53  ;;  %v8047_v58 = vmul.f32 %v6441_v29, %v6435_v63  ;;  %v1263_v53 = vadd.f32 %v1199_v33, %v9563_v60  ;;  %v1267_v29 = vadd.f32 %v1203_v49, %v7746_v51 }
 0x256   :  { %v6445_v1 = vpop.eup %6444  ;;  %v1340_v12 = vadd.f32 1.0, %v6443_v0  ;;  %6464 = vpow2.f32 %v5663_v32 }
 0x257   :  { %v6447_v25 = vpop.eup %6446  ;;  %v1341_v47 = vadd.f32 1.0, %v6445_v1  ;;  %6466 = vpow2.f32 %v5664_v40  ;;  %v5665_v1 = vmul.f32 -1.442695, %v1259_v7  ;;  %v5666_v27 = vmul.f32 -1.442695, %v1263_v53 }
 0x258   :  { %v6449_v30 = vpop.eup %6448  ;;  %v1342_v35 = vadd.f32 1.0, %v6447_v25  ;;  %6468 = vrcp.f32 %v1340_v12  ;;  %v1429_v7 = vrot.slane %v7755_v41, 7 }
 0x259   :  { %v6451_v57 = vpop.eup %6450  ;;  %v1343_v6 = vadd.f32 1.0, %v6449_v30  ;;  %6470 = vrcp.f32 %v1341_v47  ;;  %v5667_v47 = vmul.f32 -1.442695, %v1267_v29 }
 0x25a   :  { %v6453_v63 = vpop.eup %6452  ;;  %v1344_v37 = vadd.f32 1.0, %v6451_v57  ;;  %6472 = vrcp.f32 %v1342_v35 }
 0x25b   :  { %v6455_v2 = vpop.eup %6454  ;;  %v1345_v32 = vadd.f32 1.0, %v6453_v63  ;;  %6474 = vrcp.f32 %v1343_v6  ;;  %v1428_v6 = vrot.slane %v7751_v24, 7  ;;  %v1432_v24 = vrot.slane %v7767_v46, 7 }
 0x25c   :  { %v6457_v0 = vpop.eup %6456  ;;  %v1346_v40 = vadd.f32 1.0, %v6455_v2  ;;  %6476 = vrcp.f32 %v1344_v37 }
 0x25d   :  { %v6459_v12 = vpop.eup %6458  ;;  %v1347_v25 = vadd.f32 1.0, %v6457_v0  ;;  %6478 = vrcp.f32 %v1345_v32  ;;  %v1430_v32 = vrot.slane %v7759_v54, 7 }
 0x25e   :  { %v6461_v30 = vpop.eup %6460  ;;  %6480 = vrcp.f32 %v1346_v40  ;;  %v1396_v57 = vadd.f32 1.0, %v6459_v12 }
 0x25f   :  { %v6463_v33 = vpop.eup %6462  ;;  %6482 = vrcp.f32 %v1347_v25  ;;  %v1397_v49 = vadd.f32 1.0, %v6461_v30 }
 0x260   :  { %v6465_v35 = vpop.eup %6464  ;;  %6484 = vpow2.f32 %v5665_v1  ;;  %v1398_v63 = vadd.f32 1.0, %v6463_v33  ;;  %v1431_v1 = vrot.slane %v7762_v43, 7  ;;  %v1434_v43 = vrot.slane %v7771_v42, 7 }
 0x261   :  { %v6467_v51 = vpop.eup %6466  ;;  %6486 = vpow2.f32 %v5666_v27  ;;  %v1399_v2 = vadd.f32 1.0, %v6465_v35 }
 0x262   :  { %v6469_v37 = vpop.eup %6468  ;;  %6488 = vpow2.f32 %v5667_v47  ;;  %v1400_v0 = vadd.f32 1.0, %v6467_v51  ;;  %v1433_v47 = vrot.slane %v7769_v13, 7 }
 0x263   :  { %v6471_v53 = vpop.eup %6470  ;;  %v1444_v29 = vmul.f32 %v6469_v37, %v1428_v6  ;;  %6490 = vrcp.f32 %v1396_v57 }
 0x264   :  { %v6473_v40 = vpop.eup %6472  ;;  %v1445_v12 = vmul.f32 %v6471_v53, %v1429_v7  ;;  %6492 = vrcp.f32 %v1397_v49 }
 0x265   :  { %v6475_v25 = vpop.eup %6474  ;;  %v1446_v27 = vmul.f32 %v6473_v40, %v1430_v32  ;;  %v8059_v30 = vadd.f32 %v8028_v52, %v1444_v29  ;;  %6494 = vrcp.f32 %v1398_v63  ;;  %v1435_v52 = vrot.slane %v7777_v36, 7 }
 0x266   :  { %v6477_v41 = vpop.eup %6476  ;;  %v1447_v54 = vmul.f32 %v6475_v25, %v1431_v1  ;;  %v8063_v51 = vadd.f32 %v8024_v11, %v1445_v12  ;;  %6496 = vrcp.f32 %v1399_v2 }
 0x267   :  { %v6479_v33 = vpop.eup %6478  ;;  %v8067_v57 = vadd.f32 %v8032_v18, %v1446_v27  ;;  %6498 = vrcp.f32 %v1400_v0  ;;  %v1448_v46 = vmul.f32 %v6477_v41, %v1432_v24 }
 0x268   :  { %v6481_v35 = vpop.eup %6480  ;;  %6500 = vtanh.f32 %v8063_v51  ;;  %v1449_v49 = vmul.f32 %v6479_v33, %v1433_v47  ;;  %v8072_v13 = vadd.f32 %v8035_v48, %v1447_v54 }
 0x269   :  { %v6483_v11 = vpop.eup %6482  ;;  %v1450_v6 = vmul.f32 %v6481_v35, %v1434_v43  ;;  %v8075_v63 = vadd.f32 %v8038_v8, %v1448_v46  ;;  %6502 = vtanh.f32 %v8059_v30 }
 0x26a   :  { %v6485_v42 = vpop.eup %6484  ;;  %v1451_v18 = vmul.f32 %v6483_v11, %v1435_v52  ;;  %v8079_v37 = vadd.f32 %v8041_v59, %v1449_v49  ;;  %6504 = vtanh.f32 %v8067_v57 }
 0x26b   :  { %v6487_v36 = vpop.eup %6486  ;;  %v1401_v7 = vadd.f32 1.0, %v6485_v42  ;;  %v8083_v2 = vadd.f32 %v8044_v3, %v1450_v6  ;;  %6506 = vtanh.f32 %v8072_v13 }
 0x26c   :  { %v6489_v48 = vpop.eup %6488  ;;  %v1402_v53 = vadd.f32 1.0, %v6487_v36  ;;  %v8087_v8 = vadd.f32 %v8047_v58, %v1451_v18  ;;  %6508 = vtanh.f32 %v8075_v63 }
 0x26d   :  { %v6491_v32 = vpop.eup %6490  ;;  %v1403_v29 = vadd.f32 1.0, %v6489_v48  ;;  %6510 = vrcp.f32 %v1401_v7 }
 0x26e   :  { %v6493_v59 = vpop.eup %6492  ;;  %6512 = vrcp.f32 %v1402_v53 }
 0x26f   :  { %v6495_v0 = vpop.eup %6494  ;;  %6514 = vrcp.f32 %v1403_v29 }
 0x270   :  { %v6497_v40 = vpop.eup %6496  ;;  %6516 = vtanh.f32 %v8079_v37 }
 0x271   :  { %v6499_v3 = vpop.eup %6498  ;;  %6518 = vtanh.f32 %v8083_v2 }
 0x272   :  { %v6501_v1 = vpop.eup %6500  ;;  %6520 = vtanh.f32 %v8087_v8 }
 0x273   :  { %v6503_v58 = vpop.eup %6502  ;;  %v1477_v12 = vmul.f32 %v6501_v1, %v6493_v59 }
 0x274   :  { %v6505_v25 = vpop.eup %6504  ;;  %v1476_v24 = vmul.f32 %v6503_v58, %v6491_v32 }
 0x275   :  { %v6507_v27 = vpop.eup %6506  ;;  %v1478_v41 = vmul.f32 %v6505_v25, %v6495_v0  ;;  %1485 = vst [vmem:[#allocation2 + $0x8] sm:$0x2] %v1477_v12  ;;  %v1493_v43 = vpack.c.bf16 %v1477_v12, %v1477_v12 }
 0x276   :  { %v6509_v47 = vpop.eup %6508  ;;  %v1479_v54 = vmul.f32 %v6507_v27, %v6497_v40  ;;  %1484 = vst [vmem:[#allocation2] sm:$0x2] %v1476_v24  ;;  %v1492_v33 = vpack.c.bf16 %v1476_v24, %v1476_v24 }
 0x277   :  { %v6511_v46 = vpop.eup %6510  ;;  %v1480_v35 = vmul.f32 %v6509_v47, %v6499_v3  ;;  %1486 = vst [vmem:[#allocation2 + $0x10] sm:$0x2] %v1478_v41  ;;  %v1494_v52 = vpack.c.bf16 %v1478_v41, %v1478_v41  ;;  %v1541_v48 = vunpack.c.l.b16 %v1493_v43 }
 0x278   :  { %v6513_v49 = vpop.eup %6512  ;;  %1487 = vst [vmem:[#allocation2 + $0x18] sm:$0x2] %v1479_v54  ;;  %v1495_v11 = vpack.c.bf16 %v1479_v54, %v1479_v54  ;;  %v1540_v6 = vunpack.c.l.b16 %v1492_v33 }
 0x279   :  { %v6515_v42 = vpop.eup %6514  ;;  %1488 = vst [vmem:[#allocation2 + $0x20] sm:$0x2] %v1480_v35  ;;  %v1496_v18 = vpack.c.bf16 %v1480_v35, %v1480_v35  ;;  %v1542_v36 = vunpack.c.l.b16 %v1494_v52 }
 0x27a   :  { %v6517_v7 = vpop.eup %6516  ;;  %v1543_v53 = vunpack.c.l.b16 %v1495_v11  ;;  %v1548_v32 = vrot.slane %v1540_v6, 1 }
 0x27b   :  { %v6519_v29 = vpop.eup %6518  ;;  %v1481_v59 = vmul.f32 %v6517_v7, %v6511_v46  ;;  %v1544_v0 = vunpack.c.l.b16 %v1496_v18  ;;  %v1550_v40 = vrot.slane %v1542_v36, 7 }
 0x27c   :  { %v6521_v1 = vpop.eup %6520  ;;  %v1482_v3 = vmul.f32 %v6519_v29, %v6513_v49  ;;  %v1549_v58 = vsel %vm908_vm1, %v1541_v48, %v1548_v32  ;;  %v1552_v12 = vrot.slane %v1543_v53, 6  ;;  %v9564_v48 = vld [vmem:[#allocation25_spill] sm:$0xff]  ;;  %v9565_v53 = vld [vmem:[#allocation26_spill] sm:$0xff]  ;;  %v9566_v32 = vld [vmem:[#allocation27_spill] sm:$0xff] }
 0x27d   :  { %v1483_v25 = vmul.f32 %v6521_v1, %v6515_v42  ;;  %1489 = vst [vmem:[#allocation2 + $0x28] sm:$0x2] %v1481_v59  ;;  %v1497_v24 = vpack.c.bf16 %v1481_v59, %v1481_v59  ;;  %v1551_v27 = vsel %vm911_vm2, %v1550_v40, %v1549_v58  ;;  %v1554_v41 = vrot.slane %v1544_v0, 5  ;;  %v9567_v29 = vld [vmem:[#allocation28_spill] sm:$0xff]  ;;  %v9568_v59 = vld [vmem:[#allocation29_spill] sm:$0xff]  ;;  %v9573_v0 = vld [vmem:[#allocation34_spill] sm:$0xff] }
 0x27e   :  { %1490 = vst [vmem:[#allocation2 + $0x30] sm:$0x2] %v1482_v3  ;;  %v1498_v47 = vpack.c.bf16 %v1482_v3, %v1482_v3  ;;  %v1553_v54 = vsel %vm914_vm3, %v1552_v12, %v1551_v27  ;;  %v9574_v40 = vld [vmem:[#allocation35_spill] sm:$0xff]  ;;  %v9575_v1 = vld [vmem:[#allocation36_spill] sm:$0xff]  ;;  %v9576_v3 = vld [vmem:[#allocation37_spill] sm:$0xff] }
 0x27f   :  { %1491 = vst [vmem:[#allocation2 + $0x38] sm:$0x2] %v1483_v25  ;;  %v1499_v33 = vpack.c.bf16 %v1483_v25, %v1483_v25  ;;  %v1545_v43 = vunpack.c.l.b16 %v1497_v24  ;;  %v1555_v46 = vsel %vm917_vm4, %v1554_v41, %v1553_v54  ;;  %v9577_v58 = vld [vmem:[#allocation38_spill] sm:$0xff]  ;;  %v9578_v12 = vld [vmem:[#allocation39_spill] sm:$0xff]  ;;  %v9579_v25 = vld [vmem:[#allocation40_spill] sm:$0xff] }
 0x280   :  { %v1546_v35 = vunpack.c.l.b16 %v1498_v47  ;;  %v9580_v24 = vld [vmem:[#allocation41_spill] sm:$0xff]  ;;  %v9581_v27 = vld [vmem:[#allocation42_spill] sm:$0xff]  ;;  %v9582_v41 = vld [vmem:[#allocation43_spill] sm:$0xff] }
 0x281   :  { %v1547_v52 = vunpack.c.l.b16 %v1499_v33  ;;  %v1556_v49 = vrot.slane %v1545_v43, 4  ;;  %v9583_v47 = vld [vmem:[#allocation44_spill] sm:$0xff]  ;;  %v9584_v54 = vld [vmem:[#allocation45_spill] sm:$0xff]  ;;  %v9585_v33 = vld [vmem:[#allocation46_spill] sm:$0xff] }
 0x282   :  { %v1558_v11 = vrot.slane %v1546_v35, 3  ;;  %v9586_v43 = vld [vmem:[#allocation47_spill] sm:$0xff]  ;;  %v9588_v35 = vld [vmem:[#allocation49_spill] sm:$0xff] }
 0x283   :  { %v1557_v6 = vsel %vm920_vm5, %v1556_v49, %v1555_v46  ;;  %v1560_v42 = vrot.slane %v1547_v52, 2  ;;  %v9587_v46 = vld [vmem:[#allocation48_spill] sm:$0xff]  ;;  %v9589_v52 = vld [vmem:[#allocation50_spill] sm:$0xff] }
 0x284   :  { %v1559_v18 = vsel %vm923_vm6, %v1558_v11, %v1557_v6 }
 0x285   :  { %v1561_v36 = vsel %vm926_vm7, %v1560_v42, %v1559_v18 }
 0x286   :  { %v1562_v7 = vpack.c.b16 %v1561_v36, %v1561_v36 }
 0x288   :  { %1757 = vmatmul.mubr.bf16.vlgmr.msra.gmra.mrb[8].mxu0 %v1562_v7  ;;  %1798 = vmatmul.mubr.bf16.vlgmr.msra.gmra.mrb[40].mxu1 %v1562_v7 }
 0x289   :  { %2359 = vmatpush1.bf16.msra.mxu0 %v7792_v20  ;;  %2400 = vmatpush1.bf16.msra.mxu1 %v7800_v34  ;;  %v9569_v20 = vld [vmem:[#allocation30_spill] sm:$0xff]  ;;  %v9570_v34 = vld [vmem:[#allocation31_spill] sm:$0xff] }
 0x28a   :  { %2360 = vmatprep.subr.bf16.mxu0 %v7808_v10  ;;  %2401 = vmatprep.subr.bf16.mxu1 %v7813_v45  ;;  %v9571_v10 = vld [vmem:[#allocation32_spill] sm:$0xff]  ;;  %v9572_v45 = vld [vmem:[#allocation33_spill] sm:$0xff] }
 0x28b   :  { %2390 = vmatprep.mubr.bf16.mxu0 %v9532_v21  ;;  %2431 = vmatprep.mubr.bf16.mxu1 %v9532_v21 }
 0x28d   :  { %2361 = vmatpush1.bf16.msra.mxu0 %v9564_v48  ;;  %2402 = vmatpush1.bf16.msra.mxu1 %v9565_v53 }
 0x28e   :  { %2362 = vmatprep.subr.bf16.mxu0 %v9566_v32  ;;  %2403 = vmatprep.subr.bf16.mxu1 %v9567_v29 }
 0x291   :  { %2363 = vmatpush1.bf16.msra.mxu0 %v9568_v59  ;;  %2404 = vmatpush1.bf16.msra.mxu1 %v9569_v20 }
 0x292   :  { %2364 = vmatprep.subr.bf16.mxu0 %v9570_v34  ;;  %2405 = vmatprep.subr.bf16.mxu1 %v9571_v10 }
 0x295   :  { %2365 = vmatpush1.bf16.msra.mxu0 %v9572_v45  ;;  %2406 = vmatpush1.bf16.msra.mxu1 %v9573_v0 }
 0x296   :  { %2366 = vmatprep.subr.bf16.mxu0 %v9574_v40  ;;  %2407 = vmatprep.subr.bf16.mxu1 %v9575_v1 }
 0x299   :  { %2367 = vmatpush1.bf16.msra.mxu0 %v9576_v3  ;;  %2408 = vmatpush1.bf16.msra.mxu1 %v9577_v58 }
 0x29a   :  { %2368 = vmatprep.subr.bf16.mxu0 %v9578_v12  ;;  %2409 = vmatprep.subr.bf16.mxu1 %v9579_v25 }
 0x29d   :  { %2369 = vmatpush1.bf16.msra.mxu0 %v9580_v24  ;;  %2410 = vmatpush1.bf16.msra.mxu1 %v9581_v27 }
 0x29e   :  { %2370 = vmatprep.subr.bf16.mxu0 %v9582_v41  ;;  %2411 = vmatprep.subr.bf16.mxu1 %v9583_v47 }
 0x2a1   :  { %2371 = vmatpush1.bf16.msra.mxu0 %v9584_v54  ;;  %2412 = vmatpush1.bf16.msra.mxu1 %v9585_v33 }
 0x2a2   :  { %2372 = vmatprep.subr.bf16.mxu0 %v9586_v43  ;;  %2413 = vmatprep.subr.bf16.mxu1 %v9587_v46 }
 0x2a5   :  { %2373 = vmatpush1.bf16.msra.mxu0 %v9588_v35  ;;  %2414 = vmatpush1.bf16.msra.mxu1 %v9589_v52 }
 0x35b   :  { %v1758_v49 = vpop.f32.mrb[8].mxu0  ;;  %v8132_v11 = vpop.f32.mrb[40].mxu1 }
 0x35c   :  { %v1810_v6 = vrot.slane %v1758_v49, 6  ;;  %v1814_v42 = vrot.slane %v1758_v49, 7  ;;  %v1818_v18 = vrot.slane %v1758_v49, 1  ;;  %v1822_v36 = vrot.slane %v1758_v49, 2  ;;  %v8134_v7 = vpop.f32.mrb[9].mxu0  ;;  %v8136_v48 = vpop.f32.mrb[41].mxu1 }
 0x35d   :  { %v1826_v53 = vrot.slane %v1758_v49, 3  ;;  %v1830_v32 = vrot.slane %v1758_v49, 4  ;;  %v1834_v29 = vrot.slane %v1758_v49, 5  ;;  %v1878_v59 = vadd.f32 %v1758_v49, %v7549_v14  ;;  %v1762_v20 = vpop.f32.mrb[10].mxu0  ;;  %v1803_v34 = vpop.f32.mrb[42].mxu1 }
 0x35e   :  { %v1870_v10 = vadd.f32 %v1810_v6, %v7534_v5  ;;  %v1874_v45 = vadd.f32 %v1814_v42, %v7540_v9  ;;  %v1882_v0 = vadd.f32 %v1818_v18, %v7555_v17  ;;  %v1886_v40 = vadd.f32 %v1822_v36, %v7559_v19  ;;  %v1763_v1 = vpop.f32.mrb[11].mxu0  ;;  %v1804_v3 = vpop.f32.mrb[43].mxu1 }
 0x35f   :  { %v1890_v58 = vadd.f32 %v1826_v53, %v7572_v26  ;;  %v1894_v12 = vadd.f32 %v1830_v32, %v7564_v22  ;;  %v5702_v25 = vmul.f32 -1.442695, %v1878_v59  ;;  %v1898_v24 = vadd.f32 %v1834_v29, %v7628_v23 }
 0x360   :  { %v5700_v27 = vmul.f32 -1.442695, %v1870_v10  ;;  %v5701_v41 = vmul.f32 -1.442695, %v1874_v45  ;;  %v5703_v47 = vmul.f32 -1.442695, %v1882_v0  ;;  %v1880_v36 = vadd.f32 %v8132_v11, %v7670_v61 }
 0x361   :  { %6522 = vpow2.f32 %v5702_v25  ;;  %v5704_v54 = vmul.f32 -1.442695, %v1886_v40  ;;  %v5705_v33 = vmul.f32 -1.442695, %v1890_v58  ;;  %v1812_v43 = vrot.slane %v8132_v11, 6 }
 0x362   :  { %6524 = vpow2.f32 %v5700_v27  ;;  %v1816_v46 = vrot.slane %v8132_v11, 7  ;;  %v5706_v35 = vmul.f32 -1.442695, %v1894_v12  ;;  %v5707_v52 = vmul.f32 -1.442695, %v1898_v24 }
 0x363   :  { %6526 = vpow2.f32 %v5701_v41  ;;  %v1820_v49 = vrot.slane %v8132_v11, 1  ;;  %v1824_v6 = vrot.slane %v8132_v11, 2  ;;  %v1872_v42 = vadd.f32 %v1812_v43, %v7656_v28  ;;  %v9590_v41 = vld [vmem:[#allocation20_spill] sm:$0xff] }
 0x364   :  { %6528 = vpow2.f32 %v5703_v47  ;;  %v1876_v18 = vadd.f32 %v1816_v46, %v7663_v38  ;;  %v1828_v59 = vrot.slane %v8132_v11, 3  ;;  %v1832_v20 = vrot.slane %v8132_v11, 4 }
 0x365   :  { %6530 = vpow2.f32 %v5704_v54  ;;  %v1884_v53 = vadd.f32 %v1820_v49, %v7679_v39  ;;  %v1888_v32 = vadd.f32 %v1824_v6, %v7688_v62  ;;  %v1811_v40 = vrot.slane %v8134_v7, 6  ;;  %v9591_v49 = vld [vmem:[#allocation3_spill] sm:$0xff] }
 0x366   :  { %6532 = vpow2.f32 %v5705_v33  ;;  %v1836_v58 = vrot.slane %v8132_v11, 5  ;;  %v1815_v12 = vrot.slane %v8134_v7, 7  ;;  %v1892_v27 = vadd.f32 %v1828_v59, %v7701_v15 }
 0x367   :  { %6534 = vpow2.f32 %v5706_v35  ;;  %v1896_v47 = vadd.f32 %v1832_v20, %v9590_v41  ;;  %v1819_v43 = vrot.slane %v8134_v7, 1  ;;  %v1823_v46 = vrot.slane %v8134_v7, 2 }
 0x368   :  { %6536 = vpow2.f32 %v5707_v52  ;;  %v1827_v11 = vrot.slane %v8134_v7, 3  ;;  %v1871_v6 = vadd.f32 %v1811_v40, %v9591_v49  ;;  %v1835_v20 = vrot.slane %v8134_v7, 5 }
 0x369   :  { %6538 = vtanh.f32 %v1872_v42 }
 0x36a   :  { %6540 = vtanh.f32 %v1876_v18 }
 0x36b   :  { %v6523_v29 = vpop.eup %6522  ;;  %6542 = vtanh.f32 %v1880_v36  ;;  %v1831_v36 = vrot.slane %v8134_v7, 4 }
 0x36c   :  { %v6525_v34 = vpop.eup %6524  ;;  %v1928_v10 = vadd.f32 1.0, %v6523_v29  ;;  %6544 = vtanh.f32 %v1884_v53  ;;  %v9592_v53 = vld [vmem:[#allocation5_spill] sm:$0xff] }
 0x36d   :  { %v6527_v45 = vpop.eup %6526  ;;  %v1926_v0 = vadd.f32 1.0, %v6525_v34  ;;  %6546 = vtanh.f32 %v1888_v32  ;;  %v1875_v32 = vadd.f32 %v1815_v12, %v9592_v53  ;;  %v1879_v34 = vadd.f32 %v8134_v7, %v7581_v31  ;;  %v9597_v31 = vld [vmem:[#allocation11_spill] sm:$0xff] }
 0x36e   :  { %v6529_v1 = vpop.eup %6528  ;;  %v1927_v3 = vadd.f32 1.0, %v6527_v45  ;;  %6548 = vrcp.f32 %v1928_v10  ;;  %v1900_v45 = vadd.f32 %v1836_v58, %v7708_v4  ;;  %v1813_v12 = vrot.slane %v8136_v48, 6 }
 0x36f   :  { %v6531_v25 = vpop.eup %6530  ;;  %v1929_v24 = vadd.f32 1.0, %v6529_v1  ;;  %6550 = vrcp.f32 %v1926_v0  ;;  %v9593_v0 = vld [vmem:[#allocation7_spill] sm:$0xff]  ;;  %v9594_v1 = vld [vmem:[#allocation8_spill] sm:$0xff]  ;;  %v1817_v7 = vrot.slane %v8136_v48, 7 }
 0x370   :  { %v6533_v54 = vpop.eup %6532  ;;  %v1930_v33 = vadd.f32 1.0, %v6531_v25  ;;  %6552 = vrcp.f32 %v1927_v3  ;;  %v1883_v40 = vadd.f32 %v1819_v43, %v9593_v0  ;;  %v1887_v3 = vadd.f32 %v1823_v46, %v9594_v1 }
 0x371   :  { %v6535_v35 = vpop.eup %6534  ;;  %v1931_v52 = vadd.f32 1.0, %v6533_v54  ;;  %6554 = vrcp.f32 %v1929_v24  ;;  %v5708_v24 = vmul.f32 -1.442695, %v1871_v6  ;;  %v1899_v43 = vadd.f32 %v1835_v20, %v9597_v31  ;;  %v9598_v20 = vld [vmem:[#allocation14_spill] sm:$0xff] }
 0x372   :  { %v6537_v42 = vpop.eup %6536  ;;  %v1932_v18 = vadd.f32 1.0, %v6535_v35  ;;  %6556 = vrcp.f32 %v1930_v33  ;;  %v9595_v33 = vld [vmem:[#allocation9_spill] sm:$0xff]  ;;  %v5710_v0 = vmul.f32 -1.442695, %v1879_v34  ;;  %v5712_v6 = vmul.f32 -1.442695, %v1887_v3 }
 0x373   :  { %v6539_v29 = vpop.eup %6538  ;;  %v1933_v59 = vadd.f32 1.0, %v6537_v42  ;;  %6558 = vrcp.f32 %v1931_v52  ;;  %v1891_v35 = vadd.f32 %v1827_v11, %v9595_v33  ;;  %v5709_v52 = vmul.f32 -1.442695, %v1875_v32 }
 0x374   :  { %v6541_v10 = vpop.eup %6540  ;;  %6560 = vrcp.f32 %v1932_v18  ;;  %v9596_v18 = vld [vmem:[#allocation10_spill] sm:$0xff]  ;;  %v1821_v1 = vrot.slane %v8136_v48, 1  ;;  %v1825_v11 = vrot.slane %v8136_v48, 2  ;;  %v1873_v32 = vadd.f32 %v1813_v12, %v9559_v56 }
 0x375   :  { %v6543_v25 = vpop.eup %6542  ;;  %6562 = vrcp.f32 %v1933_v59  ;;  %v1895_v58 = vadd.f32 %v1831_v36, %v9596_v18  ;;  %v5711_v59 = vmul.f32 -1.442695, %v1883_v40  ;;  %v5713_v36 = vmul.f32 -1.442695, %v1891_v35 }
 0x376   :  { %v6545_v54 = vpop.eup %6544  ;;  %6564 = vtanh.f32 %v1892_v27  ;;  %v1877_v34 = vadd.f32 %v1817_v7, %v9598_v20  ;;  %v5715_v12 = vmul.f32 -1.442695, %v1899_v43  ;;  %v1889_v35 = vadd.f32 %v1825_v11, %v7698_v55 }
 0x377   :  { %v6547_v42 = vpop.eup %6546  ;;  %6566 = vtanh.f32 %v1896_v47  ;;  %v5714_v3 = vmul.f32 -1.442695, %v1895_v58 }
 0x378   :  { %v6549_v46 = vpop.eup %6548  ;;  %6568 = vtanh.f32 %v1900_v45 }
 0x379   :  { %v6551_v53 = vpop.eup %6550  ;;  %v8181_v27 = vmul.f32 %v6549_v46, %v6543_v25  ;;  %6570 = vpow2.f32 %v5708_v24  ;;  %v1881_v25 = vadd.f32 %v8136_v48, %v9561_v16 }
 0x37a   :  { %v6553_v47 = vpop.eup %6552  ;;  %v8185_v33 = vmul.f32 %v6551_v53, %v6539_v29  ;;  %6572 = vpow2.f32 %v5709_v52  ;;  %v1885_v53 = vadd.f32 %v1821_v1, %v7685_v44  ;;  %v5720_v1 = vmul.f32 -1.442695, %v1889_v35 }
 0x37b   :  { %v6555_v45 = vpop.eup %6554  ;;  %v8188_v40 = vmul.f32 %v6553_v47, %v6541_v10  ;;  %6574 = vpow2.f32 %v5710_v0  ;;  %v5716_v10 = vmul.f32 -1.442695, %v1873_v32  ;;  %v5717_v0 = vmul.f32 -1.442695, %v1877_v34 }
 0x37c   :  { %v6557_v24 = vpop.eup %6556  ;;  %v8192_v46 = vmul.f32 %v6555_v45, %v6545_v54  ;;  %6576 = vpow2.f32 %v5711_v59  ;;  %v5718_v47 = vmul.f32 -1.442695, %v1881_v25  ;;  %v5719_v54 = vmul.f32 -1.442695, %v1885_v53 }
 0x37d   :  { %v6559_v29 = vpop.eup %6558  ;;  %v8195_v52 = vmul.f32 %v6557_v24, %v6547_v42  ;;  %6578 = vpow2.f32 %v5712_v6  ;;  %v1829_v6 = vrot.slane %v8136_v48, 3  ;;  %v1837_v25 = vrot.slane %v8136_v48, 5 }
 0x37e   :  { %v6561_v7 = vpop.eup %6560  ;;  %6580 = vpow2.f32 %v5713_v36  ;;  %v1833_v36 = vrot.slane %v8136_v48, 4 }
 0x37f   :  { %v6563_v58 = vpop.eup %6562  ;;  %6582 = vpow2.f32 %v5714_v3 }
 0x380   :  { %v6565_v16 = vpop.eup %6564  ;;  %6584 = vpow2.f32 %v5715_v12 }
 0x381   :  { %v6567_v59 = vpop.eup %6566  ;;  %v8198_v43 = vmul.f32 %v6565_v16, %v6559_v29  ;;  %6586 = vpow2.f32 %v5716_v10  ;;  %v1893_v29 = vadd.f32 %v1829_v6, %v9562_v50 }
 0x382   :  { %v6569_v42 = vpop.eup %6568  ;;  %6588 = vpow2.f32 %v5717_v0  ;;  %v8201_v11 = vmul.f32 %v6567_v59, %v6561_v7  ;;  %v1897_v7 = vadd.f32 %v1833_v36, %v9563_v60 }
 0x383   :  { %v6571_v32 = vpop.eup %6570  ;;  %6590 = vpow2.f32 %v5718_v47  ;;  %v8204_v34 = vmul.f32 %v6569_v42, %v6563_v58  ;;  %v9599_v47 = vld [vmem:[#allocation24_spill] sm:$0xff] }
 0x384   :  { %v6573_v45 = vpop.eup %6572  ;;  %v1974_v3 = vadd.f32 1.0, %v6571_v32  ;;  %6592 = vpow2.f32 %v5719_v54  ;;  %v1901_v59 = vadd.f32 %v1837_v25, %v9599_v47  ;;  %v5721_v32 = vmul.f32 -1.442695, %v1893_v29 }
 0x385   :  { %v6575_v16 = vpop.eup %6574  ;;  %v1975_v24 = vadd.f32 1.0, %v6573_v45  ;;  %6594 = vpow2.f32 %v5720_v1  ;;  %v5722_v6 = vmul.f32 -1.442695, %v1897_v7  ;;  %v2063_v29 = vrot.slane %v8063_v51, 7 }
 0x386   :  { %v6577_v12 = vpop.eup %6576  ;;  %v1976_v53 = vadd.f32 1.0, %v6575_v16  ;;  %6596 = vrcp.f32 %v1974_v3 }
 0x387   :  { %v6579_v35 = vpop.eup %6578  ;;  %v1977_v10 = vadd.f32 1.0, %v6577_v12  ;;  %6598 = vrcp.f32 %v1975_v24  ;;  %v5723_v24 = vmul.f32 -1.442695, %v1901_v59 }
 0x388   :  { %v6581_v0 = vpop.eup %6580  ;;  %v1978_v58 = vadd.f32 1.0, %v6579_v35  ;;  %6600 = vrcp.f32 %v1976_v53 }
 0x389   :  { %v6583_v48 = vpop.eup %6582  ;;  %v1979_v54 = vadd.f32 1.0, %v6581_v0  ;;  %6602 = vrcp.f32 %v1977_v10  ;;  %v2062_v10 = vrot.slane %v8059_v30, 7  ;;  %v2066_v30 = vrot.slane %v8075_v63, 7 }
 0x38a   :  { %v6585_v42 = vpop.eup %6584  ;;  %v1980_v1 = vadd.f32 1.0, %v6583_v48  ;;  %6604 = vrcp.f32 %v1978_v58 }
 0x38b   :  { %v6587_v45 = vpop.eup %6586  ;;  %v1981_v3 = vadd.f32 1.0, %v6585_v42  ;;  %6606 = vrcp.f32 %v1979_v54  ;;  %v2064_v54 = vrot.slane %v8067_v57, 7 }
 0x38c   :  { %v6589_v16 = vpop.eup %6588  ;;  %6608 = vrcp.f32 %v1980_v1  ;;  %v2030_v12 = vadd.f32 1.0, %v6587_v45 }
 0x38d   :  { %v6591_v36 = vpop.eup %6590  ;;  %6610 = vrcp.f32 %v1981_v3  ;;  %v2031_v25 = vadd.f32 1.0, %v6589_v16 }
 0x38e   :  { %v6593_v53 = vpop.eup %6592  ;;  %6612 = vpow2.f32 %v5721_v32  ;;  %v2032_v0 = vadd.f32 1.0, %v6591_v36  ;;  %v2065_v32 = vrot.slane %v8072_v13, 7  ;;  %v2068_v13 = vrot.slane %v8083_v2, 7 }
 0x38f   :  { %v6595_v35 = vpop.eup %6594  ;;  %6614 = vpow2.f32 %v5722_v6  ;;  %v2033_v48 = vadd.f32 1.0, %v6593_v53 }
 0x390   :  { %v6597_v58 = vpop.eup %6596  ;;  %6616 = vpow2.f32 %v5723_v24  ;;  %v2034_v42 = vadd.f32 1.0, %v6595_v35  ;;  %v2067_v24 = vrot.slane %v8079_v37, 7 }
 0x391   :  { %v6599_v7 = vpop.eup %6598  ;;  %v2078_v59 = vmul.f32 %v6597_v58, %v2062_v10  ;;  %6618 = vrcp.f32 %v2030_v12 }
 0x392   :  { %v6601_v1 = vpop.eup %6600  ;;  %v2079_v45 = vmul.f32 %v6599_v7, %v2063_v29  ;;  %6620 = vrcp.f32 %v2031_v25 }
 0x393   :  { %v6603_v3 = vpop.eup %6602  ;;  %v2080_v6 = vmul.f32 %v6601_v1, %v2064_v54  ;;  %v8216_v16 = vadd.f32 %v8185_v33, %v2078_v59  ;;  %6622 = vrcp.f32 %v2032_v0  ;;  %v2069_v33 = vrot.slane %v8087_v8, 7 }
 0x394   :  { %v6605_v51 = vpop.eup %6604  ;;  %v2081_v57 = vmul.f32 %v6603_v3, %v2065_v32  ;;  %v8220_v36 = vadd.f32 %v8188_v40, %v2079_v45  ;;  %6624 = vrcp.f32 %v2033_v48 }
 0x395   :  { %v6607_v12 = vpop.eup %6606  ;;  %v8224_v53 = vadd.f32 %v8181_v27, %v2080_v6  ;;  %6626 = vrcp.f32 %v2034_v42  ;;  %v2082_v63 = vmul.f32 %v6605_v51, %v2066_v30 }
 0x396   :  { %v6609_v25 = vpop.eup %6608  ;;  %v2083_v35 = vmul.f32 %v6607_v12, %v2067_v24  ;;  %v8228_v10 = vadd.f32 %v8192_v46, %v2081_v57  ;;  %6628 = vtanh.f32 %v8216_v16 }
 0x397   :  { %v6611_v37 = vpop.eup %6610  ;;  %v2084_v40 = vmul.f32 %v6609_v25, %v2068_v13  ;;  %v8232_v0 = vadd.f32 %v8195_v52, %v2082_v63  ;;  %6630 = vtanh.f32 %v8220_v36 }
 0x398   :  { %v6613_v2 = vpop.eup %6612  ;;  %v2085_v27 = vmul.f32 %v6611_v37, %v2069_v33  ;;  %v8236_v58 = vadd.f32 %v8198_v43, %v2083_v35  ;;  %6632 = vtanh.f32 %v8224_v53 }
 0x399   :  { %v6615_v8 = vpop.eup %6614  ;;  %v2035_v29 = vadd.f32 1.0, %v6613_v2  ;;  %v8240_v46 = vadd.f32 %v8201_v11, %v2084_v40  ;;  %6634 = vtanh.f32 %v8228_v10 }
 0x39a   :  { %v6617_v48 = vpop.eup %6616  ;;  %v2036_v7 = vadd.f32 1.0, %v6615_v8  ;;  %v8244_v52 = vadd.f32 %v8204_v34, %v2085_v27  ;;  %6636 = vtanh.f32 %v8232_v0 }
 0x39b   :  { %v6619_v54 = vpop.eup %6618  ;;  %v2037_v59 = vadd.f32 1.0, %v6617_v48  ;;  %6638 = vrcp.f32 %v2035_v29 }
 0x39c   :  { %v6621_v43 = vpop.eup %6620  ;;  %6640 = vrcp.f32 %v2036_v7 }
 0x39d   :  { %v6623_v42 = vpop.eup %6622  ;;  %6642 = vrcp.f32 %v2037_v59 }
 0x39e   :  { %v6625_v1 = vpop.eup %6624  ;;  %6644 = vtanh.f32 %v8236_v58 }
 0x39f   :  { %v6627_v11 = vpop.eup %6626  ;;  %6646 = vtanh.f32 %v8240_v46 }
 0x3a0   :  { %v6629_v32 = vpop.eup %6628  ;;  %6648 = vtanh.f32 %v8244_v52 }
 0x3a1   :  { %v6631_v34 = vpop.eup %6630  ;;  %v2110_v45 = vmul.f32 %v6629_v32, %v6619_v54 }
 0x3a2   :  { %v6633_v3 = vpop.eup %6632  ;;  %v2111_v30 = vmul.f32 %v6631_v34, %v6621_v43 }
 0x3a3   :  { %v6635_v6 = vpop.eup %6634  ;;  %v2112_v51 = vmul.f32 %v6633_v3, %v6623_v42  ;;  %2118 = vst [vmem:[#allocation2] sm:$0x4] %v2110_v45  ;;  %v2126_v24 = vpack.c.bf16 %v2110_v45, %v2110_v45 }
 0x3a4   :  { %v6637_v57 = vpop.eup %6636  ;;  %v2113_v12 = vmul.f32 %v6635_v6, %v6625_v1  ;;  %2119 = vst [vmem:[#allocation2 + $0x8] sm:$0x4] %v2111_v30  ;;  %v2127_v13 = vpack.c.bf16 %v2111_v30, %v2111_v30 }
 0x3a5   :  { %v6639_v63 = vpop.eup %6638  ;;  %v2114_v25 = vmul.f32 %v6637_v57, %v6627_v11  ;;  %2120 = vst [vmem:[#allocation2 + $0x10] sm:$0x4] %v2112_v51  ;;  %v2128_v33 = vpack.c.bf16 %v2112_v51, %v2112_v51  ;;  %v2174_v35 = vunpack.c.l.b16 %v2126_v24 }
 0x3a6   :  { %v6641_v37 = vpop.eup %6640  ;;  %2121 = vst [vmem:[#allocation2 + $0x18] sm:$0x4] %v2113_v12  ;;  %v2129_v40 = vpack.c.bf16 %v2113_v12, %v2113_v12  ;;  %v2175_v2 = vunpack.c.l.b16 %v2127_v13 }
 0x3a7   :  { %v6643_v27 = vpop.eup %6642  ;;  %2122 = vst [vmem:[#allocation2 + $0x20] sm:$0x4] %v2114_v25  ;;  %v2130_v8 = vpack.c.bf16 %v2114_v25, %v2114_v25  ;;  %v2182_v29 = vrot.slane %v2174_v35, 2  ;;  %v2176_v42 = vunpack.c.l.b16 %v2128_v33 }
 0x3a8   :  { %v6645_v48 = vpop.eup %6644  ;;  %v2177_v7 = vunpack.c.l.b16 %v2129_v40  ;;  %v2183_v54 = vrot.slane %v2175_v2, 1 }
 0x3a9   :  { %v6647_v59 = vpop.eup %6646  ;;  %v2115_v43 = vmul.f32 %v6645_v48, %v6639_v63  ;;  %v2178_v1 = vunpack.c.l.b16 %v2130_v8  ;;  %v8262_v48 = vld [vmem:[%s9375_s2] ss:$16 sps:$4 sm:$0xff]  }
 0x3aa   :  { %v6649_v32 = vpop.eup %6648  ;;  %v2116_v11 = vmul.f32 %v6647_v59, %v6641_v37  ;;  %v2184_v34 = vsel %vm908_vm1, %v2183_v54, %v2182_v29  ;;  %v2186_v45 = vrot.slane %v2177_v7, 7  ;;  %v6164_v7 = vld [vmem:[%s9375_s2 + $0x4] ss:$16 sps:$4 sm:$0xff]   ;;  %v8270_v54 = vld [vmem:[%s9375_s2 + $0x8] ss:$16 sps:$4 sm:$0xff]  }
 0x3ab   :  { %v2117_v3 = vmul.f32 %v6649_v32, %v6643_v27  ;;  %2123 = vst [vmem:[#allocation2 + $0x28] sm:$0x4] %v2115_v43  ;;  %v2131_v30 = vpack.c.bf16 %v2115_v43, %v2115_v43  ;;  %v2185_v6 = vsel %vm911_vm2, %v2176_v42, %v2184_v34  ;;  %v2188_v51 = vrot.slane %v2178_v1, 6  ;;  %v6167_v59 = vld [vmem:[%s9375_s2 + $0xc] ss:$16 sps:$4 sm:$0xff]   ;;  %2992 = vmatprep.subr.bf16.mxu0 %v6164_v7 }
 0x3ac   :  { %2124 = vst [vmem:[#allocation2 + $0x30] sm:$0x4] %v2116_v11  ;;  %v2132_v24 = vpack.c.bf16 %v2116_v11, %v2116_v11  ;;  %v2187_v57 = vsel %vm914_vm3, %v2186_v45, %v2185_v6  ;;  %v8278_v43 = vld [vmem:[%s9375_s2 + $0x24] ss:$16 sps:$4 sm:$0xff]   ;;  %v8283_v42 = vld [vmem:[%s9375_s2 + $0x2c] ss:$16 sps:$4 sm:$0xff]   ;;  %3033 = vmatprep.subr.bf16.mxu1 %v6167_v59 }
 0x3ad   :  { %2125 = vst [vmem:[#allocation2 + $0x38] sm:$0x4] %v2117_v3  ;;  %v2133_v12 = vpack.c.bf16 %v2117_v3, %v2117_v3  ;;  %v2179_v13 = vunpack.c.l.b16 %v2131_v30  ;;  %v2189_v63 = vsel %vm917_vm4, %v2188_v51, %v2187_v57  ;;  %v8289_v1 = vld [vmem:[%s9375_s2 + $0x20] ss:$16 sps:$4 sm:$0xff]   ;;  %v8296_v32 = vld [vmem:[%s9375_s2 + $0x28] ss:$16 sps:$4 sm:$0xff]  }
 0x3ae   :  { %v2180_v25 = vunpack.c.l.b16 %v2132_v24  ;;  %9600 = vst [vmem:[#allocation12_spill] sm:$0xff] %v8296_v32  ;;  %v8301_v11 = vld [vmem:[%s9375_s2 + $0x44] ss:$16 sps:$4 sm:$0xff]   ;;  %v8307_v34 = vld [vmem:[%s9375_s2 + $0x4c] ss:$16 sps:$4 sm:$0xff]  }
 0x3af   :  { %v2181_v33 = vunpack.c.l.b16 %v2133_v12  ;;  %v2190_v35 = vrot.slane %v2179_v13, 5  ;;  %9601 = vst [vmem:[#allocation22_spill] sm:$0xff] %v8301_v11  ;;  %9602 = vst [vmem:[#allocation23_spill] sm:$0xff] %v8307_v34  ;;  %v8313_v45 = vld [vmem:[%s9375_s2 + $0x40] ss:$16 sps:$4 sm:$0xff]  }
 0x3b0   :  { %v2192_v37 = vrot.slane %v2180_v25, 4  ;;  %9603 = vst [vmem:[#allocation25_spill] sm:$0xff] %v8313_v45  ;;  %v8320_v3 = vld [vmem:[%s9375_s2 + $0x48] ss:$16 sps:$4 sm:$0xff]   ;;  %v8325_v30 = vld [vmem:[%s9375_s2 + $0x64] ss:$16 sps:$4 sm:$0xff]  }
 0x3b1   :  { %v2191_v40 = vsel %vm920_vm5, %v2190_v35, %v2189_v63  ;;  %v2194_v2 = vrot.slane %v2181_v33, 3  ;;  %9604 = vst [vmem:[#allocation26_spill] sm:$0xff] %v8320_v3  ;;  %9605 = vst [vmem:[#allocation27_spill] sm:$0xff] %v8325_v30  ;;  %v8331_v6 = vld [vmem:[%s9375_s2 + $0x6c] ss:$16 sps:$4 sm:$0xff]  }
 0x3b2   :  { %v2193_v27 = vsel %vm923_vm6, %v2192_v37, %v2191_v40  ;;  %9606 = vst [vmem:[#allocation28_spill] sm:$0xff] %v8331_v6  ;;  %v8337_v51 = vld [vmem:[%s9375_s2 + $0x60] ss:$16 sps:$4 sm:$0xff]   ;;  %v8344_v24 = vld [vmem:[%s9375_s2 + $0x68] ss:$16 sps:$4 sm:$0xff]  }
 0x3b3   :  { %v2195_v8 = vsel %vm926_vm7, %v2194_v2, %v2193_v27  ;;  %9607 = vst [vmem:[#allocation29_spill] sm:$0xff] %v8337_v51  ;;  %9608 = vst [vmem:[#allocation30_spill] sm:$0xff] %v8344_v24  ;;  %v8349_v57 = vld [vmem:[%s9375_s2 + $0x84] ss:$16 sps:$4 sm:$0xff]   ;;  %v8355_v12 = vld [vmem:[%s9375_s2 + $0x8c] ss:$16 sps:$4 sm:$0xff]  }
 0x3b4   :  { %v2196_v29 = vpack.c.b16 %v2195_v8, %v2195_v8  ;;  %9609 = vst [vmem:[#allocation31_spill] sm:$0xff] %v8349_v57  ;;  %9610 = vst [vmem:[#allocation32_spill] sm:$0xff] %v8355_v12  ;;  %v8361_v13 = vld [vmem:[%s9375_s2 + $0x80] ss:$16 sps:$4 sm:$0xff]   ;;  %v8368_v63 = vld [vmem:[%s9375_s2 + $0x88] ss:$16 sps:$4 sm:$0xff]  }
 0x3b5   :  { %9611 = vst [vmem:[#allocation33_spill] sm:$0xff] %v8361_v13  ;;  %9612 = vst [vmem:[#allocation34_spill] sm:$0xff] %v8368_v63  ;;  %v8373_v25 = vld [vmem:[%s9375_s2 + $0xa4] ss:$16 sps:$4 sm:$0xff]   ;;  %v8379_v33 = vld [vmem:[%s9375_s2 + $0xac] ss:$16 sps:$4 sm:$0xff]  }
 0x3b6   :  { %2391 = vmatmul.mubr.bf16.vlgmr.msra.gmra.mrb[12].mxu0 %v2196_v29  ;;  %2432 = vmatmul.mubr.bf16.vlgmr.msra.gmra.mrb[44].mxu1 %v2196_v29  ;;  %9613 = vst [vmem:[#allocation35_spill] sm:$0xff] %v8373_v25  ;;  %9614 = vst [vmem:[#allocation36_spill] sm:$0xff] %v8379_v33  ;;  %v8385_v35 = vld [vmem:[%s9375_s2 + $0xa0] ss:$16 sps:$4 sm:$0xff]   ;;  %v8392_v37 = vld [vmem:[%s9375_s2 + $0xa8] ss:$16 sps:$4 sm:$0xff]  }
 0x3b7   :  { %3024 = vmatprep.mubr.bf16.mxu0 %v9532_v21  ;;  %3065 = vmatprep.mubr.bf16.mxu1 %v9532_v21  ;;  %9615 = vst [vmem:[#allocation37_spill] sm:$0xff] %v8385_v35  ;;  %9616 = vst [vmem:[#allocation38_spill] sm:$0xff] %v8392_v37  ;;  %v8397_v40 = vld [vmem:[%s9375_s2 + $0xc4] ss:$16 sps:$4 sm:$0xff]   ;;  %v8403_v2 = vld [vmem:[%s9375_s2 + $0xcc] ss:$16 sps:$4 sm:$0xff]  }
 0x3b8   :  { %2993 = vmatpush1.bf16.msra.mxu0 %v8262_v48  ;;  %3034 = vmatpush1.bf16.msra.mxu1 %v8270_v54  ;;  %9617 = vst [vmem:[#allocation39_spill] sm:$0xff] %v8397_v40  ;;  %9618 = vst [vmem:[#allocation40_spill] sm:$0xff] %v8403_v2  ;;  %v8409_v27 = vld [vmem:[%s9375_s2 + $0xc0] ss:$16 sps:$4 sm:$0xff]   ;;  %v8416_v8 = vld [vmem:[%s9375_s2 + $0xc8] ss:$16 sps:$4 sm:$0xff]  }
 0x3b9   :  { %2994 = vmatprep.subr.bf16.mxu0 %v8278_v43  ;;  %3035 = vmatprep.subr.bf16.mxu1 %v8283_v42  ;;  %9619 = vst [vmem:[#allocation41_spill] sm:$0xff] %v8409_v27  ;;  %9620 = vst [vmem:[#allocation42_spill] sm:$0xff] %v8416_v8  ;;  %v8421_v29 = vld [vmem:[%s9375_s2 + $0xe4] ss:$16 sps:$4 sm:$0xff]  }
 0x3ba   :  { %9621 = vst [vmem:[#allocation43_spill] sm:$0xff] %v8421_v29 }
 0x3bc   :  { %2995 = vmatpush1.bf16.msra.mxu0 %v8289_v1  ;;  %3036 = vmatpush1.bf16.msra.mxu1 %v8296_v32 }
 0x3bd   :  { %2996 = vmatprep.subr.bf16.mxu0 %v8301_v11  ;;  %3037 = vmatprep.subr.bf16.mxu1 %v8307_v34 }
 0x3c0   :  { %2997 = vmatpush1.bf16.msra.mxu0 %v8313_v45  ;;  %3038 = vmatpush1.bf16.msra.mxu1 %v8320_v3 }
 0x3c1   :  { %2998 = vmatprep.subr.bf16.mxu0 %v8325_v30  ;;  %3039 = vmatprep.subr.bf16.mxu1 %v8331_v6 }
 0x3c4   :  { %2999 = vmatpush1.bf16.msra.mxu0 %v8337_v51  ;;  %3040 = vmatpush1.bf16.msra.mxu1 %v8344_v24 }
 0x3c5   :  { %3000 = vmatprep.subr.bf16.mxu0 %v8349_v57  ;;  %3041 = vmatprep.subr.bf16.mxu1 %v8355_v12 }
 0x3c8   :  { %3001 = vmatpush1.bf16.msra.mxu0 %v8361_v13  ;;  %3042 = vmatpush1.bf16.msra.mxu1 %v8368_v63 }
 0x3c9   :  { %3002 = vmatprep.subr.bf16.mxu0 %v8373_v25  ;;  %3043 = vmatprep.subr.bf16.mxu1 %v8379_v33 }
 0x3cc   :  { %3003 = vmatpush1.bf16.msra.mxu0 %v8385_v35  ;;  %3044 = vmatpush1.bf16.msra.mxu1 %v8392_v37  ;;  %v8427_v35 = vld [vmem:[%s9375_s2 + $0xec] ss:$16 sps:$4 sm:$0xff]  }
 0x3cd   :  { %3004 = vmatprep.subr.bf16.mxu0 %v8397_v40  ;;  %3045 = vmatprep.subr.bf16.mxu1 %v8403_v2  ;;  %9622 = vst [vmem:[#allocation44_spill] sm:$0xff] %v8427_v35  ;;  %v8433_v40 = vld [vmem:[%s9375_s2 + $0xe0] ss:$16 sps:$4 sm:$0xff]   ;;  %v8440_v2 = vld [vmem:[%s9375_s2 + $0xe8] ss:$16 sps:$4 sm:$0xff]  }
 0x3ce   :  { %9623 = vst [vmem:[#allocation45_spill] sm:$0xff] %v8433_v40  ;;  %9624 = vst [vmem:[#allocation46_spill] sm:$0xff] %v8440_v2 }
 0x3d0   :  { %3005 = vmatpush1.bf16.msra.mxu0 %v8409_v27  ;;  %3046 = vmatpush1.bf16.msra.mxu1 %v8416_v8 }
 0x3d1   :  { %3006 = vmatprep.subr.bf16.mxu0 %v8421_v29  ;;  %3047 = vmatprep.subr.bf16.mxu1 %v8427_v35 }
 0x3d4   :  { %3007 = vmatpush1.bf16.msra.mxu0 %v8433_v40  ;;  %3048 = vmatpush1.bf16.msra.mxu1 %v8440_v2 }
 0x3d5   :  { %3626 = vmatprep.subr.bf16.mxu0 %v6164_v7  ;;  %3667 = vmatprep.subr.bf16.mxu1 %v6167_v59 }
 0x489   :  { %v2392_v27 = vpop.f32.mrb[12].mxu0  ;;  %v8445_v37 = vpop.f32.mrb[44].mxu1 }
 0x48a   :  { %v2444_v33 = vrot.slane %v2392_v27, 5  ;;  %v2448_v8 = vrot.slane %v2392_v27, 6  ;;  %v2452_v25 = vrot.slane %v2392_v27, 7  ;;  %v2456_v29 = vrot.slane %v2392_v27, 1  ;;  %v8447_v63 = vpop.f32.mrb[13].mxu0  ;;  %v8449_v13 = vpop.f32.mrb[45].mxu1 }
 0x48b   :  { %v2460_v12 = vrot.slane %v2392_v27, 2  ;;  %v2464_v57 = vrot.slane %v2392_v27, 3  ;;  %v2468_v35 = vrot.slane %v2392_v27, 4  ;;  %v2516_v40 = vadd.f32 %v2392_v27, %v7555_v17  ;;  %v2396_v24 = vpop.f32.mrb[14].mxu0  ;;  %v2437_v2 = vpop.f32.mrb[46].mxu1 }
 0x48c   :  { %v2504_v7 = vadd.f32 %v2444_v33, %v7534_v5  ;;  %v2508_v59 = vadd.f32 %v2448_v8, %v7540_v9  ;;  %v2512_v51 = vadd.f32 %v2452_v25, %v7549_v14  ;;  %v2520_v6 = vadd.f32 %v2456_v29, %v7559_v19  ;;  %v2397_v30 = vpop.f32.mrb[15].mxu0  ;;  %v2438_v3 = vpop.f32.mrb[47].mxu1 }
 0x48d   :  { %v2524_v45 = vadd.f32 %v2460_v12, %v7572_v26  ;;  %v2528_v34 = vadd.f32 %v2464_v57, %v7564_v22  ;;  %v5759_v11 = vmul.f32 -1.442695, %v2516_v40  ;;  %v2532_v32 = vadd.f32 %v2468_v35, %v7628_v23 }
 0x48e   :  { %v5756_v27 = vmul.f32 -1.442695, %v2504_v7  ;;  %v5757_v24 = vmul.f32 -1.442695, %v2508_v59  ;;  %v5758_v2 = vmul.f32 -1.442695, %v2512_v51 }
 0x48f   :  { %6650 = vpow2.f32 %v5759_v11  ;;  %v5760_v33 = vmul.f32 -1.442695, %v2520_v6  ;;  %v5761_v8 = vmul.f32 -1.442695, %v2524_v45  ;;  %v2446_v25 = vrot.slane %v8445_v37, 5 }
 0x490   :  { %6652 = vpow2.f32 %v5756_v27  ;;  %v2450_v29 = vrot.slane %v8445_v37, 6  ;;  %v5762_v3 = vmul.f32 -1.442695, %v2528_v34  ;;  %v2454_v30 = vrot.slane %v8445_v37, 7 }
 0x491   :  { %6654 = vpow2.f32 %v5757_v24  ;;  %v5763_v57 = vmul.f32 -1.442695, %v2532_v32  ;;  %v2458_v12 = vrot.slane %v8445_v37, 1  ;;  %v2506_v35 = vadd.f32 %v2446_v25, %v7656_v28 }
 0x492   :  { %6656 = vpow2.f32 %v5758_v2  ;;  %v2510_v11 = vadd.f32 %v2450_v29, %v7663_v38  ;;  %v2514_v45 = vadd.f32 %v2454_v30, %v7670_v61  ;;  %v2518_v6 = vadd.f32 %v8445_v37, %v7679_v39 }
 0x493   :  { %6658 = vpow2.f32 %v5760_v33  ;;  %v2522_v34 = vadd.f32 %v2458_v12, %v7688_v62  ;;  %v2462_v51 = vrot.slane %v8445_v37, 2  ;;  %v2466_v59 = vrot.slane %v8445_v37, 3 }
 0x494   :  { %6660 = vpow2.f32 %v5761_v8  ;;  %v2470_v2 = vrot.slane %v8445_v37, 4  ;;  %v2445_v33 = vrot.slane %v8447_v63, 5  ;;  %v2449_v29 = vrot.slane %v8447_v63, 6 }
 0x495   :  { %6662 = vpow2.f32 %v5762_v3  ;;  %v2453_v12 = vrot.slane %v8447_v63, 7  ;;  %v2530_v37 = vadd.f32 %v2466_v59, %v9590_v41  ;;  %v2465_v59 = vrot.slane %v8447_v63, 3  ;;  %v9626_v41 = vld [vmem:[#allocation6_spill] sm:$0xff] }
 0x496   :  { %6664 = vpow2.f32 %v5763_v57  ;;  %v2526_v57 = vadd.f32 %v2462_v51, %v7701_v15  ;;  %v2461_v51 = vrot.slane %v8447_v63, 2 }
 0x497   :  { %6666 = vtanh.f32 %v2506_v35  ;;  %v2513_v15 = vadd.f32 %v2453_v12, %v9626_v41  ;;  %v2451_v12 = vrot.slane %v8449_v13, 6  ;;  %v2529_v41 = vadd.f32 %v2465_v59, %v9596_v18 }
 0x498   :  { %6668 = vtanh.f32 %v2510_v11 }
 0x499   :  { %v6651_v32 = vpop.eup %6650  ;;  %6670 = vtanh.f32 %v2514_v45  ;;  %v2457_v45 = vrot.slane %v8447_v63, 1  ;;  %v5766_v39 = vmul.f32 -1.442695, %v2513_v15  ;;  %v2511_v59 = vadd.f32 %v2451_v12, %v9598_v20 }
 0x49a   :  { %v6653_v40 = vpop.eup %6652  ;;  %v2563_v7 = vadd.f32 1.0, %v6651_v32  ;;  %6672 = vtanh.f32 %v2518_v6  ;;  %v2534_v32 = vadd.f32 %v2470_v2, %v7708_v4  ;;  %v2469_v2 = vrot.slane %v8447_v63, 4 }
 0x49b   :  { %v6655_v27 = vpop.eup %6654  ;;  %v2560_v24 = vadd.f32 1.0, %v6653_v40  ;;  %6674 = vtanh.f32 %v2522_v34  ;;  %v2505_v40 = vadd.f32 %v2445_v33, %v9591_v49 }
 0x49c   :  { %v6657_v8 = vpop.eup %6656  ;;  %v2561_v25 = vadd.f32 1.0, %v6655_v27  ;;  %6676 = vrcp.f32 %v2563_v7 }
 0x49d   :  { %v6659_v3 = vpop.eup %6658  ;;  %v2562_v30 = vadd.f32 1.0, %v6657_v8  ;;  %6678 = vrcp.f32 %v2560_v24  ;;  %v9625_v24 = vld [vmem:[#allocation5_spill] sm:$0xff]  ;;  %v5764_v49 = vmul.f32 -1.442695, %v2505_v40  ;;  %v2533_v40 = vadd.f32 %v2469_v2, %v9597_v31 }
 0x49e   :  { %v6661_v35 = vpop.eup %6660  ;;  %v2564_v11 = vadd.f32 1.0, %v6659_v3  ;;  %6680 = vrcp.f32 %v2561_v25  ;;  %v2509_v8 = vadd.f32 %v2449_v29, %v9625_v24  ;;  %v2447_v29 = vrot.slane %v8449_v13, 5 }
 0x49f   :  { %v6663_v6 = vpop.eup %6662  ;;  %v2565_v34 = vadd.f32 1.0, %v6661_v35  ;;  %6682 = vrcp.f32 %v2562_v30  ;;  %v9627_v30 = vld [vmem:[#allocation7_spill] sm:$0xff]  ;;  %v5770_v2 = vmul.f32 -1.442695, %v2529_v41 }
 0x4a0   :  { %v6665_v7 = vpop.eup %6664  ;;  %v2566_v27 = vadd.f32 1.0, %v6663_v6  ;;  %6684 = vrcp.f32 %v2564_v11  ;;  %v2517_v33 = vadd.f32 %v8447_v63, %v9627_v30  ;;  %v9628_v6 = vld [vmem:[#allocation8_spill] sm:$0xff]  ;;  %v5765_v62 = vmul.f32 -1.442695, %v2509_v8 }
 0x4a1   :  { %v6667_v3 = vpop.eup %6666  ;;  %v2567_v25 = vadd.f32 1.0, %v6665_v7  ;;  %6686 = vrcp.f32 %v2565_v34  ;;  %v2521_v11 = vadd.f32 %v2457_v45, %v9628_v6  ;;  %v9629_v34 = vld [vmem:[#allocation9_spill] sm:$0xff]  ;;  %v2455_v63 = vrot.slane %v8449_v13, 7 }
 0x4a2   :  { %v6669_v35 = vpop.eup %6668  ;;  %6688 = vrcp.f32 %v2566_v27  ;;  %v2525_v24 = vadd.f32 %v2461_v51, %v9629_v34  ;;  %v2459_v51 = vrot.slane %v8449_v13, 1  ;;  %v2507_v8 = vadd.f32 %v2447_v29, %v9559_v56 }
 0x4a3   :  { %v6671_v4 = vpop.eup %6670  ;;  %6690 = vrcp.f32 %v2567_v25  ;;  %v5767_v25 = vmul.f32 -1.442695, %v2517_v33  ;;  %v5768_v6 = vmul.f32 -1.442695, %v2521_v11  ;;  %v9630_v33 = vld [vmem:[#allocation16_spill] sm:$0xff] }
 0x4a4   :  { %v6673_v7 = vpop.eup %6672  ;;  %6692 = vtanh.f32 %v2526_v57  ;;  %v5769_v15 = vmul.f32 -1.442695, %v2525_v24  ;;  %v2515_v11 = vadd.f32 %v2455_v63, %v9630_v33  ;;  %v2523_v24 = vadd.f32 %v2459_v51, %v7698_v55 }
 0x4a5   :  { %v6675_v27 = vpop.eup %6674  ;;  %6694 = vtanh.f32 %v2530_v37 }
 0x4a6   :  { %v6677_v45 = vpop.eup %6676  ;;  %6696 = vtanh.f32 %v2534_v32  ;;  %v5774_v12 = vmul.f32 -1.442695, %v2515_v11  ;;  %v2471_v11 = vrot.slane %v8449_v13, 4 }
 0x4a7   :  { %v6679_v30 = vpop.eup %6678  ;;  %v8494_v57 = vmul.f32 %v6677_v45, %v6673_v7  ;;  %6698 = vpow2.f32 %v5764_v49  ;;  %v5771_v45 = vmul.f32 -1.442695, %v2533_v40 }
 0x4a8   :  { %v6681_v37 = vpop.eup %6680  ;;  %v8498_v34 = vmul.f32 %v6679_v30, %v6667_v3  ;;  %6700 = vpow2.f32 %v5765_v62  ;;  %v2519_v3 = vadd.f32 %v8449_v13, %v7685_v44 }
 0x4a9   :  { %v6683_v32 = vpop.eup %6682  ;;  %v8501_v18 = vmul.f32 %v6681_v37, %v6669_v35  ;;  %6702 = vpow2.f32 %v5766_v39  ;;  %v5772_v35 = vmul.f32 -1.442695, %v2507_v8  ;;  %v5773_v39 = vmul.f32 -1.442695, %v2511_v59 }
 0x4aa   :  { %v6685_v7 = vpop.eup %6684  ;;  %v8504_v49 = vmul.f32 %v6683_v32, %v6671_v4  ;;  %6704 = vpow2.f32 %v5767_v25  ;;  %v5775_v63 = vmul.f32 -1.442695, %v2519_v3  ;;  %v5776_v37 = vmul.f32 -1.442695, %v2523_v24 }
 0x4ab   :  { %v6687_v30 = vpop.eup %6686  ;;  %v8508_v62 = vmul.f32 %v6685_v7, %v6675_v27  ;;  %6706 = vpow2.f32 %v5768_v6  ;;  %v2463_v6 = vrot.slane %v8449_v13, 2 }
 0x4ac   :  { %v6689_v29 = vpop.eup %6688  ;;  %6708 = vpow2.f32 %v5769_v15  ;;  %v2467_v15 = vrot.slane %v8449_v13, 3 }
 0x4ad   :  { %v6691_v41 = vpop.eup %6690  ;;  %6710 = vpow2.f32 %v5770_v2  ;;  %v2527_v24 = vadd.f32 %v2463_v6, %v9562_v50 }
 0x4ae   :  { %v6693_v4 = vpop.eup %6692  ;;  %6712 = vpow2.f32 %v5771_v45 }
 0x4af   :  { %v6695_v40 = vpop.eup %6694  ;;  %v8511_v25 = vmul.f32 %v6693_v4, %v6687_v30  ;;  %6714 = vpow2.f32 %v5772_v35  ;;  %v2535_v4 = vadd.f32 %v2471_v11, %v9599_v47 }
 0x4b0   :  { %v6697_v27 = vpop.eup %6696  ;;  %6716 = vpow2.f32 %v5773_v39  ;;  %v8514_v51 = vmul.f32 %v6695_v40, %v6689_v29  ;;  %v2531_v39 = vadd.f32 %v2467_v15, %v9563_v60 }
 0x4b1   :  { %v6699_v8 = vpop.eup %6698  ;;  %6718 = vpow2.f32 %v5774_v12  ;;  %v8517_v59 = vmul.f32 %v6697_v27, %v6691_v41  ;;  %v5777_v27 = vmul.f32 -1.442695, %v2527_v24  ;;  %v2697_v24 = vrot.slane %v8220_v36, 7 }
 0x4b2   :  { %v6701_v32 = vpop.eup %6700  ;;  %v2608_v2 = vadd.f32 1.0, %v6699_v8  ;;  %6720 = vpow2.f32 %v5775_v63  ;;  %v5778_v6 = vmul.f32 -1.442695, %v2531_v39 }
 0x4b3   :  { %v6703_v7 = vpop.eup %6702  ;;  %v2609_v45 = vadd.f32 1.0, %v6701_v32  ;;  %6722 = vpow2.f32 %v5776_v37 }
 0x4b4   :  { %v6705_v3 = vpop.eup %6704  ;;  %v2610_v30 = vadd.f32 1.0, %v6703_v7  ;;  %6724 = vrcp.f32 %v2608_v2  ;;  %v5779_v7 = vmul.f32 -1.442695, %v2535_v4 }
 0x4b5   :  { %v6707_v35 = vpop.eup %6706  ;;  %v2611_v29 = vadd.f32 1.0, %v6705_v3  ;;  %6726 = vrcp.f32 %v2609_v45 }
 0x4b6   :  { %v6709_v41 = vpop.eup %6708  ;;  %v2612_v12 = vadd.f32 1.0, %v6707_v35  ;;  %6728 = vrcp.f32 %v2610_v30  ;;  %v2696_v35 = vrot.slane %v8216_v16, 7  ;;  %v2700_v16 = vrot.slane %v8232_v0, 7 }
 0x4b7   :  { %v6711_v13 = vpop.eup %6710  ;;  %v2613_v63 = vadd.f32 1.0, %v6709_v41  ;;  %6730 = vrcp.f32 %v2611_v29 }
 0x4b8   :  { %v6713_v40 = vpop.eup %6712  ;;  %v2614_v37 = vadd.f32 1.0, %v6711_v13  ;;  %6732 = vrcp.f32 %v2612_v12  ;;  %v2698_v13 = vrot.slane %v8224_v53, 7 }
 0x4b9   :  { %v6715_v8 = vpop.eup %6714  ;;  %v2615_v32 = vadd.f32 1.0, %v6713_v40  ;;  %6734 = vrcp.f32 %v2613_v63 }
 0x4ba   :  { %v6717_v2 = vpop.eup %6716  ;;  %6736 = vrcp.f32 %v2614_v37  ;;  %v2664_v45 = vadd.f32 1.0, %v6715_v8  ;;  %v2699_v37 = vrot.slane %v8228_v10, 7  ;;  %v2702_v10 = vrot.slane %v8240_v46, 7 }
 0x4bb   :  { %v6719_v15 = vpop.eup %6718  ;;  %6738 = vrcp.f32 %v2615_v32  ;;  %v2665_v11 = vadd.f32 1.0, %v6717_v2  ;;  %v2701_v2 = vrot.slane %v8236_v58, 7 }
 0x4bc   :  { %v6721_v3 = vpop.eup %6720  ;;  %6740 = vpow2.f32 %v5777_v27  ;;  %v2666_v29 = vadd.f32 1.0, %v6719_v15 }
 0x4bd   :  { %v6723_v30 = vpop.eup %6722  ;;  %6742 = vpow2.f32 %v5778_v6  ;;  %v2667_v12 = vadd.f32 1.0, %v6721_v3 }
 0x4be   :  { %v6725_v41 = vpop.eup %6724  ;;  %6744 = vpow2.f32 %v5779_v7  ;;  %v2668_v63 = vadd.f32 1.0, %v6723_v30 }
 0x4bf   :  { %v6727_v39 = vpop.eup %6726  ;;  %v2712_v4 = vmul.f32 %v6725_v41, %v2696_v35  ;;  %6746 = vrcp.f32 %v2664_v45 }
 0x4c0   :  { %v6729_v40 = vpop.eup %6728  ;;  %v2713_v27 = vmul.f32 %v6727_v39, %v2697_v24  ;;  %6748 = vrcp.f32 %v2665_v11 }
 0x4c1   :  { %v6731_v8 = vpop.eup %6730  ;;  %v2714_v32 = vmul.f32 %v6729_v40, %v2698_v13  ;;  %v8529_v6 = vadd.f32 %v8498_v34, %v2712_v4  ;;  %6750 = vrcp.f32 %v2666_v29  ;;  %v2703_v34 = vrot.slane %v8244_v52, 7 }
 0x4c2   :  { %v6733_v36 = vpop.eup %6732  ;;  %v2715_v53 = vmul.f32 %v6731_v8, %v2699_v37  ;;  %v8533_v7 = vadd.f32 %v8501_v18, %v2713_v27  ;;  %6752 = vrcp.f32 %v2667_v12 }
 0x4c3   :  { %v6735_v15 = vpop.eup %6734  ;;  %v8537_v45 = vadd.f32 %v8504_v49, %v2714_v32  ;;  %6754 = vrcp.f32 %v2668_v63  ;;  %v2716_v0 = vmul.f32 %v6733_v36, %v2700_v16 }
 0x4c4   :  { %v6737_v3 = vpop.eup %6736  ;;  %v2717_v11 = vmul.f32 %v6735_v15, %v2701_v2  ;;  %v8541_v30 = vadd.f32 %v8494_v57, %v2715_v53  ;;  %6756 = vtanh.f32 %v8529_v6 }
 0x4c5   :  { %v6739_v18 = vpop.eup %6738  ;;  %v2718_v58 = vmul.f32 %v6737_v3, %v2702_v10  ;;  %v8545_v35 = vadd.f32 %v8508_v62, %v2716_v0  ;;  %6758 = vtanh.f32 %v8533_v7 }
 0x4c6   :  { %v6741_v46 = vpop.eup %6740  ;;  %v2719_v49 = vmul.f32 %v6739_v18, %v2703_v34  ;;  %v8549_v29 = vadd.f32 %v8511_v25, %v2717_v11  ;;  %6760 = vtanh.f32 %v8537_v45 }
 0x4c7   :  { %v6743_v52 = vpop.eup %6742  ;;  %v2669_v41 = vadd.f32 1.0, %v6741_v46  ;;  %v8553_v57 = vadd.f32 %v8514_v51, %v2718_v58  ;;  %6762 = vtanh.f32 %v8541_v30 }
 0x4c8   :  { %v6745_v24 = vpop.eup %6744  ;;  %v2670_v12 = vadd.f32 1.0, %v6743_v52  ;;  %v8557_v62 = vadd.f32 %v8517_v59, %v2719_v49  ;;  %6764 = vtanh.f32 %v8545_v35 }
 0x4c9   :  { %v6747_v39 = vpop.eup %6746  ;;  %v2671_v13 = vadd.f32 1.0, %v6745_v24  ;;  %6766 = vrcp.f32 %v2669_v41 }
 0x4ca   :  { %v6749_v25 = vpop.eup %6748  ;;  %6768 = vrcp.f32 %v2670_v12 }
 0x4cb   :  { %v6751_v4 = vpop.eup %6750  ;;  %6770 = vrcp.f32 %v2671_v13 }
 0x4cc   :  { %v6753_v63 = vpop.eup %6752  ;;  %6772 = vtanh.f32 %v8549_v29 }
 0x4cd   :  { %v6755_v51 = vpop.eup %6754  ;;  %6774 = vtanh.f32 %v8553_v57 }
 0x4ce   :  { %v6757_v40 = vpop.eup %6756  ;;  %6776 = vtanh.f32 %v8557_v62 }
 0x4cf   :  { %v6759_v59 = vpop.eup %6758  ;;  %v2744_v37 = vmul.f32 %v6757_v40, %v6747_v39 }
 0x4d0   :  { %v6761_v27 = vpop.eup %6760  ;;  %v2745_v8 = vmul.f32 %v6759_v59, %v6749_v25 }
 0x4d1   :  { %v6763_v16 = vpop.eup %6762  ;;  %v2746_v32 = vmul.f32 %v6761_v27, %v6751_v4  ;;  %2752 = vst [vmem:[#allocation2] sm:$0x8] %v2744_v37  ;;  %v2760_v36 = vpack.c.bf16 %v2744_v37, %v2744_v37 }
 0x4d2   :  { %v6765_v2 = vpop.eup %6764  ;;  %v2747_v53 = vmul.f32 %v6763_v16, %v6753_v63  ;;  %2753 = vst [vmem:[#allocation2 + $0x8] sm:$0x8] %v2745_v8  ;;  %v2761_v15 = vpack.c.bf16 %v2745_v8, %v2745_v8 }
 0x4d3   :  { %v6767_v10 = vpop.eup %6766  ;;  %v2748_v0 = vmul.f32 %v6765_v2, %v6755_v51  ;;  %2754 = vst [vmem:[#allocation2 + $0x10] sm:$0x8] %v2746_v32  ;;  %v2762_v3 = vpack.c.bf16 %v2746_v32, %v2746_v32  ;;  %v2808_v34 = vunpack.c.l.b16 %v2760_v36 }
 0x4d4   :  { %v6769_v11 = vpop.eup %6768  ;;  %2755 = vst [vmem:[#allocation2 + $0x18] sm:$0x8] %v2747_v53  ;;  %v2763_v18 = vpack.c.bf16 %v2747_v53, %v2747_v53  ;;  %v2809_v58 = vunpack.c.l.b16 %v2761_v15 }
 0x4d5   :  { %v6771_v46 = vpop.eup %6770  ;;  %2756 = vst [vmem:[#allocation2 + $0x20] sm:$0x8] %v2748_v0  ;;  %v2764_v49 = vpack.c.bf16 %v2748_v0, %v2748_v0  ;;  %v2810_v52 = vunpack.c.l.b16 %v2762_v3  ;;  %v2816_v41 = vrot.slane %v2808_v34, 3 }
 0x4d6   :  { %v6773_v24 = vpop.eup %6772  ;;  %v2817_v12 = vrot.slane %v2809_v58, 2  ;;  %v2811_v40 = vunpack.c.l.b16 %v2763_v18 }
 0x4d7   :  { %v6775_v39 = vpop.eup %6774  ;;  %v2749_v13 = vmul.f32 %v6773_v24, %v6767_v10  ;;  %v2812_v25 = vunpack.c.l.b16 %v2764_v49  ;;  %v2819_v4 = vrot.slane %v2810_v52, 1  ;;  %v9631_v52 = vld [vmem:[#allocation12_spill] sm:$0xff]  ;;  %v9633_v24 = vld [vmem:[#allocation23_spill] sm:$0xff] }
 0x4d8   :  { %v6777_v63 = vpop.eup %6776  ;;  %v2750_v51 = vmul.f32 %v6775_v39, %v6769_v11  ;;  %v2818_v59 = vsel %vm908_vm1, %v2817_v12, %v2816_v41  ;;  %v9632_v41 = vld [vmem:[#allocation22_spill] sm:$0xff]  ;;  %v9634_v12 = vld [vmem:[#allocation25_spill] sm:$0xff] }
 0x4d9   :  { %v2751_v37 = vmul.f32 %v6777_v63, %v6771_v46  ;;  %2757 = vst [vmem:[#allocation2 + $0x28] sm:$0x8] %v2749_v13  ;;  %v2765_v27 = vpack.c.bf16 %v2749_v13, %v2749_v13  ;;  %v2820_v8 = vsel %vm911_vm2, %v2819_v4, %v2818_v59  ;;  %v2822_v16 = vrot.slane %v2812_v25, 7  ;;  %v9639_v39 = vld [vmem:[#allocation30_spill] sm:$0xff]  ;;  %v9640_v13 = vld [vmem:[#allocation31_spill] sm:$0xff]  ;;  %v9642_v25 = vld [vmem:[#allocation33_spill] sm:$0xff] }
 0x4da   :  { %2758 = vst [vmem:[#allocation2 + $0x30] sm:$0x8] %v2750_v51  ;;  %v2766_v32 = vpack.c.bf16 %v2750_v51, %v2750_v51  ;;  %v2821_v36 = vsel %vm914_vm3, %v2811_v40, %v2820_v8  ;;  %v9643_v4 = vld [vmem:[#allocation34_spill] sm:$0xff]  ;;  %v9644_v63 = vld [vmem:[#allocation35_spill] sm:$0xff]  ;;  %v9645_v51 = vld [vmem:[#allocation36_spill] sm:$0xff] }
 0x4db   :  { %2759 = vst [vmem:[#allocation2 + $0x38] sm:$0x8] %v2751_v37  ;;  %v2767_v2 = vpack.c.bf16 %v2751_v37, %v2751_v37  ;;  %v2813_v53 = vunpack.c.l.b16 %v2765_v27  ;;  %v2823_v15 = vsel %vm917_vm4, %v2822_v16, %v2821_v36  ;;  %v9646_v40 = vld [vmem:[#allocation37_spill] sm:$0xff]  ;;  %v9647_v59 = vld [vmem:[#allocation38_spill] sm:$0xff]  ;;  %v9648_v37 = vld [vmem:[#allocation39_spill] sm:$0xff] }
 0x4dc   :  { %v2814_v10 = vunpack.c.l.b16 %v2766_v32  ;;  %v9649_v27 = vld [vmem:[#allocation40_spill] sm:$0xff]  ;;  %v9650_v8 = vld [vmem:[#allocation41_spill] sm:$0xff]  ;;  %v9651_v16 = vld [vmem:[#allocation42_spill] sm:$0xff] }
 0x4dd   :  { %v2815_v0 = vunpack.c.l.b16 %v2767_v2  ;;  %v2824_v3 = vrot.slane %v2813_v53, 6  ;;  %v9652_v32 = vld [vmem:[#allocation43_spill] sm:$0xff]  ;;  %v9653_v36 = vld [vmem:[#allocation44_spill] sm:$0xff]  ;;  %v9654_v2 = vld [vmem:[#allocation45_spill] sm:$0xff] }
 0x4de   :  { %v2826_v34 = vrot.slane %v2814_v10, 5  ;;  %v9655_v53 = vld [vmem:[#allocation46_spill] sm:$0xff] }
 0x4df   :  { %v2825_v11 = vsel %vm920_vm5, %v2824_v3, %v2823_v15  ;;  %v2828_v18 = vrot.slane %v2815_v0, 4 }
 0x4e0   :  { %v2827_v58 = vsel %vm923_vm6, %v2826_v34, %v2825_v11 }
 0x4e1   :  { %v2829_v46 = vsel %vm926_vm7, %v2828_v18, %v2827_v58 }
 0x4e2   :  { %v2830_v49 = vpack.c.b16 %v2829_v46, %v2829_v46 }
 0x4e4   :  { %3025 = vmatmul.mubr.bf16.vlgmr.msra.gmra.mrb[16].mxu0 %v2830_v49  ;;  %3066 = vmatmul.mubr.bf16.vlgmr.msra.gmra.mrb[48].mxu1 %v2830_v49 }
 0x4e5   :  { %3627 = vmatpush1.bf16.msra.mxu0 %v8262_v48  ;;  %3668 = vmatpush1.bf16.msra.mxu1 %v8270_v54  ;;  %v9635_v48 = vld [vmem:[#allocation26_spill] sm:$0xff]  ;;  %v9636_v54 = vld [vmem:[#allocation27_spill] sm:$0xff] }
 0x4e6   :  { %3628 = vmatprep.subr.bf16.mxu0 %v8278_v43  ;;  %3669 = vmatprep.subr.bf16.mxu1 %v8283_v42  ;;  %v9637_v43 = vld [vmem:[#allocation28_spill] sm:$0xff]  ;;  %v9638_v42 = vld [vmem:[#allocation29_spill] sm:$0xff] }
 0x4e7   :  { %3658 = vmatprep.mubr.bf16.mxu0 %v9532_v21  ;;  %3699 = vmatprep.mubr.bf16.mxu1 %v9532_v21 }
 0x4e9   :  { %3629 = vmatpush1.bf16.msra.mxu0 %v8289_v1  ;;  %3670 = vmatpush1.bf16.msra.mxu1 %v9631_v52  ;;  %v9641_v1 = vld [vmem:[#allocation32_spill] sm:$0xff] }
 0x4ea   :  { %3630 = vmatprep.subr.bf16.mxu0 %v9632_v41  ;;  %3671 = vmatprep.subr.bf16.mxu1 %v9633_v24 }
 0x4ed   :  { %3631 = vmatpush1.bf16.msra.mxu0 %v9634_v12  ;;  %3672 = vmatpush1.bf16.msra.mxu1 %v9635_v48 }
 0x4ee   :  { %3632 = vmatprep.subr.bf16.mxu0 %v9636_v54  ;;  %3673 = vmatprep.subr.bf16.mxu1 %v9637_v43 }
 0x4f1   :  { %3633 = vmatpush1.bf16.msra.mxu0 %v9638_v42  ;;  %3674 = vmatpush1.bf16.msra.mxu1 %v9639_v39 }
 0x4f2   :  { %3634 = vmatprep.subr.bf16.mxu0 %v9640_v13  ;;  %3675 = vmatprep.subr.bf16.mxu1 %v9641_v1 }
 0x4f5   :  { %3635 = vmatpush1.bf16.msra.mxu0 %v9642_v25  ;;  %3676 = vmatpush1.bf16.msra.mxu1 %v9643_v4 }
 0x4f6   :  { %3636 = vmatprep.subr.bf16.mxu0 %v9644_v63  ;;  %3677 = vmatprep.subr.bf16.mxu1 %v9645_v51 }
 0x4f9   :  { %3637 = vmatpush1.bf16.msra.mxu0 %v9646_v40  ;;  %3678 = vmatpush1.bf16.msra.mxu1 %v9647_v59 }
 0x4fa   :  { %3638 = vmatprep.subr.bf16.mxu0 %v9648_v37  ;;  %3679 = vmatprep.subr.bf16.mxu1 %v9649_v27 }
 0x4fd   :  { %3639 = vmatpush1.bf16.msra.mxu0 %v9650_v8  ;;  %3680 = vmatpush1.bf16.msra.mxu1 %v9651_v16 }
 0x4fe   :  { %3640 = vmatprep.subr.bf16.mxu0 %v9652_v32  ;;  %3681 = vmatprep.subr.bf16.mxu1 %v9653_v36 }
 0x501   :  { %3641 = vmatpush1.bf16.msra.mxu0 %v9654_v2  ;;  %3682 = vmatpush1.bf16.msra.mxu1 %v9655_v53 }
 0x5b7   :  { %v3026_v15 = vpop.f32.mrb[16].mxu0  ;;  %v8602_v10 = vpop.f32.mrb[48].mxu1 }
 0x5b8   :  { %v3078_v0 = vrot.slane %v3026_v15, 4  ;;  %v3082_v3 = vrot.slane %v3026_v15, 5  ;;  %v3086_v34 = vrot.slane %v3026_v15, 6  ;;  %v3090_v11 = vrot.slane %v3026_v15, 7  ;;  %v8604_v18 = vpop.f32.mrb[17].mxu0  ;;  %v8606_v58 = vpop.f32.mrb[49].mxu1 }
 0x5b9   :  { %v3094_v46 = vrot.slane %v3026_v15, 1  ;;  %v3098_v49 = vrot.slane %v3026_v15, 2  ;;  %v3102_v52 = vrot.slane %v3026_v15, 3  ;;  %v3154_v41 = vadd.f32 %v3026_v15, %v7559_v19  ;;  %v3030_v24 = vpop.f32.mrb[18].mxu0  ;;  %v3071_v12 = vpop.f32.mrb[50].mxu1 }
 0x5ba   :  { %v3138_v48 = vadd.f32 %v3078_v0, %v7534_v5  ;;  %v3142_v54 = vadd.f32 %v3082_v3, %v7540_v9  ;;  %v3146_v43 = vadd.f32 %v3086_v34, %v7549_v14  ;;  %v3150_v42 = vadd.f32 %v3090_v11, %v7555_v17  ;;  %v3031_v39 = vpop.f32.mrb[19].mxu0  ;;  %v3072_v13 = vpop.f32.mrb[51].mxu1  ;;  %v9656_v34 = vld [vmem:[#allocation17_spill] sm:$0xff] }
 0x5bb   :  { %v3158_v1 = vadd.f32 %v3094_v46, %v7572_v26  ;;  %v3162_v25 = vadd.f32 %v3098_v49, %v7564_v22  ;;  %v5816_v4 = vmul.f32 -1.442695, %v3154_v41  ;;  %v3166_v63 = vadd.f32 %v3102_v52, %v7628_v23  ;;  %v9657_v46 = vld [vmem:[#allocation18_spill] sm:$0xff] }
 0x5bc   :  { %v5812_v51 = vmul.f32 -1.442695, %v3138_v48  ;;  %v5813_v40 = vmul.f32 -1.442695, %v3142_v54  ;;  %v5814_v59 = vmul.f32 -1.442695, %v3146_v43  ;;  %v3156_v49 = vadd.f32 %v8602_v10, %v9657_v46 }
 0x5bd   :  { %v5815_v37 = vmul.f32 -1.442695, %v3150_v42  ;;  %6778 = vpow2.f32 %v5816_v4  ;;  %v5817_v27 = vmul.f32 -1.442695, %v3158_v1  ;;  %v3080_v8 = vrot.slane %v8602_v10, 4 }
 0x5be   :  { %6780 = vpow2.f32 %v5812_v51  ;;  %v3084_v16 = vrot.slane %v8602_v10, 5  ;;  %v5818_v32 = vmul.f32 -1.442695, %v3162_v25  ;;  %v3088_v36 = vrot.slane %v8602_v10, 6 }
 0x5bf   :  { %6782 = vpow2.f32 %v5813_v40  ;;  %v5819_v2 = vmul.f32 -1.442695, %v3166_v63  ;;  %v3092_v53 = vrot.slane %v8602_v10, 7  ;;  %v3140_v15 = vadd.f32 %v3080_v8, %v7656_v28 }
 0x5c0   :  { %6784 = vpow2.f32 %v5814_v59  ;;  %v3144_v0 = vadd.f32 %v3084_v16, %v7663_v38  ;;  %v3148_v3 = vadd.f32 %v3088_v36, %v7670_v61  ;;  %v3096_v12 = vrot.slane %v8602_v10, 1  ;;  %v9659_v36 = vld [vmem:[#allocation20_spill] sm:$0xff] }
 0x5c1   :  { %6786 = vpow2.f32 %v5815_v37  ;;  %v3152_v11 = vadd.f32 %v3092_v53, %v9656_v34  ;;  %v3100_v43 = vrot.slane %v8602_v10, 2  ;;  %v3079_v42 = vrot.slane %v8604_v18, 4  ;;  %v9658_v37 = vld [vmem:[#allocation19_spill] sm:$0xff] }
 0x5c2   :  { %6788 = vpow2.f32 %v5817_v27  ;;  %v3083_v1 = vrot.slane %v8604_v18, 5  ;;  %v3104_v63 = vrot.slane %v8602_v10, 3  ;;  %v3087_v51 = vrot.slane %v8604_v18, 6  ;;  %v9660_v53 = vld [vmem:[#allocation3_spill] sm:$0xff] }
 0x5c3   :  { %6790 = vpow2.f32 %v5818_v32  ;;  %v3160_v27 = vadd.f32 %v3096_v12, %v9658_v37  ;;  %v3091_v8 = vrot.slane %v8604_v18, 7  ;;  %v3095_v10 = vrot.slane %v8604_v18, 1  ;;  %v9662_v12 = vld [vmem:[#allocation6_spill] sm:$0xff] }
 0x5c4   :  { %6792 = vpow2.f32 %v5819_v2  ;;  %v3164_v2 = vadd.f32 %v3100_v43, %v9659_v36 }
 0x5c5   :  { %6794 = vtanh.f32 %v3140_v15  ;;  %v3139_v15 = vadd.f32 %v3079_v42, %v9660_v53  ;;  %v3103_v42 = vrot.slane %v8604_v18, 3 }
 0x5c6   :  { %6796 = vtanh.f32 %v3144_v0 }
 0x5c7   :  { %v6779_v52 = vpop.eup %6778  ;;  %6798 = vtanh.f32 %v3148_v3 }
 0x5c8   :  { %v6781_v41 = vpop.eup %6780  ;;  %v3198_v24 = vadd.f32 1.0, %v6779_v52  ;;  %6800 = vtanh.f32 %v3152_v11  ;;  %v9661_v11 = vld [vmem:[#allocation5_spill] sm:$0xff] }
 0x5c9   :  { %v6783_v48 = vpop.eup %6782  ;;  %v3194_v54 = vadd.f32 1.0, %v6781_v41  ;;  %6802 = vtanh.f32 %v3156_v49  ;;  %v3143_v49 = vadd.f32 %v3083_v1, %v9661_v11 }
 0x5ca   :  { %v6785_v39 = vpop.eup %6784  ;;  %v3195_v13 = vadd.f32 1.0, %v6783_v48  ;;  %6804 = vrcp.f32 %v3198_v24  ;;  %v3099_v24 = vrot.slane %v8604_v18, 2  ;;  %v3147_v48 = vadd.f32 %v3087_v51, %v9662_v12 }
 0x5cb   :  { %v6787_v25 = vpop.eup %6786  ;;  %v3196_v4 = vadd.f32 1.0, %v6785_v39  ;;  %6806 = vrcp.f32 %v3194_v54  ;;  %v9663_v39 = vld [vmem:[#allocation21_spill] sm:$0xff]  ;;  %v5821_v12 = vmul.f32 -1.442695, %v3143_v49 }
 0x5cc   :  { %v6789_v40 = vpop.eup %6788  ;;  %v3197_v59 = vadd.f32 1.0, %v6787_v25  ;;  %6808 = vrcp.f32 %v3195_v13  ;;  %v3168_v43 = vadd.f32 %v3104_v63, %v9663_v39  ;;  %v9664_v13 = vld [vmem:[#allocation7_spill] sm:$0xff]  ;;  %v9667_v39 = vld [vmem:[#allocation10_spill] sm:$0xff] }
 0x5cd   :  { %v6791_v16 = vpop.eup %6790  ;;  %v3199_v32 = vadd.f32 1.0, %v6789_v40  ;;  %6810 = vrcp.f32 %v3196_v4  ;;  %v3151_v25 = vadd.f32 %v3091_v8, %v9664_v13  ;;  %v9665_v40 = vld [vmem:[#allocation8_spill] sm:$0xff]  ;;  %v3163_v11 = vadd.f32 %v3099_v24, %v9667_v39 }
 0x5ce   :  { %v6793_v0 = vpop.eup %6792  ;;  %v3200_v3 = vadd.f32 1.0, %v6791_v16  ;;  %6812 = vrcp.f32 %v3197_v59  ;;  %v3155_v1 = vadd.f32 %v8604_v18, %v9665_v40  ;;  %v5820_v59 = vmul.f32 -1.442695, %v3139_v15 }
 0x5cf   :  { %v6795_v52 = vpop.eup %6794  ;;  %v3201_v41 = vadd.f32 1.0, %v6793_v0  ;;  %6814 = vrcp.f32 %v3199_v32  ;;  %v3081_v16 = vrot.slane %v8606_v58, 4  ;;  %v9666_v0 = vld [vmem:[#allocation9_spill] sm:$0xff]  ;;  %v5822_v8 = vmul.f32 -1.442695, %v3147_v48 }
 0x5d0   :  { %v6797_v54 = vpop.eup %6796  ;;  %6816 = vrcp.f32 %v3200_v3  ;;  %v3159_v51 = vadd.f32 %v3095_v10, %v9666_v0  ;;  %v3085_v3 = vrot.slane %v8606_v58, 5  ;;  %v3167_v18 = vadd.f32 %v3103_v42, %v9597_v31 }
 0x5d1   :  { %v6799_v4 = vpop.eup %6798  ;;  %6818 = vrcp.f32 %v3201_v41  ;;  %v3089_v41 = vrot.slane %v8606_v58, 6  ;;  %v5823_v15 = vmul.f32 -1.442695, %v3151_v25  ;;  %v3093_v40 = vrot.slane %v8606_v58, 7 }
 0x5d2   :  { %v6801_v32 = vpop.eup %6800  ;;  %6820 = vtanh.f32 %v3160_v27  ;;  %v5824_v10 = vmul.f32 -1.442695, %v3155_v1  ;;  %v3141_v49 = vadd.f32 %v3081_v16, %v9559_v56  ;;  %v5825_v24 = vmul.f32 -1.442695, %v3159_v51 }
 0x5d3   :  { %v6803_v63 = vpop.eup %6802  ;;  %6822 = vtanh.f32 %v3164_v2  ;;  %v3145_v48 = vadd.f32 %v3085_v3, %v9598_v20  ;;  %v5826_v42 = vmul.f32 -1.442695, %v3163_v11  ;;  %v3149_v25 = vadd.f32 %v3089_v41, %v9630_v33 }
 0x5d4   :  { %v6805_v13 = vpop.eup %6804  ;;  %6824 = vtanh.f32 %v3168_v43  ;;  %v5827_v1 = vmul.f32 -1.442695, %v3167_v18 }
 0x5d5   :  { %v6807_v27 = vpop.eup %6806  ;;  %v8652_v36 = vmul.f32 %v6805_v13, %v6803_v63  ;;  %6826 = vpow2.f32 %v5820_v59  ;;  %v3153_v59 = vadd.f32 %v3093_v40, %v7685_v44  ;;  %v5829_v11 = vmul.f32 -1.442695, %v3145_v48 }
 0x5d6   :  { %v6809_v2 = vpop.eup %6808  ;;  %v8655_v0 = vmul.f32 %v6807_v27, %v6795_v52  ;;  %6828 = vpow2.f32 %v5821_v12  ;;  %v3157_v12 = vadd.f32 %v8606_v58, %v7698_v55  ;;  %v3097_v27 = vrot.slane %v8606_v58, 1 }
 0x5d7   :  { %v6811_v43 = vpop.eup %6810  ;;  %v8658_v39 = vmul.f32 %v6809_v2, %v6797_v54  ;;  %6830 = vpow2.f32 %v5822_v8  ;;  %v5828_v54 = vmul.f32 -1.442695, %v3141_v49  ;;  %v5830_v8 = vmul.f32 -1.442695, %v3149_v25 }
 0x5d8   :  { %v6813_v13 = vpop.eup %6812  ;;  %v8661_v63 = vmul.f32 %v6811_v43, %v6799_v4  ;;  %6832 = vpow2.f32 %v5823_v15  ;;  %v5831_v41 = vmul.f32 -1.442695, %v3153_v59  ;;  %v5832_v40 = vmul.f32 -1.442695, %v3157_v12 }
 0x5d9   :  { %v6815_v52 = vpop.eup %6814  ;;  %v8664_v16 = vmul.f32 %v6813_v13, %v6801_v32  ;;  %6834 = vpow2.f32 %v5824_v10  ;;  %v3101_v2 = vrot.slane %v8606_v58, 2 }
 0x5da   :  { %v6817_v51 = vpop.eup %6816  ;;  %6836 = vpow2.f32 %v5825_v24 }
 0x5db   :  { %v6819_v3 = vpop.eup %6818  ;;  %6838 = vpow2.f32 %v5826_v42  ;;  %v3105_v42 = vrot.slane %v8606_v58, 3 }
 0x5dc   :  { %v6821_v4 = vpop.eup %6820  ;;  %6840 = vpow2.f32 %v5827_v1 }
 0x5dd   :  { %v6823_v18 = vpop.eup %6822  ;;  %v8668_v15 = vmul.f32 %v6821_v4, %v6815_v52  ;;  %6842 = vpow2.f32 %v5828_v54  ;;  %v3161_v52 = vadd.f32 %v3097_v27, %v9562_v50 }
 0x5de   :  { %v6825_v32 = vpop.eup %6824  ;;  %6844 = vpow2.f32 %v5829_v11  ;;  %v8671_v10 = vmul.f32 %v6823_v18, %v6817_v51  ;;  %v3165_v51 = vadd.f32 %v3101_v2, %v9563_v60 }
 0x5df   :  { %v6827_v49 = vpop.eup %6826  ;;  %6846 = vpow2.f32 %v5830_v8  ;;  %v8674_v24 = vmul.f32 %v6825_v32, %v6819_v3  ;;  %v3169_v8 = vadd.f32 %v3105_v42, %v9599_v47 }
 0x5e0   :  { %v6829_v48 = vpop.eup %6828  ;;  %v3242_v43 = vadd.f32 1.0, %v6827_v49  ;;  %6848 = vpow2.f32 %v5831_v41  ;;  %v5834_v27 = vmul.f32 -1.442695, %v3165_v51 }
 0x5e1   :  { %v6831_v25 = vpop.eup %6830  ;;  %v3243_v13 = vadd.f32 1.0, %v6829_v48  ;;  %6850 = vpow2.f32 %v5832_v40  ;;  %v5833_v40 = vmul.f32 -1.442695, %v3161_v52  ;;  %v3331_v52 = vrot.slane %v8533_v7, 7 }
 0x5e2   :  { %v6833_v1 = vpop.eup %6832  ;;  %v3244_v59 = vadd.f32 1.0, %v6831_v25  ;;  %6852 = vrcp.f32 %v3242_v43  ;;  %v5835_v43 = vmul.f32 -1.442695, %v3169_v8 }
 0x5e3   :  { %v6835_v12 = vpop.eup %6834  ;;  %v3245_v54 = vadd.f32 1.0, %v6833_v1  ;;  %6854 = vrcp.f32 %v3243_v13 }
 0x5e4   :  { %v6837_v11 = vpop.eup %6836  ;;  %v3246_v3 = vadd.f32 1.0, %v6835_v12  ;;  %6856 = vrcp.f32 %v3244_v59  ;;  %v3330_v59 = vrot.slane %v8529_v6, 7  ;;  %v3334_v6 = vrot.slane %v8545_v35, 7 }
 0x5e5   :  { %v6839_v58 = vpop.eup %6838  ;;  %v3247_v4 = vadd.f32 1.0, %v6837_v11  ;;  %6858 = vrcp.f32 %v3245_v54 }
 0x5e6   :  { %v6841_v41 = vpop.eup %6840  ;;  %v3248_v18 = vadd.f32 1.0, %v6839_v58  ;;  %6860 = vrcp.f32 %v3246_v3  ;;  %v3332_v3 = vrot.slane %v8537_v45, 7 }
 0x5e7   :  { %v6843_v32 = vpop.eup %6842  ;;  %v3249_v49 = vadd.f32 1.0, %v6841_v41  ;;  %6862 = vrcp.f32 %v3247_v4  ;;  %v3333_v41 = vrot.slane %v8541_v30, 7  ;;  %v3336_v30 = vrot.slane %v8553_v57, 7 }
 0x5e8   :  { %v6845_v48 = vpop.eup %6844  ;;  %6864 = vrcp.f32 %v3248_v18  ;;  %v3298_v25 = vadd.f32 1.0, %v6843_v32 }
 0x5e9   :  { %v6847_v2 = vpop.eup %6846  ;;  %6866 = vrcp.f32 %v3249_v49  ;;  %v3299_v42 = vadd.f32 1.0, %v6845_v48 }
 0x5ea   :  { %v6849_v13 = vpop.eup %6848  ;;  %6868 = vpow2.f32 %v5833_v40  ;;  %v3300_v12 = vadd.f32 1.0, %v6847_v2 }
 0x5eb   :  { %v6851_v1 = vpop.eup %6850  ;;  %6870 = vpow2.f32 %v5834_v27  ;;  %v3301_v11 = vadd.f32 1.0, %v6849_v13  ;;  %v3335_v27 = vrot.slane %v8549_v29, 7 }
 0x5ec   :  { %v6853_v54 = vpop.eup %6852  ;;  %6872 = vpow2.f32 %v5835_v43  ;;  %v3302_v58 = vadd.f32 1.0, %v6851_v1 }
 0x5ed   :  { %v6855_v51 = vpop.eup %6854  ;;  %v3346_v8 = vmul.f32 %v6853_v54, %v3330_v59  ;;  %6874 = vrcp.f32 %v3298_v25 }
 0x5ee   :  { %v6857_v4 = vpop.eup %6856  ;;  %v3347_v18 = vmul.f32 %v6855_v51, %v3331_v52  ;;  %6876 = vrcp.f32 %v3299_v42 }
 0x5ef   :  { %v6859_v40 = vpop.eup %6858  ;;  %v3348_v32 = vmul.f32 %v6857_v4, %v3332_v3  ;;  %v8686_v49 = vadd.f32 %v8655_v0, %v3346_v8  ;;  %6878 = vrcp.f32 %v3300_v12  ;;  %v3337_v0 = vrot.slane %v8557_v62, 7 }
 0x5f0   :  { %v6861_v7 = vpop.eup %6860  ;;  %v3349_v45 = vmul.f32 %v6859_v40, %v3333_v41  ;;  %v8690_v48 = vadd.f32 %v8658_v39, %v3347_v18  ;;  %6880 = vrcp.f32 %v3301_v11 }
 0x5f1   :  { %v6863_v43 = vpop.eup %6862  ;;  %v3350_v2 = vmul.f32 %v6861_v7, %v3334_v6  ;;  %v8694_v25 = vadd.f32 %v8661_v63, %v3348_v32  ;;  %6882 = vrcp.f32 %v3302_v58 }
 0x5f2   :  { %v6865_v35 = vpop.eup %6864  ;;  %v3351_v13 = vmul.f32 %v6863_v43, %v3335_v27  ;;  %v8698_v42 = vadd.f32 %v8664_v16, %v3349_v45  ;;  %6884 = vtanh.f32 %v8686_v49 }
 0x5f3   :  { %v6867_v29 = vpop.eup %6866  ;;  %v3352_v39 = vmul.f32 %v6865_v35, %v3336_v30  ;;  %v8702_v1 = vadd.f32 %v8652_v36, %v3350_v2  ;;  %6886 = vtanh.f32 %v8690_v48 }
 0x5f4   :  { %v6869_v57 = vpop.eup %6868  ;;  %v3353_v63 = vmul.f32 %v6867_v29, %v3337_v0  ;;  %v8706_v59 = vadd.f32 %v8668_v15, %v3351_v13  ;;  %6888 = vtanh.f32 %v8694_v25 }
 0x5f5   :  { %v6871_v62 = vpop.eup %6870  ;;  %v3303_v12 = vadd.f32 1.0, %v6869_v57  ;;  %v8710_v16 = vadd.f32 %v8671_v10, %v3352_v39  ;;  %6890 = vtanh.f32 %v8698_v42 }
 0x5f6   :  { %v6873_v54 = vpop.eup %6872  ;;  %v3304_v52 = vadd.f32 1.0, %v6871_v62  ;;  %v8714_v36 = vadd.f32 %v8674_v24, %v3353_v63  ;;  %6892 = vtanh.f32 %v8702_v1 }
 0x5f7   :  { %v6875_v11 = vpop.eup %6874  ;;  %v3305_v51 = vadd.f32 1.0, %v6873_v54  ;;  %6894 = vrcp.f32 %v3303_v12 }
 0x5f8   :  { %v6877_v15 = vpop.eup %6876  ;;  %6896 = vrcp.f32 %v3304_v52 }
 0x5f9   :  { %v6879_v3 = vpop.eup %6878  ;;  %6898 = vrcp.f32 %v3305_v51 }
 0x5fa   :  { %v6881_v8 = vpop.eup %6880  ;;  %6900 = vtanh.f32 %v8706_v59 }
 0x5fb   :  { %v6883_v10 = vpop.eup %6882  ;;  %6902 = vtanh.f32 %v8710_v16 }
 0x5fc   :  { %v6885_v58 = vpop.eup %6884  ;;  %6904 = vtanh.f32 %v8714_v36 }
 0x5fd   :  { %v6887_v24 = vpop.eup %6886  ;;  %v3378_v4 = vmul.f32 %v6885_v58, %v6875_v11 }
 0x5fe   :  { %v6889_v41 = vpop.eup %6888  ;;  %v3379_v18 = vmul.f32 %v6887_v24, %v6877_v15 }
 0x5ff   :  { %v6891_v40 = vpop.eup %6890  ;;  %v3380_v6 = vmul.f32 %v6889_v41, %v6879_v3  ;;  %3386 = vst [vmem:[#allocation2] sm:$0x10] %v3378_v4  ;;  %v3394_v32 = vpack.c.bf16 %v3378_v4, %v3378_v4 }
 0x600   :  { %v6893_v7 = vpop.eup %6892  ;;  %v3381_v27 = vmul.f32 %v6891_v40, %v6881_v8  ;;  %3387 = vst [vmem:[#allocation2 + $0x8] sm:$0x10] %v3379_v18  ;;  %v3395_v45 = vpack.c.bf16 %v3379_v18, %v3379_v18 }
 0x601   :  { %v6895_v43 = vpop.eup %6894  ;;  %v3382_v30 = vmul.f32 %v6893_v7, %v6883_v10  ;;  %3388 = vst [vmem:[#allocation2 + $0x10] sm:$0x10] %v3380_v6  ;;  %v3396_v2 = vpack.c.bf16 %v3380_v6, %v3380_v6  ;;  %v3442_v35 = vunpack.c.l.b16 %v3394_v32 }
 0x602   :  { %v6897_v0 = vpop.eup %6896  ;;  %3389 = vst [vmem:[#allocation2 + $0x18] sm:$0x10] %v3381_v27  ;;  %v3397_v13 = vpack.c.bf16 %v3381_v27, %v3381_v27  ;;  %v3443_v29 = vunpack.c.l.b16 %v3395_v45 }
 0x603   :  { %v6899_v39 = vpop.eup %6898  ;;  %3390 = vst [vmem:[#allocation2 + $0x20] sm:$0x10] %v3382_v30  ;;  %v3398_v57 = vpack.c.bf16 %v3382_v30, %v3382_v30  ;;  %v3444_v63 = vunpack.c.l.b16 %v3396_v2  ;;  %v3450_v62 = vrot.slane %v3442_v35, 4 }
 0x604   :  { %v6901_v12 = vpop.eup %6900  ;;  %v3445_v54 = vunpack.c.l.b16 %v3397_v13  ;;  %v3451_v52 = vrot.slane %v3443_v29, 3 }
 0x605   :  { %v6903_v11 = vpop.eup %6902  ;;  %v3383_v51 = vmul.f32 %v6901_v12, %v6895_v43  ;;  %v3453_v15 = vrot.slane %v3444_v63, 2  ;;  %v3446_v41 = vunpack.c.l.b16 %v3398_v57  ;;  %v8732_v57 = vld [vmem:[%s9375_s2] ss:$16 sps:$4 sm:$0xff]   ;;  %v6212_v63 = vld [vmem:[%s9375_s2 + $0x4] ss:$16 sps:$4 sm:$0xff]  }
 0x606   :  { %v6905_v3 = vpop.eup %6904  ;;  %v3384_v8 = vmul.f32 %v6903_v11, %v6897_v0  ;;  %v3452_v10 = vsel %vm908_vm1, %v3451_v52, %v3450_v62  ;;  %v3455_v58 = vrot.slane %v3445_v54, 1  ;;  %v8740_v62 = vld [vmem:[%s9375_s2 + $0x8] ss:$16 sps:$4 sm:$0xff]   ;;  %v6215_v12 = vld [vmem:[%s9375_s2 + $0xc] ss:$16 sps:$4 sm:$0xff]   ;;  %4260 = vmatprep.subr.bf16.mxu0 %v6212_v63 }
 0x607   :  { %v3385_v24 = vmul.f32 %v6905_v3, %v6899_v39  ;;  %3391 = vst [vmem:[#allocation2 + $0x28] sm:$0x10] %v3383_v51  ;;  %v3399_v4 = vpack.c.bf16 %v3383_v51, %v3383_v51  ;;  %v3454_v18 = vsel %vm911_vm2, %v3453_v15, %v3452_v10  ;;  %v8748_v54 = vld [vmem:[%s9375_s2 + $0x24] ss:$16 sps:$4 sm:$0xff]   ;;  %v8753_v52 = vld [vmem:[%s9375_s2 + $0x2c] ss:$16 sps:$4 sm:$0xff]   ;;  %4301 = vmatprep.subr.bf16.mxu1 %v6215_v12 }
 0x608   :  { %3392 = vst [vmem:[#allocation2 + $0x30] sm:$0x10] %v3384_v8  ;;  %v3400_v40 = vpack.c.bf16 %v3384_v8, %v3384_v8  ;;  %v3456_v6 = vsel %vm914_vm3, %v3455_v58, %v3454_v18  ;;  %v8759_v11 = vld [vmem:[%s9375_s2 + $0x20] ss:$16 sps:$4 sm:$0xff]   ;;  %v8766_v51 = vld [vmem:[%s9375_s2 + $0x28] ss:$16 sps:$4 sm:$0xff]  }
 0x609   :  { %3393 = vst [vmem:[#allocation2 + $0x38] sm:$0x10] %v3385_v24  ;;  %v3401_v32 = vpack.c.bf16 %v3385_v24, %v3385_v24  ;;  %v3447_v7 = vunpack.c.l.b16 %v3399_v4  ;;  %v3457_v27 = vsel %vm917_vm4, %v3446_v41, %v3456_v6  ;;  %v8771_v15 = vld [vmem:[%s9375_s2 + $0x44] ss:$16 sps:$4 sm:$0xff]   ;;  %v8777_v3 = vld [vmem:[%s9375_s2 + $0x4c] ss:$16 sps:$4 sm:$0xff]  }
 0x60a   :  { %v3448_v45 = vunpack.c.l.b16 %v3400_v40  ;;  %9668 = vst [vmem:[#allocation47_spill] sm:$0xff] %v8777_v3  ;;  %v8783_v8 = vld [vmem:[%s9375_s2 + $0x40] ss:$16 sps:$4 sm:$0xff]   ;;  %v8790_v10 = vld [vmem:[%s9375_s2 + $0x48] ss:$16 sps:$4 sm:$0xff]  }
 0x60b   :  { %v3449_v43 = vunpack.c.l.b16 %v3401_v32  ;;  %v3458_v30 = vrot.slane %v3447_v7, 7  ;;  %9669 = vst [vmem:[#allocation48_spill] sm:$0xff] %v8783_v8  ;;  %9670 = vst [vmem:[#allocation49_spill] sm:$0xff] %v8790_v10  ;;  %v8795_v58 = vld [vmem:[%s9375_s2 + $0x64] ss:$16 sps:$4 sm:$0xff]  }
 0x60c   :  { %v3460_v2 = vrot.slane %v3448_v45, 6  ;;  %9671 = vst [vmem:[#allocation50_spill] sm:$0xff] %v8795_v58  ;;  %v8801_v24 = vld [vmem:[%s9375_s2 + $0x6c] ss:$16 sps:$4 sm:$0xff]   ;;  %v8807_v4 = vld [vmem:[%s9375_s2 + $0x60] ss:$16 sps:$4 sm:$0xff]  }
 0x60d   :  { %v3459_v35 = vsel %vm920_vm5, %v3458_v30, %v3457_v27  ;;  %v3462_v0 = vrot.slane %v3449_v43, 5  ;;  %9672 = vst [vmem:[#allocation14_spill] sm:$0xff] %v8801_v24  ;;  %9673 = vst [vmem:[#allocation24_spill] sm:$0xff] %v8807_v4  ;;  %v8814_v41 = vld [vmem:[%s9375_s2 + $0x68] ss:$16 sps:$4 sm:$0xff]  }
 0x60e   :  { %v3461_v13 = vsel %vm923_vm6, %v3460_v2, %v3459_v35  ;;  %9674 = vst [vmem:[#allocation16_spill] sm:$0xff] %v8814_v41  ;;  %v8819_v18 = vld [vmem:[%s9375_s2 + $0x84] ss:$16 sps:$4 sm:$0xff]   ;;  %v8825_v40 = vld [vmem:[%s9375_s2 + $0x8c] ss:$16 sps:$4 sm:$0xff]  }
 0x60f   :  { %v3463_v29 = vsel %vm926_vm7, %v3462_v0, %v3461_v13  ;;  %9675 = vst [vmem:[#allocation12_spill] sm:$0xff] %v8819_v18  ;;  %9676 = vst [vmem:[#allocation22_spill] sm:$0xff] %v8825_v40  ;;  %v8831_v6 = vld [vmem:[%s9375_s2 + $0x80] ss:$16 sps:$4 sm:$0xff]   ;;  %v8838_v32 = vld [vmem:[%s9375_s2 + $0x88] ss:$16 sps:$4 sm:$0xff]  }
 0x610   :  { %v3464_v39 = vpack.c.b16 %v3463_v29, %v3463_v29  ;;  %9677 = vst [vmem:[#allocation23_spill] sm:$0xff] %v8831_v6  ;;  %9678 = vst [vmem:[#allocation25_spill] sm:$0xff] %v8838_v32  ;;  %v8843_v7 = vld [vmem:[%s9375_s2 + $0xa4] ss:$16 sps:$4 sm:$0xff]   ;;  %v8849_v27 = vld [vmem:[%s9375_s2 + $0xac] ss:$16 sps:$4 sm:$0xff]  }
 0x611   :  { %9679 = vst [vmem:[#allocation26_spill] sm:$0xff] %v8843_v7  ;;  %9680 = vst [vmem:[#allocation27_spill] sm:$0xff] %v8849_v27  ;;  %v8855_v45 = vld [vmem:[%s9375_s2 + $0xa0] ss:$16 sps:$4 sm:$0xff]   ;;  %v8862_v43 = vld [vmem:[%s9375_s2 + $0xa8] ss:$16 sps:$4 sm:$0xff]  }
 0x612   :  { %3659 = vmatmul.mubr.bf16.vlgmr.msra.gmra.mrb[20].mxu0 %v3464_v39  ;;  %3700 = vmatmul.mubr.bf16.vlgmr.msra.gmra.mrb[52].mxu1 %v3464_v39  ;;  %9681 = vst [vmem:[#allocation28_spill] sm:$0xff] %v8855_v45  ;;  %9682 = vst [vmem:[#allocation29_spill] sm:$0xff] %v8862_v43  ;;  %v8867_v30 = vld [vmem:[%s9375_s2 + $0xc4] ss:$16 sps:$4 sm:$0xff]   ;;  %v8873_v2 = vld [vmem:[%s9375_s2 + $0xcc] ss:$16 sps:$4 sm:$0xff]  }
 0x613   :  { %4292 = vmatprep.mubr.bf16.mxu0 %v9532_v21  ;;  %4333 = vmatprep.mubr.bf16.mxu1 %v9532_v21  ;;  %9683 = vst [vmem:[#allocation30_spill] sm:$0xff] %v8867_v30  ;;  %9684 = vst [vmem:[#allocation31_spill] sm:$0xff] %v8873_v2  ;;  %v8879_v35 = vld [vmem:[%s9375_s2 + $0xc0] ss:$16 sps:$4 sm:$0xff]   ;;  %v8886_v0 = vld [vmem:[%s9375_s2 + $0xc8] ss:$16 sps:$4 sm:$0xff]  }
 0x614   :  { %4261 = vmatpush1.bf16.msra.mxu0 %v8732_v57  ;;  %4302 = vmatpush1.bf16.msra.mxu1 %v8740_v62  ;;  %9685 = vst [vmem:[#allocation32_spill] sm:$0xff] %v8879_v35  ;;  %9686 = vst [vmem:[#allocation33_spill] sm:$0xff] %v8886_v0  ;;  %v8891_v13 = vld [vmem:[%s9375_s2 + $0xe4] ss:$16 sps:$4 sm:$0xff]   ;;  %v8897_v29 = vld [vmem:[%s9375_s2 + $0xec] ss:$16 sps:$4 sm:$0xff]  }
 0x615   :  { %4262 = vmatprep.subr.bf16.mxu0 %v8748_v54  ;;  %4303 = vmatprep.subr.bf16.mxu1 %v8753_v52  ;;  %9687 = vst [vmem:[#allocation34_spill] sm:$0xff] %v8891_v13  ;;  %9688 = vst [vmem:[#allocation35_spill] sm:$0xff] %v8897_v29  ;;  %v8903_v39 = vld [vmem:[%s9375_s2 + $0xe0] ss:$16 sps:$4 sm:$0xff]  }
 0x616   :  { %9689 = vst [vmem:[#allocation36_spill] sm:$0xff] %v8903_v39 }
 0x618   :  { %4263 = vmatpush1.bf16.msra.mxu0 %v8759_v11  ;;  %4304 = vmatpush1.bf16.msra.mxu1 %v8766_v51 }
 0x619   :  { %4264 = vmatprep.subr.bf16.mxu0 %v8771_v15  ;;  %4305 = vmatprep.subr.bf16.mxu1 %v8777_v3 }
 0x61c   :  { %4265 = vmatpush1.bf16.msra.mxu0 %v8783_v8  ;;  %4306 = vmatpush1.bf16.msra.mxu1 %v8790_v10 }
 0x61d   :  { %4266 = vmatprep.subr.bf16.mxu0 %v8795_v58  ;;  %4307 = vmatprep.subr.bf16.mxu1 %v8801_v24 }
 0x620   :  { %4267 = vmatpush1.bf16.msra.mxu0 %v8807_v4  ;;  %4308 = vmatpush1.bf16.msra.mxu1 %v8814_v41 }
 0x621   :  { %4268 = vmatprep.subr.bf16.mxu0 %v8819_v18  ;;  %4309 = vmatprep.subr.bf16.mxu1 %v8825_v40 }
 0x624   :  { %4269 = vmatpush1.bf16.msra.mxu0 %v8831_v6  ;;  %4310 = vmatpush1.bf16.msra.mxu1 %v8838_v32 }
 0x625   :  { %4270 = vmatprep.subr.bf16.mxu0 %v8843_v7  ;;  %4311 = vmatprep.subr.bf16.mxu1 %v8849_v27 }
 0x628   :  { %4271 = vmatpush1.bf16.msra.mxu0 %v8855_v45  ;;  %4312 = vmatpush1.bf16.msra.mxu1 %v8862_v43 }
 0x629   :  { %4272 = vmatprep.subr.bf16.mxu0 %v8867_v30  ;;  %4313 = vmatprep.subr.bf16.mxu1 %v8873_v2  ;;  %v8910_v2 = vld [vmem:[%s9375_s2 + $0xe8] ss:$16 sps:$4 sm:$0xff]  }
 0x62a   :  { %9690 = vst [vmem:[#allocation37_spill] sm:$0xff] %v8910_v2 }
 0x62c   :  { %4273 = vmatpush1.bf16.msra.mxu0 %v8879_v35  ;;  %4314 = vmatpush1.bf16.msra.mxu1 %v8886_v0 }
 0x62d   :  { %4274 = vmatprep.subr.bf16.mxu0 %v8891_v13  ;;  %4315 = vmatprep.subr.bf16.mxu1 %v8897_v29 }
 0x630   :  { %4275 = vmatpush1.bf16.msra.mxu0 %v8903_v39  ;;  %4316 = vmatpush1.bf16.msra.mxu1 %v8910_v2 }
 0x631   :  { %4894 = vmatprep.subr.bf16.mxu0 %v6212_v63  ;;  %4935 = vmatprep.subr.bf16.mxu1 %v6215_v12 }
 0x6e5   :  { %v3660_v35 = vpop.f32.mrb[20].mxu0  ;;  %v8915_v30 = vpop.f32.mrb[52].mxu1 }
 0x6e6   :  { %v3712_v43 = vrot.slane %v3660_v35, 3  ;;  %v3716_v0 = vrot.slane %v3660_v35, 4  ;;  %v3720_v45 = vrot.slane %v3660_v35, 5  ;;  %v3724_v13 = vrot.slane %v3660_v35, 6  ;;  %v8917_v27 = vpop.f32.mrb[21].mxu0  ;;  %v8919_v7 = vpop.f32.mrb[53].mxu1 }
 0x6e7   :  { %v3728_v32 = vrot.slane %v3660_v35, 7  ;;  %v3732_v6 = vrot.slane %v3660_v35, 1  ;;  %v3736_v29 = vrot.slane %v3660_v35, 2  ;;  %v3792_v39 = vadd.f32 %v3660_v35, %v7572_v26  ;;  %v3664_v40 = vpop.f32.mrb[22].mxu0  ;;  %v3705_v2 = vpop.f32.mrb[54].mxu1 }
 0x6e8   :  { %v3772_v63 = vadd.f32 %v3712_v43, %v7534_v5  ;;  %v3776_v12 = vadd.f32 %v3716_v0, %v7540_v9  ;;  %v3780_v18 = vadd.f32 %v3720_v45, %v7549_v14  ;;  %v3784_v41 = vadd.f32 %v3724_v13, %v7555_v17  ;;  %v3665_v4 = vpop.f32.mrb[23].mxu0  ;;  %v3706_v24 = vpop.f32.mrb[55].mxu1 }
 0x6e9   :  { %v3788_v58 = vadd.f32 %v3728_v32, %v7559_v19  ;;  %v3796_v10 = vadd.f32 %v3732_v6, %v7564_v22  ;;  %v5873_v8 = vmul.f32 -1.442695, %v3792_v39  ;;  %v3800_v3 = vadd.f32 %v3736_v29, %v7628_v23 }
 0x6ea   :  { %v5868_v35 = vmul.f32 -1.442695, %v3772_v63  ;;  %v5869_v40 = vmul.f32 -1.442695, %v3776_v12  ;;  %v5870_v2 = vmul.f32 -1.442695, %v3780_v18 }
 0x6eb   :  { %v5871_v26 = vmul.f32 -1.442695, %v3784_v41  ;;  %6906 = vpow2.f32 %v5873_v8  ;;  %v5872_v43 = vmul.f32 -1.442695, %v3788_v58  ;;  %v3714_v45 = vrot.slane %v8915_v30, 3 }
 0x6ec   :  { %6908 = vpow2.f32 %v5868_v35  ;;  %v3718_v0 = vrot.slane %v8915_v30, 4  ;;  %v5874_v24 = vmul.f32 -1.442695, %v3796_v10  ;;  %v3722_v4 = vrot.slane %v8915_v30, 5 }
 0x6ed   :  { %6910 = vpow2.f32 %v5869_v40  ;;  %v5875_v6 = vmul.f32 -1.442695, %v3800_v3  ;;  %v3726_v32 = vrot.slane %v8915_v30, 6  ;;  %v3730_v13 = vrot.slane %v8915_v30, 7 }
 0x6ee   :  { %6912 = vpow2.f32 %v5870_v2  ;;  %v3774_v41 = vadd.f32 %v3714_v45, %v7656_v28  ;;  %v3778_v8 = vadd.f32 %v3718_v0, %v7663_v38  ;;  %v3782_v58 = vadd.f32 %v3722_v4, %v7670_v61 }
 0x6ef   :  { %6914 = vpow2.f32 %v5871_v26  ;;  %v3786_v10 = vadd.f32 %v3726_v32, %v9656_v34  ;;  %v3790_v18 = vadd.f32 %v3730_v13, %v9657_v46  ;;  %v3713_v12 = vrot.slane %v8917_v27, 3 }
 0x6f0   :  { %6916 = vpow2.f32 %v5872_v43  ;;  %v3734_v2 = vrot.slane %v8915_v30, 1  ;;  %v3717_v43 = vrot.slane %v8917_v27, 4  ;;  %v3721_v4 = vrot.slane %v8917_v27, 5 }
 0x6f1   :  { %6918 = vpow2.f32 %v5874_v24  ;;  %v3794_v24 = vadd.f32 %v8915_v30, %v9658_v37  ;;  %v3738_v13 = vrot.slane %v8915_v30, 2  ;;  %v3733_v30 = vrot.slane %v8917_v27, 1  ;;  %v9693_v37 = vld [vmem:[#allocation6_spill] sm:$0xff] }
 0x6f2   :  { %6920 = vpow2.f32 %v5875_v6  ;;  %v3781_v46 = vadd.f32 %v3721_v4, %v9693_v37 }
 0x6f3   :  { %6922 = vtanh.f32 %v3774_v41  ;;  %v3725_v41 = vrot.slane %v8917_v27, 6 }
 0x6f4   :  { %6924 = vtanh.f32 %v3778_v8 }
 0x6f5   :  { %v6907_v3 = vpop.eup %6906  ;;  %6926 = vtanh.f32 %v3782_v58 }
 0x6f6   :  { %v6909_v26 = vpop.eup %6908  ;;  %v3833_v29 = vadd.f32 1.0, %v6907_v3  ;;  %6928 = vtanh.f32 %v3786_v10  ;;  %v3729_v10 = vrot.slane %v8917_v27, 7 }
 0x6f7   :  { %v6911_v39 = vpop.eup %6910  ;;  %v3828_v63 = vadd.f32 1.0, %v6909_v26  ;;  %6930 = vtanh.f32 %v3790_v18  ;;  %v3773_v18 = vadd.f32 %v3713_v12, %v9660_v53  ;;  %v3737_v12 = vrot.slane %v8917_v27, 2  ;;  %v9695_v53 = vld [vmem:[#allocation7_spill] sm:$0xff] }
 0x6f8   :  { %v6913_v35 = vpop.eup %6912  ;;  %v3829_v40 = vadd.f32 1.0, %v6911_v39  ;;  %6932 = vrcp.f32 %v3833_v29  ;;  %v9691_v29 = vld [vmem:[#allocation20_spill] sm:$0xff] }
 0x6f9   :  { %v6915_v45 = vpop.eup %6914  ;;  %v3830_v0 = vadd.f32 1.0, %v6913_v35  ;;  %6934 = vrcp.f32 %v3828_v63  ;;  %v3798_v39 = vadd.f32 %v3734_v2, %v9691_v29  ;;  %v9692_v63 = vld [vmem:[#allocation5_spill] sm:$0xff]  ;;  %v9696_v2 = vld [vmem:[#allocation8_spill] sm:$0xff] }
 0x6fa   :  { %v6917_v6 = vpop.eup %6916  ;;  %v3831_v32 = vadd.f32 1.0, %v6915_v45  ;;  %6936 = vrcp.f32 %v3829_v40  ;;  %v3777_v35 = vadd.f32 %v3717_v43, %v9692_v63  ;;  %v3789_v29 = vadd.f32 %v3729_v10, %v9696_v2  ;;  %v9697_v63 = vld [vmem:[#allocation9_spill] sm:$0xff] }
 0x6fb   :  { %v6919_v8 = vpop.eup %6918  ;;  %v3832_v58 = vadd.f32 1.0, %v6917_v6  ;;  %6938 = vrcp.f32 %v3830_v0  ;;  %v9694_v0 = vld [vmem:[#allocation21_spill] sm:$0xff]  ;;  %v5876_v43 = vmul.f32 -1.442695, %v3773_v18  ;;  %v3793_v4 = vadd.f32 %v8917_v27, %v9697_v63 }
 0x6fc   :  { %v6921_v3 = vpop.eup %6920  ;;  %v3834_v26 = vadd.f32 1.0, %v6919_v8  ;;  %6940 = vrcp.f32 %v3831_v32  ;;  %v3802_v34 = vadd.f32 %v3738_v13, %v9694_v0  ;;  %v3785_v8 = vadd.f32 %v3725_v41, %v9695_v53  ;;  %v9698_v0 = vld [vmem:[#allocation10_spill] sm:$0xff] }
 0x6fd   :  { %v6923_v45 = vpop.eup %6922  ;;  %v3835_v40 = vadd.f32 1.0, %v6921_v3  ;;  %6942 = vrcp.f32 %v3832_v58  ;;  %v3715_v3 = vrot.slane %v8919_v7, 3  ;;  %v5877_v37 = vmul.f32 -1.442695, %v3777_v35 }
 0x6fe   :  { %v6925_v6 = vpop.eup %6924  ;;  %6944 = vrcp.f32 %v3834_v26  ;;  %v3719_v26 = vrot.slane %v8919_v7, 4  ;;  %v3797_v61 = vadd.f32 %v3733_v30, %v9698_v0  ;;  %v5878_v41 = vmul.f32 -1.442695, %v3781_v46 }
 0x6ff   :  { %v6927_v32 = vpop.eup %6926  ;;  %6946 = vrcp.f32 %v3835_v40  ;;  %v3723_v40 = vrot.slane %v8919_v7, 5  ;;  %v3801_v10 = vadd.f32 %v3737_v12, %v9597_v31  ;;  %v5879_v18 = vmul.f32 -1.442695, %v3785_v8 }
 0x700   :  { %v6929_v58 = vpop.eup %6928  ;;  %6948 = vtanh.f32 %v3794_v24  ;;  %v3727_v24 = vrot.slane %v8919_v7, 6  ;;  %v5880_v27 = vmul.f32 -1.442695, %v3789_v29  ;;  %v3731_v35 = vrot.slane %v8919_v7, 7 }
 0x701   :  { %v6931_v13 = vpop.eup %6930  ;;  %6950 = vtanh.f32 %v3798_v39  ;;  %v3775_v63 = vadd.f32 %v3715_v3, %v9559_v56  ;;  %v5881_v46 = vmul.f32 -1.442695, %v3793_v4  ;;  %v3779_v30 = vadd.f32 %v3719_v26, %v9598_v20 }
 0x702   :  { %v6933_v53 = vpop.eup %6932  ;;  %6952 = vtanh.f32 %v3802_v34  ;;  %v5882_v12 = vmul.f32 -1.442695, %v3797_v61  ;;  %v3783_v8 = vadd.f32 %v3723_v40, %v9630_v33  ;;  %v5883_v31 = vmul.f32 -1.442695, %v3801_v10 }
 0x703   :  { %v6935_v2 = vpop.eup %6934  ;;  %6954 = vpow2.f32 %v5876_v43  ;;  %v3787_v3 = vadd.f32 %v3727_v24, %v7685_v44  ;;  %v5884_v4 = vmul.f32 -1.442695, %v3775_v63  ;;  %v5885_v61 = vmul.f32 -1.442695, %v3779_v30 }
 0x704   :  { %v6937_v39 = vpop.eup %6936  ;;  %v8967_v38 = vmul.f32 %v6935_v2, %v6923_v45  ;;  %6956 = vpow2.f32 %v5877_v37  ;;  %v3791_v37 = vadd.f32 %v3731_v35, %v7698_v55 }
 0x705   :  { %v6939_v34 = vpop.eup %6938  ;;  %v8970_v0 = vmul.f32 %v6937_v39, %v6925_v6  ;;  %6958 = vpow2.f32 %v5878_v41  ;;  %v5887_v10 = vmul.f32 -1.442695, %v3787_v3 }
 0x706   :  { %v6941_v43 = vpop.eup %6940  ;;  %v8973_v29 = vmul.f32 %v6939_v34, %v6927_v32  ;;  %6960 = vpow2.f32 %v5879_v18  ;;  %v5886_v32 = vmul.f32 -1.442695, %v3783_v8 }
 0x707   :  { %v6943_v45 = vpop.eup %6942  ;;  %v8976_v2 = vmul.f32 %v6941_v43, %v6929_v58  ;;  %6962 = vpow2.f32 %v5880_v27  ;;  %v5888_v58 = vmul.f32 -1.442695, %v3791_v37  ;;  %v3795_v43 = vadd.f32 %v8919_v7, %v9562_v50 }
 0x708   :  { %v6945_v6 = vpop.eup %6944  ;;  %v8979_v26 = vmul.f32 %v6943_v45, %v6931_v13  ;;  %6964 = vpow2.f32 %v5881_v46  ;;  %v3735_v13 = vrot.slane %v8919_v7, 1 }
 0x709   :  { %v6947_v41 = vpop.eup %6946  ;;  %6966 = vpow2.f32 %v5882_v12 }
 0x70a   :  { %v6949_v40 = vpop.eup %6948  ;;  %6968 = vpow2.f32 %v5883_v31  ;;  %v3739_v31 = vrot.slane %v8919_v7, 2  ;;  %v3799_v37 = vadd.f32 %v3735_v13, %v9563_v60 }
 0x70b   :  { %v6951_v18 = vpop.eup %6950  ;;  %v8981_v24 = vmul.f32 %v6949_v40, %v6933_v53  ;;  %6970 = vpow2.f32 %v5884_v4 }
 0x70c   :  { %v6953_v27 = vpop.eup %6952  ;;  %6972 = vpow2.f32 %v5885_v61  ;;  %v8983_v35 = vmul.f32 %v6951_v18, %v6945_v6  ;;  %v3803_v61 = vadd.f32 %v3739_v31, %v9599_v47  ;;  %v5889_v18 = vmul.f32 -1.442695, %v3795_v43 }
 0x70d   :  { %v6955_v63 = vpop.eup %6954  ;;  %6974 = vpow2.f32 %v5886_v32  ;;  %v8986_v39 = vmul.f32 %v6953_v27, %v6947_v41  ;;  %v5890_v7 = vmul.f32 -1.442695, %v3799_v37  ;;  %v3965_v43 = vrot.slane %v8690_v48, 7 }
 0x70e   :  { %v6957_v46 = vpop.eup %6956  ;;  %v3876_v30 = vadd.f32 1.0, %v6955_v63  ;;  %6976 = vpow2.f32 %v5887_v10 }
 0x70f   :  { %v6959_v34 = vpop.eup %6958  ;;  %v3877_v53 = vadd.f32 1.0, %v6957_v46  ;;  %6978 = vpow2.f32 %v5888_v58  ;;  %v5891_v46 = vmul.f32 -1.442695, %v3803_v61 }
 0x710   :  { %v6961_v12 = vpop.eup %6960  ;;  %v3878_v8 = vadd.f32 1.0, %v6959_v34  ;;  %6980 = vrcp.f32 %v3876_v30 }
 0x711   :  { %v6963_v3 = vpop.eup %6962  ;;  %v3879_v45 = vadd.f32 1.0, %v6961_v12  ;;  %6982 = vrcp.f32 %v3877_v53  ;;  %v3964_v12 = vrot.slane %v8686_v49, 7  ;;  %v3968_v49 = vrot.slane %v8702_v1, 7 }
 0x712   :  { %v6965_v4 = vpop.eup %6964  ;;  %v3880_v6 = vadd.f32 1.0, %v6963_v3  ;;  %6984 = vrcp.f32 %v3878_v8 }
 0x713   :  { %v6967_v41 = vpop.eup %6966  ;;  %v3881_v32 = vadd.f32 1.0, %v6965_v4  ;;  %6986 = vrcp.f32 %v3879_v45  ;;  %v3966_v4 = vrot.slane %v8694_v25, 7 }
 0x714   :  { %v6969_v40 = vpop.eup %6968  ;;  %v3882_v10 = vadd.f32 1.0, %v6967_v41  ;;  %6988 = vrcp.f32 %v3880_v6 }
 0x715   :  { %v6971_v58 = vpop.eup %6970  ;;  %v3883_v27 = vadd.f32 1.0, %v6969_v40  ;;  %6990 = vrcp.f32 %v3881_v32  ;;  %v3967_v32 = vrot.slane %v8698_v42, 7  ;;  %v3970_v42 = vrot.slane %v8710_v16, 7 }
 0x716   :  { %v6973_v63 = vpop.eup %6972  ;;  %6992 = vrcp.f32 %v3882_v10  ;;  %v3932_v30 = vadd.f32 1.0, %v6971_v58 }
 0x717   :  { %v6975_v13 = vpop.eup %6974  ;;  %6994 = vrcp.f32 %v3883_v27  ;;  %v3933_v31 = vadd.f32 1.0, %v6973_v63  ;;  %v3969_v27 = vrot.slane %v8706_v59, 7 }
 0x718   :  { %v6977_v34 = vpop.eup %6976  ;;  %6996 = vpow2.f32 %v5889_v18  ;;  %v3934_v8 = vadd.f32 1.0, %v6975_v13 }
 0x719   :  { %v6979_v53 = vpop.eup %6978  ;;  %6998 = vpow2.f32 %v5890_v7  ;;  %v3935_v45 = vadd.f32 1.0, %v6977_v34 }
 0x71a   :  { %v6981_v3 = vpop.eup %6980  ;;  %7000 = vpow2.f32 %v5891_v46  ;;  %v3936_v61 = vadd.f32 1.0, %v6979_v53 }
 0x71b   :  { %v6983_v37 = vpop.eup %6982  ;;  %v3980_v6 = vmul.f32 %v6981_v3, %v3964_v12  ;;  %7002 = vrcp.f32 %v3932_v30 }
 0x71c   :  { %v6985_v41 = vpop.eup %6984  ;;  %v3981_v40 = vmul.f32 %v6983_v37, %v3965_v43  ;;  %7004 = vrcp.f32 %v3933_v31 }
 0x71d   :  { %v6987_v10 = vpop.eup %6986  ;;  %v3982_v18 = vmul.f32 %v6985_v41, %v3966_v4  ;;  %v8999_v58 = vadd.f32 %v8967_v38, %v3980_v6  ;;  %7006 = vrcp.f32 %v3934_v8  ;;  %v3971_v38 = vrot.slane %v8714_v36, 7 }
 0x71e   :  { %v6989_v48 = vpop.eup %6988  ;;  %v3983_v25 = vmul.f32 %v6987_v10, %v3967_v32  ;;  %v9003_v7 = vadd.f32 %v8970_v0, %v3981_v40  ;;  %7008 = vrcp.f32 %v3935_v45 }
 0x71f   :  { %v6991_v63 = vpop.eup %6990  ;;  %v9007_v46 = vadd.f32 %v8973_v29, %v3982_v18  ;;  %7010 = vrcp.f32 %v3936_v61  ;;  %v3984_v1 = vmul.f32 %v6989_v48, %v3968_v49 }
 0x720   :  { %v6993_v13 = vpop.eup %6992  ;;  %v3985_v30 = vmul.f32 %v6991_v63, %v3969_v27  ;;  %v9011_v34 = vadd.f32 %v8976_v2, %v3983_v25  ;;  %7012 = vtanh.f32 %v8999_v58 }
 0x721   :  { %v6995_v59 = vpop.eup %6994  ;;  %v3986_v0 = vmul.f32 %v6993_v13, %v3970_v42  ;;  %v9015_v31 = vadd.f32 %v8979_v26, %v3984_v1  ;;  %7014 = vtanh.f32 %v9003_v7 }
 0x722   :  { %v6997_v16 = vpop.eup %6996  ;;  %v3987_v29 = vmul.f32 %v6995_v59, %v3971_v38  ;;  %v9019_v53 = vadd.f32 %v8981_v24, %v3985_v30  ;;  %7016 = vtanh.f32 %v9007_v46 }
 0x723   :  { %v6999_v36 = vpop.eup %6998  ;;  %v3937_v12 = vadd.f32 1.0, %v6997_v16  ;;  %v9023_v2 = vadd.f32 %v8983_v35, %v3986_v0  ;;  %7018 = vtanh.f32 %v9011_v34 }
 0x724   :  { %v7001_v8 = vpop.eup %7000  ;;  %v3938_v3 = vadd.f32 1.0, %v6999_v36  ;;  %v9027_v26 = vadd.f32 %v8986_v39, %v3987_v29  ;;  %7020 = vtanh.f32 %v9015_v31 }
 0x725   :  { %v7003_v43 = vpop.eup %7002  ;;  %v3939_v45 = vadd.f32 1.0, %v7001_v8  ;;  %7022 = vrcp.f32 %v3937_v12 }
 0x726   :  { %v7005_v24 = vpop.eup %7004  ;;  %7024 = vrcp.f32 %v3938_v3 }
 0x727   :  { %v7007_v37 = vpop.eup %7006  ;;  %7026 = vrcp.f32 %v3939_v45 }
 0x728   :  { %v7009_v4 = vpop.eup %7008  ;;  %7028 = vtanh.f32 %v9019_v53 }
 0x729   :  { %v7011_v35 = vpop.eup %7010  ;;  %7030 = vtanh.f32 %v9023_v2 }
 0x72a   :  { %v7013_v6 = vpop.eup %7012  ;;  %7032 = vtanh.f32 %v9027_v26 }
 0x72b   :  { %v7015_v39 = vpop.eup %7014  ;;  %v4012_v61 = vmul.f32 %v7013_v6, %v7003_v43 }
 0x72c   :  { %v7017_v41 = vpop.eup %7016  ;;  %v4013_v32 = vmul.f32 %v7015_v39, %v7005_v24 }
 0x72d   :  { %v7019_v40 = vpop.eup %7018  ;;  %v4014_v10 = vmul.f32 %v7017_v41, %v7007_v37  ;;  %4020 = vst [vmem:[#allocation2] sm:$0x20] %v4012_v61  ;;  %v4028_v49 = vpack.c.bf16 %v4012_v61, %v4012_v61 }
 0x72e   :  { %v7021_v18 = vpop.eup %7020  ;;  %v4015_v48 = vmul.f32 %v7019_v40, %v7009_v4  ;;  %4021 = vst [vmem:[#allocation2 + $0x8] sm:$0x20] %v4013_v32  ;;  %v4029_v27 = vpack.c.bf16 %v4013_v32, %v4013_v32 }
 0x72f   :  { %v7023_v25 = vpop.eup %7022  ;;  %v4016_v63 = vmul.f32 %v7021_v18, %v7011_v35  ;;  %4022 = vst [vmem:[#allocation2 + $0x10] sm:$0x20] %v4014_v10  ;;  %v4030_v42 = vpack.c.bf16 %v4014_v10, %v4014_v10  ;;  %v4076_v1 = vunpack.c.l.b16 %v4028_v49 }
 0x730   :  { %v7025_v13 = vpop.eup %7024  ;;  %4023 = vst [vmem:[#allocation2 + $0x18] sm:$0x20] %v4015_v48  ;;  %v4031_v38 = vpack.c.bf16 %v4015_v48, %v4015_v48  ;;  %v4077_v30 = vunpack.c.l.b16 %v4029_v27 }
 0x731   :  { %v7027_v59 = vpop.eup %7026  ;;  %4024 = vst [vmem:[#allocation2 + $0x20] sm:$0x20] %v4016_v63  ;;  %v4032_v0 = vpack.c.bf16 %v4016_v63, %v4016_v63  ;;  %v4078_v16 = vunpack.c.l.b16 %v4030_v42  ;;  %v4084_v29 = vrot.slane %v4076_v1, 5 }
 0x732   :  { %v7029_v36 = vpop.eup %7028  ;;  %v4079_v12 = vunpack.c.l.b16 %v4031_v38  ;;  %v4085_v8 = vrot.slane %v4077_v30, 4 }
 0x733   :  { %v7031_v3 = vpop.eup %7030  ;;  %v4017_v43 = vmul.f32 %v7029_v36, %v7023_v25  ;;  %v4080_v45 = vunpack.c.l.b16 %v4032_v0  ;;  %v4087_v24 = vrot.slane %v4078_v16, 3  ;;  %v9700_v0 = vld [vmem:[#allocation48_spill] sm:$0xff]  ;;  %v9711_v36 = vld [vmem:[#allocation27_spill] sm:$0xff] }
 0x734   :  { %v7033_v37 = vpop.eup %7032  ;;  %v4018_v4 = vmul.f32 %v7031_v3, %v7025_v13  ;;  %v4086_v35 = vsel %vm908_vm1, %v4085_v8, %v4084_v29  ;;  %v4089_v6 = vrot.slane %v4079_v12, 2  ;;  %v9705_v16 = vld [vmem:[#allocation16_spill] sm:$0xff]  ;;  %v9710_v29 = vld [vmem:[#allocation26_spill] sm:$0xff]  ;;  %v9713_v8 = vld [vmem:[#allocation29_spill] sm:$0xff] }
 0x735   :  { %v4019_v39 = vmul.f32 %v7033_v37, %v7027_v59  ;;  %4025 = vst [vmem:[#allocation2 + $0x28] sm:$0x20] %v4017_v43  ;;  %v4033_v61 = vpack.c.bf16 %v4017_v43, %v4017_v43  ;;  %v4088_v41 = vsel %vm911_vm2, %v4087_v24, %v4086_v35  ;;  %v4091_v32 = vrot.slane %v4080_v45, 1  ;;  %v9699_v59 = vld [vmem:[#allocation47_spill] sm:$0xff]  ;;  %v9712_v12 = vld [vmem:[#allocation28_spill] sm:$0xff]  ;;  %v9714_v3 = vld [vmem:[#allocation30_spill] sm:$0xff] }
 0x736   :  { %4026 = vst [vmem:[#allocation2 + $0x30] sm:$0x20] %v4018_v4  ;;  %v4034_v40 = vpack.c.bf16 %v4018_v4, %v4018_v4  ;;  %v4090_v10 = vsel %vm914_vm3, %v4089_v6, %v4088_v41  ;;  %v9715_v43 = vld [vmem:[#allocation31_spill] sm:$0xff]  ;;  %v9716_v45 = vld [vmem:[#allocation32_spill] sm:$0xff]  ;;  %v9717_v24 = vld [vmem:[#allocation33_spill] sm:$0xff] }
 0x737   :  { %4027 = vst [vmem:[#allocation2 + $0x38] sm:$0x20] %v4019_v39  ;;  %v4035_v49 = vpack.c.bf16 %v4019_v39, %v4019_v39  ;;  %v4081_v18 = vunpack.c.l.b16 %v4033_v61  ;;  %v4092_v48 = vsel %vm917_vm4, %v4091_v32, %v4090_v10  ;;  %v9718_v37 = vld [vmem:[#allocation34_spill] sm:$0xff]  ;;  %v9719_v4 = vld [vmem:[#allocation35_spill] sm:$0xff]  ;;  %v9720_v35 = vld [vmem:[#allocation36_spill] sm:$0xff] }
 0x738   :  { %v4082_v27 = vunpack.c.l.b16 %v4034_v40  ;;  %v9721_v6 = vld [vmem:[#allocation37_spill] sm:$0xff] }
 0x739   :  { %v4083_v25 = vunpack.c.l.b16 %v4035_v49  ;;  %v4093_v63 = vsel %vm920_vm5, %v4081_v18, %v4092_v48 }
 0x73a   :  { %v4094_v42 = vrot.slane %v4082_v27, 7 }
 0x73b   :  { %v4096_v1 = vrot.slane %v4083_v25, 6 }
 0x73c   :  { %v4095_v13 = vsel %vm923_vm6, %v4094_v42, %v4093_v63 }
 0x73d   :  { %v4097_v38 = vsel %vm926_vm7, %v4096_v1, %v4095_v13 }
 0x73e   :  { %v4098_v30 = vpack.c.b16 %v4097_v38, %v4097_v38 }
 0x740   :  { %4293 = vmatmul.mubr.bf16.vlgmr.msra.gmra.mrb[24].mxu0 %v4098_v30  ;;  %4334 = vmatmul.mubr.bf16.vlgmr.msra.gmra.mrb[56].mxu1 %v4098_v30 }
 0x741   :  { %4895 = vmatpush1.bf16.msra.mxu0 %v8732_v57  ;;  %4936 = vmatpush1.bf16.msra.mxu1 %v8740_v62  ;;  %v9701_v57 = vld [vmem:[#allocation49_spill] sm:$0xff]  ;;  %v9702_v62 = vld [vmem:[#allocation50_spill] sm:$0xff] }
 0x742   :  { %4896 = vmatprep.subr.bf16.mxu0 %v8748_v54  ;;  %4937 = vmatprep.subr.bf16.mxu1 %v8753_v52  ;;  %v9703_v54 = vld [vmem:[#allocation14_spill] sm:$0xff]  ;;  %v9704_v52 = vld [vmem:[#allocation24_spill] sm:$0xff] }
 0x743   :  { %4926 = vmatprep.mubr.bf16.mxu0 %v9532_v21  ;;  %4967 = vmatprep.mubr.bf16.mxu1 %v9532_v21  ;;  %v9706_v21 = vld [vmem:[#allocation12_spill] sm:$0xff] }
 0x745   :  { %4897 = vmatpush1.bf16.msra.mxu0 %v8759_v11  ;;  %4938 = vmatpush1.bf16.msra.mxu1 %v8766_v51  ;;  %v9707_v11 = vld [vmem:[#allocation22_spill] sm:$0xff]  ;;  %v9708_v51 = vld [vmem:[#allocation23_spill] sm:$0xff] }
 0x746   :  { %4898 = vmatprep.subr.bf16.mxu0 %v8771_v15  ;;  %4939 = vmatprep.subr.bf16.mxu1 %v9699_v59  ;;  %v9709_v15 = vld [vmem:[#allocation25_spill] sm:$0xff] }
 0x749   :  { %4899 = vmatpush1.bf16.msra.mxu0 %v9700_v0  ;;  %4940 = vmatpush1.bf16.msra.mxu1 %v9701_v57 }
 0x74a   :  { %4900 = vmatprep.subr.bf16.mxu0 %v9702_v62  ;;  %4941 = vmatprep.subr.bf16.mxu1 %v9703_v54  ;;  %v9722_v54 = vld [vmem:[#allocation4_spill] sm:$0xff] }
 0x74d   :  { %4901 = vmatpush1.bf16.msra.mxu0 %v9704_v52  ;;  %4942 = vmatpush1.bf16.msra.mxu1 %v9705_v16 }
 0x74e   :  { %4902 = vmatprep.subr.bf16.mxu0 %v9706_v21  ;;  %4943 = vmatprep.subr.bf16.mxu1 %v9707_v11 }
 0x751   :  { %4903 = vmatpush1.bf16.msra.mxu0 %v9708_v51  ;;  %4944 = vmatpush1.bf16.msra.mxu1 %v9709_v15 }
 0x752   :  { %4904 = vmatprep.subr.bf16.mxu0 %v9710_v29  ;;  %4945 = vmatprep.subr.bf16.mxu1 %v9711_v36 }
 0x755   :  { %4905 = vmatpush1.bf16.msra.mxu0 %v9712_v12  ;;  %4946 = vmatpush1.bf16.msra.mxu1 %v9713_v8 }
 0x756   :  { %4906 = vmatprep.subr.bf16.mxu0 %v9714_v3  ;;  %4947 = vmatprep.subr.bf16.mxu1 %v9715_v43 }
 0x759   :  { %4907 = vmatpush1.bf16.msra.mxu0 %v9716_v45  ;;  %4948 = vmatpush1.bf16.msra.mxu1 %v9717_v24 }
 0x75a   :  { %4908 = vmatprep.subr.bf16.mxu0 %v9718_v37  ;;  %4949 = vmatprep.subr.bf16.mxu1 %v9719_v4 }
 0x75d   :  { %4909 = vmatpush1.bf16.msra.mxu0 %v9720_v35  ;;  %4950 = vmatpush1.bf16.msra.mxu1 %v9721_v6  ;;  %v9723_v35 = vld [vmem:[#allocation13_spill] sm:$0xff] }
 0x813   :  { %v4294_v39 = vpop.f32.mrb[24].mxu0  ;;  %v9072_v61 = vpop.f32.mrb[56].mxu1 }
 0x814   :  { %v4346_v41 = vrot.slane %v4294_v39, 2  ;;  %v4350_v32 = vrot.slane %v4294_v39, 3  ;;  %v4354_v40 = vrot.slane %v4294_v39, 4  ;;  %v4358_v10 = vrot.slane %v4294_v39, 5  ;;  %v9074_v49 = vpop.f32.mrb[25].mxu0  ;;  %v9076_v18 = vpop.f32.mrb[57].mxu1 }
 0x815   :  { %v4362_v48 = vrot.slane %v4294_v39, 6  ;;  %v4366_v27 = vrot.slane %v4294_v39, 7  ;;  %v4370_v25 = vrot.slane %v4294_v39, 1  ;;  %v4430_v63 = vadd.f32 %v4294_v39, %v7564_v22  ;;  %v4298_v42 = vpop.f32.mrb[26].mxu0  ;;  %v4339_v1 = vpop.f32.mrb[58].mxu1  ;;  %v9724_v39 = vld [vmem:[#allocation15_spill] sm:$0xff] }
 0x816   :  { %v4406_v13 = vadd.f32 %v4346_v41, %v7534_v5  ;;  %v4410_v38 = vadd.f32 %v4350_v32, %v7540_v9  ;;  %v4414_v30 = vadd.f32 %v4354_v40, %v7549_v14  ;;  %v4418_v59 = vadd.f32 %v4358_v10, %v7555_v17  ;;  %v4299_v0 = vpop.f32.mrb[27].mxu0  ;;  %v4340_v57 = vpop.f32.mrb[59].mxu1  ;;  %v9725_v32 = vld [vmem:[#allocation17_spill] sm:$0xff]  ;;  %v9726_v10 = vld [vmem:[#allocation18_spill] sm:$0xff] }
 0x817   :  { %v4422_v62 = vadd.f32 %v4362_v48, %v7559_v19  ;;  %v4426_v52 = vadd.f32 %v4366_v27, %v9722_v54  ;;  %v5930_v16 = vmul.f32 -1.442695, %v4430_v63  ;;  %v4434_v21 = vadd.f32 %v4370_v25, %v7628_v23 }
 0x818   :  { %v5924_v11 = vmul.f32 -1.442695, %v4406_v13  ;;  %v5925_v51 = vmul.f32 -1.442695, %v4410_v38  ;;  %v5926_v15 = vmul.f32 -1.442695, %v4414_v30 }
 0x819   :  { %v5927_v29 = vmul.f32 -1.442695, %v4418_v59  ;;  %7034 = vpow2.f32 %v5930_v16  ;;  %v5928_v36 = vmul.f32 -1.442695, %v4422_v62  ;;  %v4348_v12 = vrot.slane %v9072_v61, 2 }
 0x81a   :  { %7036 = vpow2.f32 %v5924_v11  ;;  %v4352_v8 = vrot.slane %v9072_v61, 3  ;;  %v5929_v3 = vmul.f32 -1.442695, %v4426_v52  ;;  %v4356_v43 = vrot.slane %v9072_v61, 4 }
 0x81b   :  { %7038 = vpow2.f32 %v5925_v51  ;;  %v5931_v45 = vmul.f32 -1.442695, %v4434_v21  ;;  %v4360_v24 = vrot.slane %v9072_v61, 5  ;;  %v4364_v37 = vrot.slane %v9072_v61, 6  ;;  %v9727_v51 = vld [vmem:[#allocation19_spill] sm:$0xff] }
 0x81c   :  { %7040 = vpow2.f32 %v5926_v15  ;;  %v4408_v4 = vadd.f32 %v4348_v12, %v7656_v28  ;;  %v4412_v6 = vadd.f32 %v4352_v8, %v9723_v35  ;;  %v4416_v41 = vadd.f32 %v4356_v43, %v9724_v39 }
 0x81d   :  { %7042 = vpow2.f32 %v5927_v29  ;;  %v4420_v40 = vadd.f32 %v4360_v24, %v9725_v32  ;;  %v4424_v48 = vadd.f32 %v4364_v37, %v9726_v10  ;;  %v4368_v42 = vrot.slane %v9072_v61, 7 }
 0x81e   :  { %7044 = vpow2.f32 %v5928_v36  ;;  %v4347_v38 = vrot.slane %v9074_v49, 2  ;;  %v4351_v0 = vrot.slane %v9074_v49, 3  ;;  %v4372_v52 = vrot.slane %v9072_v61, 1 }
 0x81f   :  { %7046 = vpow2.f32 %v5929_v3  ;;  %v4355_v16 = vrot.slane %v9074_v49, 4  ;;  %v4428_v15 = vadd.f32 %v4368_v42, %v9727_v51  ;;  %v4359_v29 = vrot.slane %v9074_v49, 5  ;;  %v9728_v3 = vld [vmem:[#allocation3_spill] sm:$0xff] }
 0x820   :  { %7048 = vpow2.f32 %v5931_v45  ;;  %v4363_v8 = vrot.slane %v9074_v49, 6  ;;  %v4407_v43 = vadd.f32 %v4347_v38, %v9728_v3  ;;  %v4367_v37 = vrot.slane %v9074_v49, 7 }
 0x821   :  { %7050 = vtanh.f32 %v4408_v4  ;;  %v9729_v4 = vld [vmem:[#allocation5_spill] sm:$0xff]  ;;  %v4371_v38 = vrot.slane %v9074_v49, 1 }
 0x822   :  { %7052 = vtanh.f32 %v4412_v6  ;;  %v4411_v6 = vadd.f32 %v4351_v0, %v9729_v4 }
 0x823   :  { %v7035_v27 = vpop.eup %7034  ;;  %7054 = vtanh.f32 %v4416_v41 }
 0x824   :  { %v7037_v25 = vpop.eup %7036  ;;  %v4468_v63 = vadd.f32 1.0, %v7035_v27  ;;  %7056 = vtanh.f32 %v4420_v40 }
 0x825   :  { %v7039_v1 = vpop.eup %7038  ;;  %v4462_v13 = vadd.f32 1.0, %v7037_v25  ;;  %7058 = vtanh.f32 %v4424_v48  ;;  %v9730_v48 = vld [vmem:[#allocation20_spill] sm:$0xff]  ;;  %v9731_v25 = vld [vmem:[#allocation6_spill] sm:$0xff] }
 0x826   :  { %v7041_v30 = vpop.eup %7040  ;;  %v4463_v59 = vadd.f32 1.0, %v7039_v1  ;;  %7060 = vrcp.f32 %v4468_v63  ;;  %v4432_v27 = vadd.f32 %v9072_v61, %v9730_v48  ;;  %v4415_v63 = vadd.f32 %v4355_v16, %v9731_v25  ;;  %v9732_v1 = vld [vmem:[#allocation21_spill] sm:$0xff] }
 0x827   :  { %v7043_v57 = vpop.eup %7042  ;;  %v4464_v62 = vadd.f32 1.0, %v7041_v30  ;;  %7062 = vrcp.f32 %v4462_v13  ;;  %v4436_v13 = vadd.f32 %v4372_v52, %v9732_v1  ;;  %v9733_v30 = vld [vmem:[#allocation7_spill] sm:$0xff]  ;;  %v9735_v61 = vld [vmem:[#allocation9_spill] sm:$0xff]  ;;  %v5933_v16 = vmul.f32 -1.442695, %v4411_v6  ;;  %v9736_v52 = vld [vmem:[#allocation10_spill] sm:$0xff] }
 0x828   :  { %v7045_v21 = vpop.eup %7044  ;;  %v4465_v11 = vadd.f32 1.0, %v7043_v57  ;;  %7064 = vrcp.f32 %v4463_v59  ;;  %v4419_v59 = vadd.f32 %v4359_v29, %v9733_v30  ;;  %v4431_v1 = vadd.f32 %v9074_v49, %v9736_v52 }
 0x829   :  { %v7047_v36 = vpop.eup %7046  ;;  %v4466_v12 = vadd.f32 1.0, %v7045_v21  ;;  %7066 = vrcp.f32 %v4464_v62  ;;  %v9734_v62 = vld [vmem:[#allocation8_spill] sm:$0xff]  ;;  %v5932_v21 = vmul.f32 -1.442695, %v4407_v43  ;;  %v5934_v29 = vmul.f32 -1.442695, %v4415_v63 }
 0x82a   :  { %v7049_v45 = vpop.eup %7048  ;;  %v4467_v24 = vadd.f32 1.0, %v7047_v36  ;;  %7068 = vrcp.f32 %v4465_v11  ;;  %v4423_v0 = vadd.f32 %v4363_v8, %v9734_v62  ;;  %v4349_v11 = vrot.slane %v9076_v18, 2  ;;  %v9737_v8 = vld [vmem:[#allocation11_spill] sm:$0xff] }
 0x82b   :  { %v7051_v41 = vpop.eup %7050  ;;  %v4469_v40 = vadd.f32 1.0, %v7049_v45  ;;  %7070 = vrcp.f32 %v4466_v12  ;;  %v4427_v12 = vadd.f32 %v4367_v37, %v9735_v61  ;;  %v4353_v45 = vrot.slane %v9076_v18, 3 }
 0x82c   :  { %v7053_v42 = vpop.eup %7052  ;;  %7072 = vrcp.f32 %v4467_v24  ;;  %v4435_v43 = vadd.f32 %v4371_v38, %v9737_v8  ;;  %v5935_v62 = vmul.f32 -1.442695, %v4419_v59  ;;  %v5936_v37 = vmul.f32 -1.442695, %v4423_v0 }
 0x82d   :  { %v7055_v57 = vpop.eup %7054  ;;  %7074 = vrcp.f32 %v4469_v40  ;;  %v4357_v40 = vrot.slane %v9076_v18, 4  ;;  %v4365_v6 = vrot.slane %v9076_v18, 6  ;;  %v5937_v49 = vmul.f32 -1.442695, %v4427_v12 }
 0x82e   :  { %v7057_v36 = vpop.eup %7056  ;;  %7076 = vtanh.f32 %v4428_v15  ;;  %v4361_v15 = vrot.slane %v9076_v18, 5  ;;  %v4413_v63 = vadd.f32 %v4353_v45, %v9598_v20  ;;  %v5938_v38 = vmul.f32 -1.442695, %v4431_v1 }
 0x82f   :  { %v7059_v24 = vpop.eup %7058  ;;  %7078 = vtanh.f32 %v4432_v27  ;;  %v4409_v27 = vadd.f32 %v4349_v11, %v9559_v56  ;;  %v4417_v59 = vadd.f32 %v4357_v40, %v9630_v33  ;;  %v5939_v8 = vmul.f32 -1.442695, %v4435_v43 }
 0x830   :  { %v7061_v30 = vpop.eup %7060  ;;  %7080 = vtanh.f32 %v4436_v13  ;;  %v4421_v11 = vadd.f32 %v4361_v15, %v7685_v44  ;;  %v4425_v12 = vadd.f32 %v4365_v6, %v7698_v55  ;;  %v5941_v1 = vmul.f32 -1.442695, %v4413_v63 }
 0x831   :  { %v7063_v25 = vpop.eup %7062  ;;  %7082 = vpow2.f32 %v5932_v21  ;;  %v4369_v6 = vrot.slane %v9076_v18, 7 }
 0x832   :  { %v7065_v61 = vpop.eup %7064  ;;  %v9124_v4 = vmul.f32 %v7063_v25, %v7051_v41  ;;  %7084 = vpow2.f32 %v5933_v16  ;;  %v5940_v16 = vmul.f32 -1.442695, %v4409_v27 }
 0x833   :  { %v7067_v13 = vpop.eup %7066  ;;  %v9127_v52 = vmul.f32 %v7065_v61, %v7053_v42  ;;  %7086 = vpow2.f32 %v5934_v29 }
 0x834   :  { %v7069_v21 = vpop.eup %7068  ;;  %v9130_v0 = vmul.f32 %v7067_v13, %v7055_v57  ;;  %7088 = vpow2.f32 %v5935_v62  ;;  %v5942_v57 = vmul.f32 -1.442695, %v4417_v59  ;;  %v5943_v62 = vmul.f32 -1.442695, %v4421_v11 }
 0x835   :  { %v7071_v41 = vpop.eup %7070  ;;  %v9133_v25 = vmul.f32 %v7069_v21, %v7057_v36  ;;  %7090 = vpow2.f32 %v5936_v37  ;;  %v5944_v36 = vmul.f32 -1.442695, %v4425_v12  ;;  %v4433_v12 = vadd.f32 %v9076_v18, %v9563_v60 }
 0x836   :  { %v7073_v42 = vpop.eup %7072  ;;  %v9136_v61 = vmul.f32 %v7071_v41, %v7059_v24  ;;  %7092 = vpow2.f32 %v5937_v49 }
 0x837   :  { %v7075_v45 = vpop.eup %7074  ;;  %7094 = vpow2.f32 %v5938_v38 }
 0x838   :  { %v7077_v29 = vpop.eup %7076  ;;  %7096 = vpow2.f32 %v5939_v8  ;;  %v4373_v8 = vrot.slane %v9076_v18, 1 }
 0x839   :  { %v7079_v40 = vpop.eup %7078  ;;  %v9138_v43 = vmul.f32 %v7077_v29, %v7073_v42  ;;  %7098 = vpow2.f32 %v5940_v16 }
 0x83a   :  { %v7081_v15 = vpop.eup %7080  ;;  %v9140_v37 = vmul.f32 %v7079_v40, %v7061_v30  ;;  %7100 = vpow2.f32 %v5941_v1  ;;  %v4429_v30 = vadd.f32 %v4369_v6, %v9562_v50  ;;  %v4437_v1 = vadd.f32 %v4373_v8, %v9599_v47 }
 0x83b   :  { %v7083_v24 = vpop.eup %7082  ;;  %7102 = vpow2.f32 %v5942_v57  ;;  %v9143_v27 = vmul.f32 %v7081_v15, %v7075_v45  ;;  %v5946_v6 = vmul.f32 -1.442695, %v4433_v12 }
 0x83c   :  { %v7085_v49 = vpop.eup %7084  ;;  %v4510_v63 = vadd.f32 1.0, %v7083_v24  ;;  %7104 = vpow2.f32 %v5943_v62  ;;  %v5945_v40 = vmul.f32 -1.442695, %v4429_v30  ;;  %v4599_v30 = vrot.slane %v9003_v7, 7 }
 0x83d   :  { %v7087_v13 = vpop.eup %7086  ;;  %v4511_v38 = vadd.f32 1.0, %v7085_v49  ;;  %7106 = vpow2.f32 %v5944_v36  ;;  %v5947_v49 = vmul.f32 -1.442695, %v4437_v1 }
 0x83e   :  { %v7089_v59 = vpop.eup %7088  ;;  %v4512_v21 = vadd.f32 1.0, %v7087_v13  ;;  %7108 = vrcp.f32 %v4510_v63 }
 0x83f   :  { %v7091_v11 = vpop.eup %7090  ;;  %v4513_v41 = vadd.f32 1.0, %v7089_v59  ;;  %7110 = vrcp.f32 %v4511_v38  ;;  %v4598_v59 = vrot.slane %v8999_v58, 7  ;;  %v4602_v58 = vrot.slane %v9015_v31, 7 }
 0x840   :  { %v7093_v16 = vpop.eup %7092  ;;  %v4514_v42 = vadd.f32 1.0, %v7091_v11  ;;  %7112 = vrcp.f32 %v4512_v21 }
 0x841   :  { %v7095_v45 = vpop.eup %7094  ;;  %v4515_v57 = vadd.f32 1.0, %v7093_v16  ;;  %7114 = vrcp.f32 %v4513_v41  ;;  %v4600_v16 = vrot.slane %v9007_v46, 7 }
 0x842   :  { %v7097_v29 = vpop.eup %7096  ;;  %v4516_v62 = vadd.f32 1.0, %v7095_v45  ;;  %7116 = vrcp.f32 %v4514_v42 }
 0x843   :  { %v7099_v36 = vpop.eup %7098  ;;  %v4517_v15 = vadd.f32 1.0, %v7097_v29  ;;  %7118 = vrcp.f32 %v4515_v57  ;;  %v4601_v57 = vrot.slane %v9011_v34, 7  ;;  %v4604_v34 = vrot.slane %v9023_v2, 7 }
 0x844   :  { %v7101_v24 = vpop.eup %7100  ;;  %7120 = vrcp.f32 %v4516_v62  ;;  %v4566_v63 = vadd.f32 1.0, %v7099_v36 }
 0x845   :  { %v7103_v18 = vpop.eup %7102  ;;  %7122 = vrcp.f32 %v4517_v15  ;;  %v4567_v8 = vadd.f32 1.0, %v7101_v24  ;;  %v4603_v15 = vrot.slane %v9019_v53, 7 }
 0x846   :  { %v7105_v13 = vpop.eup %7104  ;;  %7124 = vpow2.f32 %v5945_v40  ;;  %v4568_v21 = vadd.f32 1.0, %v7103_v18 }
 0x847   :  { %v7107_v38 = vpop.eup %7106  ;;  %7126 = vpow2.f32 %v5946_v6  ;;  %v4569_v41 = vadd.f32 1.0, %v7105_v13 }
 0x848   :  { %v7109_v11 = vpop.eup %7108  ;;  %7128 = vpow2.f32 %v5947_v49  ;;  %v4570_v1 = vadd.f32 1.0, %v7107_v38 }
 0x849   :  { %v7111_v12 = vpop.eup %7110  ;;  %v4614_v42 = vmul.f32 %v7109_v11, %v4598_v59  ;;  %7130 = vrcp.f32 %v4566_v63 }
 0x84a   :  { %v7113_v45 = vpop.eup %7112  ;;  %v4615_v29 = vmul.f32 %v7111_v12, %v4599_v30  ;;  %7132 = vrcp.f32 %v4567_v8 }
 0x84b   :  { %v7115_v62 = vpop.eup %7114  ;;  %v4616_v40 = vmul.f32 %v7113_v45, %v4600_v16  ;;  %v9156_v36 = vadd.f32 %v9124_v4, %v4614_v42  ;;  %7134 = vrcp.f32 %v4568_v21  ;;  %v4605_v4 = vrot.slane %v9027_v26, 7 }
 0x84c   :  { %v7117_v7 = vpop.eup %7116  ;;  %v4617_v46 = vmul.f32 %v7115_v62, %v4601_v57  ;;  %v9160_v6 = vadd.f32 %v9127_v52, %v4615_v29  ;;  %7136 = vrcp.f32 %v4569_v41 }
 0x84d   :  { %v7119_v24 = vpop.eup %7118  ;;  %v9164_v49 = vadd.f32 %v9130_v0, %v4616_v40  ;;  %7138 = vrcp.f32 %v4570_v1  ;;  %v4618_v31 = vmul.f32 %v7117_v7, %v4602_v58 }
 0x84e   :  { %v7121_v18 = vpop.eup %7120  ;;  %v4619_v63 = vmul.f32 %v7119_v24, %v4603_v15  ;;  %v9168_v13 = vadd.f32 %v9133_v25, %v4617_v46  ;;  %7140 = vtanh.f32 %v9156_v36 }
 0x84f   :  { %v7123_v53 = vpop.eup %7122  ;;  %v4620_v52 = vmul.f32 %v7121_v18, %v4604_v34  ;;  %v9172_v8 = vadd.f32 %v9136_v61, %v4618_v31  ;;  %7142 = vtanh.f32 %v9160_v6 }
 0x850   :  { %v7125_v2 = vpop.eup %7124  ;;  %v4621_v0 = vmul.f32 %v7123_v53, %v4605_v4  ;;  %v9176_v38 = vadd.f32 %v9138_v43, %v4619_v63  ;;  %7144 = vtanh.f32 %v9164_v49 }
 0x851   :  { %v7127_v26 = vpop.eup %7126  ;;  %v4571_v59 = vadd.f32 1.0, %v7125_v2  ;;  %v9180_v25 = vadd.f32 %v9140_v37, %v4620_v52  ;;  %7146 = vtanh.f32 %v9168_v13 }
 0x852   :  { %v7129_v21 = vpop.eup %7128  ;;  %v4572_v11 = vadd.f32 1.0, %v7127_v26  ;;  %v9184_v61 = vadd.f32 %v9143_v27, %v4621_v0  ;;  %7148 = vtanh.f32 %v9172_v8 }
 0x853   :  { %v7131_v30 = vpop.eup %7130  ;;  %v4573_v41 = vadd.f32 1.0, %v7129_v21  ;;  %7150 = vrcp.f32 %v4571_v59 }
 0x854   :  { %v7133_v43 = vpop.eup %7132  ;;  %7152 = vrcp.f32 %v4572_v11 }
 0x855   :  { %v7135_v12 = vpop.eup %7134  ;;  %7154 = vrcp.f32 %v4573_v41 }
 0x856   :  { %v7137_v16 = vpop.eup %7136  ;;  %7156 = vtanh.f32 %v9176_v38 }
 0x857   :  { %v7139_v37 = vpop.eup %7138  ;;  %7158 = vtanh.f32 %v9180_v25 }
 0x858   :  { %v7141_v42 = vpop.eup %7140  ;;  %7160 = vtanh.f32 %v9184_v61 }
 0x859   :  { %v7143_v27 = vpop.eup %7142  ;;  %v4646_v1 = vmul.f32 %v7141_v42, %v7131_v30 }
 0x85a   :  { %v7145_v45 = vpop.eup %7144  ;;  %v4647_v57 = vmul.f32 %v7143_v27, %v7133_v43 }
 0x85b   :  { %v7147_v29 = vpop.eup %7146  ;;  %v4648_v62 = vmul.f32 %v7145_v45, %v7135_v12  ;;  %4654 = vst [vmem:[#allocation2] sm:$0x40] %v4646_v1  ;;  %v4662_v58 = vpack.c.bf16 %v4646_v1, %v4646_v1 }
 0x85c   :  { %v7149_v40 = vpop.eup %7148  ;;  %v4649_v7 = vmul.f32 %v7147_v29, %v7137_v16  ;;  %4655 = vst [vmem:[#allocation2 + $0x8] sm:$0x40] %v4647_v57  ;;  %v4663_v15 = vpack.c.bf16 %v4647_v57, %v4647_v57 }
 0x85d   :  { %v7151_v46 = vpop.eup %7150  ;;  %v4650_v24 = vmul.f32 %v7149_v40, %v7139_v37  ;;  %4656 = vst [vmem:[#allocation2 + $0x10] sm:$0x40] %v4648_v62  ;;  %v4664_v34 = vpack.c.bf16 %v4648_v62, %v4648_v62  ;;  %v4710_v31 = vunpack.c.l.b16 %v4662_v58 }
 0x85e   :  { %v7153_v18 = vpop.eup %7152  ;;  %4657 = vst [vmem:[#allocation2 + $0x18] sm:$0x40] %v4649_v7  ;;  %v4665_v4 = vpack.c.bf16 %v4649_v7, %v4649_v7  ;;  %v4711_v63 = vunpack.c.l.b16 %v4663_v15 }
 0x85f   :  { %v7155_v53 = vpop.eup %7154  ;;  %4658 = vst [vmem:[#allocation2 + $0x20] sm:$0x40] %v4650_v24  ;;  %v4666_v52 = vpack.c.bf16 %v4650_v24, %v4650_v24  ;;  %v4712_v2 = vunpack.c.l.b16 %v4664_v34  ;;  %v4718_v0 = vrot.slane %v4710_v31, 6 }
 0x860   :  { %v7157_v26 = vpop.eup %7156  ;;  %v4713_v59 = vunpack.c.l.b16 %v4665_v4  ;;  %v4719_v21 = vrot.slane %v4711_v63, 5 }
 0x861   :  { %v7159_v11 = vpop.eup %7158  ;;  %v4651_v30 = vmul.f32 %v7157_v26, %v7151_v46  ;;  %v4714_v41 = vunpack.c.l.b16 %v4666_v52  ;;  %v4721_v43 = vrot.slane %v4712_v2, 4  ;;  %v6259_v52 = vld [vmem:[%s9378_s4 + $0x8] sm:$0xff]   ;;  %v6260_v2 = vld [vmem:[%s9378_s4 + $0x10] sm:$0xff]   ;;  %v6262_v26 = vld [vmem:[%s9378_s4 + $0x20] sm:$0xff]  }
 0x862   :  { %v7161_v12 = vpop.eup %7160  ;;  %v4652_v16 = vmul.f32 %v7159_v11, %v7153_v18  ;;  %v4720_v37 = vsel %vm908_vm1, %v4719_v21, %v4718_v0  ;;  %v4723_v42 = vrot.slane %v4713_v59, 3  ;;  %v6261_v0 = vld [vmem:[%s9378_s4 + $0x18] sm:$0xff]   ;;  %v6263_v59 = vld [vmem:[%s9378_s4 + $0x28] sm:$0xff]   ;;  %v6264_v21 = vld [vmem:[%s9378_s4 + $0x30] sm:$0xff]  }
 0x863   :  { %v4653_v27 = vmul.f32 %v7161_v12, %v7155_v53  ;;  %4659 = vst [vmem:[#allocation2 + $0x28] sm:$0x40] %v4651_v30  ;;  %v4667_v1 = vpack.c.bf16 %v4651_v30, %v4651_v30  ;;  %v4722_v45 = vsel %vm911_vm2, %v4721_v43, %v4720_v37  ;;  %v4725_v57 = vrot.slane %v4714_v41, 2  ;;  %v6258_v53 = vld [vmem:[%s9378_s4] sm:$0xff]   ;;  %v6265_v11 = vld [vmem:[%s9378_s4 + $0x38] sm:$0xff]  }
 0x864   :  { %4660 = vst [vmem:[#allocation2 + $0x30] sm:$0x40] %v4652_v16  ;;  %v4668_v29 = vpack.c.bf16 %v4652_v16, %v4652_v16  ;;  %v4724_v62 = vsel %vm914_vm3, %v4723_v42, %v4722_v45  ;;  %6025 = vmatprep.subr.bf16.mxu0 %v6258_v53 }
 0x865   :  { %4661 = vst [vmem:[#allocation2 + $0x38] sm:$0x40] %v4653_v27  ;;  %v4669_v58 = vpack.c.bf16 %v4653_v27, %v4653_v27  ;;  %v4715_v40 = vunpack.c.l.b16 %v4667_v1  ;;  %v4726_v7 = vsel %vm917_vm4, %v4725_v57, %v4724_v62 }
 0x866   :  { %v4716_v24 = vunpack.c.l.b16 %v4668_v29 }
 0x867   :  { %v4717_v15 = vunpack.c.l.b16 %v4669_v58  ;;  %v4727_v46 = vrot.slane %v4715_v40, 1 }
 0x869   :  { %v4728_v34 = vsel %vm920_vm5, %v4727_v46, %v4726_v7  ;;  %v4730_v31 = vrot.slane %v4717_v15, 7 }
 0x86a   :  { %v4729_v18 = vsel %vm923_vm6, %v4716_v24, %v4728_v34 }
 0x86b   :  { %v4731_v4 = vsel %vm926_vm7, %v4730_v31, %v4729_v18 }
 0x86c   :  { %v4732_v63 = vpack.c.b16 %v4731_v4, %v4731_v4 }
 0x86e   :  { %4927 = vmatmul.mubr.bf16.vlgmr.msra.gmra.mrb[28].mxu0 %v4732_v63  ;;  %4968 = vmatmul.mubr.bf16.vlgmr.msra.gmra.mrb[60].mxu1 %v4732_v63 }
 0x86f   :  { %6026 = vmatpush3.bf16.msra.mxu0 %v6258_v53 }
 0x870   :  { %6027 = vmatprep.subr.bf16.mxu0 %v6259_v52 }
 0x873   :  { %6028 = vmatpush3.bf16.msra.mxu0 %v6259_v52 }
 0x874   :  { %6029 = vmatprep.subr.bf16.mxu0 %v6260_v2 }
 0x877   :  { %6030 = vmatpush3.bf16.msra.mxu0 %v6260_v2 }
 0x878   :  { %6031 = vmatprep.subr.bf16.mxu0 %v6261_v0 }
 0x87b   :  { %6032 = vmatpush3.bf16.msra.mxu0 %v6261_v0 }
 0x87c   :  { %6033 = vmatprep.subr.bf16.mxu0 %v6262_v26 }
 0x87f   :  { %6034 = vmatpush3.bf16.msra.mxu0 %v6262_v26 }
 0x880   :  { %6035 = vmatprep.subr.bf16.mxu0 %v6263_v59 }
 0x883   :  { %6036 = vmatpush3.bf16.msra.mxu0 %v6263_v59 }
 0x884   :  { %6037 = vmatprep.subr.bf16.mxu0 %v6264_v21 }
 0x887   :  { %6038 = vmatpush3.bf16.msra.mxu0 %v6264_v21 }
 0x888   :  { %6039 = vmatprep.subr.bf16.mxu0 %v6265_v11 }
 0x88b   :  { %6040 = vmatpush3.bf16.msra.mxu0 %v6265_v11 }
 0x941   :  { %v4928_v30 = vpop.f32.mrb[28].mxu0  ;;  %v9221_v41 = vpop.f32.mrb[60].mxu1 }
 0x942   :  { %v4980_v43 = vrot.slane %v4928_v30, 1  ;;  %v4984_v12 = vrot.slane %v4928_v30, 2  ;;  %v4988_v16 = vrot.slane %v4928_v30, 3  ;;  %v4992_v37 = vrot.slane %v4928_v30, 4  ;;  %v9223_v42 = vpop.f32.mrb[29].mxu0  ;;  %v9225_v27 = vpop.f32.mrb[61].mxu1 }
 0x943   :  { %v4996_v1 = vrot.slane %v4928_v30, 5  ;;  %v5000_v45 = vrot.slane %v4928_v30, 6  ;;  %v5004_v57 = vrot.slane %v4928_v30, 7  ;;  %v5068_v29 = vadd.f32 %v4928_v30, %v7628_v23  ;;  %v4932_v62 = vpop.f32.mrb[30].mxu0  ;;  %v4973_v58 = vpop.f32.mrb[62].mxu1 }
 0x944   :  { %v5040_v40 = vadd.f32 %v4980_v43, %v7534_v5  ;;  %v5044_v7 = vadd.f32 %v4984_v12, %v7540_v9  ;;  %v5048_v15 = vadd.f32 %v4988_v16, %v7549_v14  ;;  %v5052_v46 = vadd.f32 %v4992_v37, %v7555_v17  ;;  %v4933_v24 = vpop.f32.mrb[31].mxu0  ;;  %v4974_v34 = vpop.f32.mrb[63].mxu1 }
 0x945   :  { %v5056_v31 = vadd.f32 %v4996_v1, %v7559_v19  ;;  %v5060_v18 = vadd.f32 %v5000_v45, %v9722_v54  ;;  %v5987_v4 = vmul.f32 -1.442695, %v5068_v29  ;;  %v5064_v63 = vadd.f32 %v5004_v57, %v7564_v22 }
 0x946   :  { %v5980_v23 = vmul.f32 -1.442695, %v5040_v40  ;;  %v5981_v53 = vmul.f32 -1.442695, %v5044_v7  ;;  %v5982_v52 = vmul.f32 -1.442695, %v5048_v15 }
 0x947   :  { %v5983_v2 = vmul.f32 -1.442695, %v5052_v46  ;;  %7162 = vpow2.f32 %v5987_v4  ;;  %v5984_v5 = vmul.f32 -1.442695, %v5056_v31  ;;  %v4982_v9 = vrot.slane %v9221_v41, 1 }
 0x948   :  { %7164 = vpow2.f32 %v5980_v23  ;;  %v4986_v14 = vrot.slane %v9221_v41, 2  ;;  %v5985_v17 = vmul.f32 -1.442695, %v5060_v18  ;;  %v4990_v19 = vrot.slane %v9221_v41, 3  ;;  %v9738_v23 = vld [vmem:[#allocation5_spill] sm:$0xff] }
 0x949   :  { %7166 = vpow2.f32 %v5981_v53  ;;  %v5986_v54 = vmul.f32 -1.442695, %v5064_v63  ;;  %v4994_v0 = vrot.slane %v9221_v41, 4  ;;  %v4998_v22 = vrot.slane %v9221_v41, 5 }
 0x94a   :  { %7168 = vpow2.f32 %v5982_v52  ;;  %v5042_v26 = vadd.f32 %v4982_v9, %v7656_v28  ;;  %v5046_v59 = vadd.f32 %v4986_v14, %v9723_v35  ;;  %v5050_v21 = vadd.f32 %v4990_v19, %v9724_v39 }
 0x94b   :  { %7170 = vpow2.f32 %v5983_v2  ;;  %v5054_v11 = vadd.f32 %v4994_v0, %v9725_v32  ;;  %v5058_v30 = vadd.f32 %v4998_v22, %v9726_v10  ;;  %v5002_v12 = vrot.slane %v9221_v41, 6  ;;  %v9742_v22 = vld [vmem:[#allocation8_spill] sm:$0xff] }
 0x94c   :  { %7172 = vpow2.f32 %v5984_v5  ;;  %v5006_v28 = vrot.slane %v9221_v41, 7  ;;  %v4981_v39 = vrot.slane %v9223_v42, 1  ;;  %v4985_v10 = vrot.slane %v9223_v42, 2  ;;  %v9739_v5 = vld [vmem:[#allocation6_spill] sm:$0xff] }
 0x94d   :  { %7174 = vpow2.f32 %v5985_v17  ;;  %v5062_v62 = vadd.f32 %v5002_v12, %v9727_v51  ;;  %v4989_v58 = vrot.slane %v9223_v42, 3  ;;  %v4993_v46 = vrot.slane %v9223_v42, 4  ;;  %v9740_v17 = vld [vmem:[#allocation21_spill] sm:$0xff] }
 0x94e   :  { %7176 = vpow2.f32 %v5986_v54  ;;  %v5066_v15 = vadd.f32 %v5006_v28, %v9730_v48  ;;  %v4997_v31 = vrot.slane %v9223_v42, 5  ;;  %v5041_v18 = vadd.f32 %v4981_v39, %v9728_v3  ;;  %v9741_v3 = vld [vmem:[#allocation7_spill] sm:$0xff]  ;;  %v9744_v28 = vld [vmem:[#allocation10_spill] sm:$0xff] }
 0x94f   :  { %7178 = vtanh.f32 %v5042_v26  ;;  %v5001_v51 = vrot.slane %v9223_v42, 6  ;;  %v5045_v53 = vadd.f32 %v4985_v10, %v9738_v23  ;;  %v5005_v48 = vrot.slane %v9223_v42, 7 }
 0x950   :  { %7180 = vtanh.f32 %v5046_v59  ;;  %v5049_v9 = vadd.f32 %v4989_v58, %v9739_v5  ;;  %v5070_v19 = vadd.f32 %v9221_v41, %v9740_v17  ;;  %v5053_v54 = vadd.f32 %v4993_v46, %v9741_v3 }
 0x951   :  { %v7163_v43 = vpop.eup %7162  ;;  %7182 = vtanh.f32 %v5050_v21  ;;  %v5057_v26 = vadd.f32 %v4997_v31, %v9742_v22  ;;  %v5988_v59 = vmul.f32 -1.442695, %v5041_v18  ;;  %v4983_v21 = vrot.slane %v9225_v27, 1 }
 0x952   :  { %v7165_v16 = vpop.eup %7164  ;;  %v5103_v37 = vadd.f32 1.0, %v7163_v43  ;;  %7184 = vtanh.f32 %v5054_v11  ;;  %v5989_v12 = vmul.f32 -1.442695, %v5045_v53  ;;  %v5065_v41 = vadd.f32 %v5005_v48, %v9744_v28 }
 0x953   :  { %v7167_v35 = vpop.eup %7166  ;;  %v5096_v1 = vadd.f32 1.0, %v7165_v16  ;;  %7186 = vtanh.f32 %v5058_v30  ;;  %v9743_v30 = vld [vmem:[#allocation9_spill] sm:$0xff]  ;;  %v4987_v16 = vrot.slane %v9225_v27, 2  ;;  %v5991_v10 = vmul.f32 -1.442695, %v5053_v54 }
 0x954   :  { %v7169_v45 = vpop.eup %7168  ;;  %v5097_v32 = vadd.f32 1.0, %v7167_v35  ;;  %7188 = vrcp.f32 %v5103_v37  ;;  %v5061_v43 = vadd.f32 %v5001_v51, %v9743_v30  ;;  %v5990_v35 = vmul.f32 -1.442695, %v5049_v9 }
 0x955   :  { %v7171_v57 = vpop.eup %7170  ;;  %v5098_v29 = vadd.f32 1.0, %v7169_v45  ;;  %7190 = vrcp.f32 %v5096_v1  ;;  %v4991_v1 = vrot.slane %v9225_v27, 3  ;;  %v9745_v45 = vld [vmem:[#allocation11_spill] sm:$0xff]  ;;  %v4999_v58 = vrot.slane %v9225_v27, 5 }
 0x956   :  { %v7173_v40 = vpop.eup %7172  ;;  %v5099_v7 = vadd.f32 1.0, %v7171_v57  ;;  %7192 = vrcp.f32 %v5097_v32  ;;  %v5069_v32 = vadd.f32 %v9223_v42, %v9745_v45  ;;  %v4995_v57 = vrot.slane %v9225_v27, 4 }
 0x957   :  { %v7175_v24 = vpop.eup %7174  ;;  %v5100_v34 = vadd.f32 1.0, %v7173_v40  ;;  %7194 = vrcp.f32 %v5098_v29  ;;  %v5043_v40 = vadd.f32 %v4983_v21, %v9559_v56  ;;  %v5993_v46 = vmul.f32 -1.442695, %v5061_v43 }
 0x958   :  { %v7177_v4 = vpop.eup %7176  ;;  %v5101_v63 = vadd.f32 1.0, %v7175_v24  ;;  %7196 = vrcp.f32 %v5099_v7  ;;  %v5047_v24 = vadd.f32 %v4987_v16, %v9598_v20  ;;  %v5994_v42 = vmul.f32 -1.442695, %v5065_v41 }
 0x959   :  { %v7179_v52 = vpop.eup %7178  ;;  %v5102_v2 = vadd.f32 1.0, %v7177_v4  ;;  %7198 = vrcp.f32 %v5100_v34  ;;  %v5051_v18 = vadd.f32 %v4991_v1, %v9630_v33  ;;  %v5995_v51 = vmul.f32 -1.442695, %v5069_v32 }
 0x95a   :  { %v7181_v14 = vpop.eup %7180  ;;  %7200 = vrcp.f32 %v5101_v63  ;;  %v5055_v56 = vadd.f32 %v4995_v57, %v7685_v44  ;;  %v5059_v20 = vadd.f32 %v4999_v58, %v7698_v55  ;;  %v5997_v5 = vmul.f32 -1.442695, %v5047_v24 }
 0x95b   :  { %v7183_v0 = vpop.eup %7182  ;;  %7202 = vrcp.f32 %v5102_v2  ;;  %v5998_v9 = vmul.f32 -1.442695, %v5051_v18  ;;  %v5003_v55 = vrot.slane %v9225_v27, 6  ;;  %v5071_v45 = vadd.f32 %v9225_v27, %v9599_v47 }
 0x95c   :  { %v7185_v11 = vpop.eup %7184  ;;  %7204 = vtanh.f32 %v5062_v62  ;;  %v5992_v62 = vmul.f32 -1.442695, %v5057_v26  ;;  %v5999_v17 = vmul.f32 -1.442695, %v5055_v56  ;;  %v6000_v3 = vmul.f32 -1.442695, %v5059_v20 }
 0x95d   :  { %v7187_v37 = vpop.eup %7186  ;;  %7206 = vtanh.f32 %v5066_v15  ;;  %v5234_v20 = vrot.slane %v9164_v49, 7 }
 0x95e   :  { %v7189_v39 = vpop.eup %7188  ;;  %7208 = vtanh.f32 %v5070_v19 }
 0x95f   :  { %v7191_v29 = vpop.eup %7190  ;;  %7210 = vpow2.f32 %v5988_v59  ;;  %v5007_v59 = vrot.slane %v9225_v27, 7 }
 0x960   :  { %v7193_v7 = vpop.eup %7192  ;;  %v9273_v15 = vmul.f32 %v7191_v29, %v7179_v52  ;;  %7212 = vpow2.f32 %v5989_v12  ;;  %v5996_v52 = vmul.f32 -1.442695, %v5043_v40 }
 0x961   :  { %v7195_v34 = vpop.eup %7194  ;;  %v9276_v31 = vmul.f32 %v7193_v7, %v7181_v14  ;;  %7214 = vpow2.f32 %v5990_v35  ;;  %v5067_v35 = vadd.f32 %v5007_v59, %v9563_v60  ;;  %v6003_v60 = vmul.f32 -1.442695, %v5071_v45 }
 0x962   :  { %v7197_v4 = vpop.eup %7196  ;;  %v9279_v63 = vmul.f32 %v7195_v34, %v7183_v0  ;;  %7216 = vpow2.f32 %v5991_v10 }
 0x963   :  { %v7199_v23 = vpop.eup %7198  ;;  %v9282_v53 = vmul.f32 %v7197_v4, %v7185_v11  ;;  %7218 = vpow2.f32 %v5992_v62  ;;  %v6002_v40 = vmul.f32 -1.442695, %v5067_v35 }
 0x964   :  { %v7201_v2 = vpop.eup %7200  ;;  %v9285_v48 = vmul.f32 %v7199_v23, %v7187_v37  ;;  %7220 = vpow2.f32 %v5993_v46  ;;  %v5063_v37 = vadd.f32 %v5003_v55, %v9562_v50  ;;  %v5238_v55 = vrot.slane %v9180_v25, 7 }
 0x965   :  { %v7203_v33 = vpop.eup %7202  ;;  %7222 = vpow2.f32 %v5994_v42  ;;  %v5232_v42 = vrot.slane %v9156_v36, 7  ;;  %v5236_v36 = vrot.slane %v9172_v8, 7  ;;  %v5239_v8 = vrot.slane %v9184_v61, 7 }
 0x966   :  { %v7205_v14 = vpop.eup %7204  ;;  %7224 = vpow2.f32 %v5995_v51  ;;  %v6001_v62 = vmul.f32 -1.442695, %v5063_v37  ;;  %v5233_v51 = vrot.slane %v9160_v6, 7 }
 0x967   :  { %v7207_v19 = vpop.eup %7206  ;;  %v9287_v44 = vmul.f32 %v7205_v14, %v7201_v2  ;;  %7226 = vpow2.f32 %v5996_v52 }
 0x968   :  { %v7209_v54 = vpop.eup %7208  ;;  %v9289_v0 = vmul.f32 %v7207_v19, %v7203_v33  ;;  %7228 = vpow2.f32 %v5997_v5  ;;  %v5235_v5 = vrot.slane %v9168_v13, 7  ;;  %v5237_v19 = vrot.slane %v9176_v38, 7 }
 0x969   :  { %v7211_v22 = vpop.eup %7210  ;;  %v9292_v26 = vmul.f32 %v7209_v54, %v7189_v39  ;;  %7230 = vpow2.f32 %v5998_v9 }
 0x96a   :  { %v7213_v21 = vpop.eup %7212  ;;  %v5144_v11 = vadd.f32 1.0, %v7211_v22  ;;  %7232 = vpow2.f32 %v5999_v17 }
 0x96b   :  { %v7215_v30 = vpop.eup %7214  ;;  %v5145_v43 = vadd.f32 1.0, %v7213_v21  ;;  %7234 = vpow2.f32 %v6000_v3 }
 0x96c   :  { %v7217_v12 = vpop.eup %7216  ;;  %v5146_v16 = vadd.f32 1.0, %v7215_v30  ;;  %7236 = vrcp.f32 %v5144_v11 }
 0x96d   :  { %v7219_v28 = vpop.eup %7218  ;;  %v5147_v41 = vadd.f32 1.0, %v7217_v12  ;;  %7238 = vrcp.f32 %v5145_v43 }
 0x96e   :  { %v7221_v1 = vpop.eup %7220  ;;  %v5148_v39 = vadd.f32 1.0, %v7219_v28  ;;  %7240 = vrcp.f32 %v5146_v16 }
 0x96f   :  { %v7223_v32 = vpop.eup %7222  ;;  %v5149_v10 = vadd.f32 1.0, %v7221_v1  ;;  %7242 = vrcp.f32 %v5147_v41 }
 0x970   :  { %v7225_v57 = vpop.eup %7224  ;;  %v5150_v29 = vadd.f32 1.0, %v7223_v32  ;;  %7244 = vrcp.f32 %v5148_v39 }
 0x971   :  { %v7227_v58 = vpop.eup %7226  ;;  %v5151_v50 = vadd.f32 1.0, %v7225_v57  ;;  %7246 = vrcp.f32 %v5149_v10 }
 0x972   :  { %v7229_v7 = vpop.eup %7228  ;;  %7248 = vrcp.f32 %v5150_v29  ;;  %v5200_v24 = vadd.f32 1.0, %v7227_v58 }
 0x973   :  { %v7231_v46 = vpop.eup %7230  ;;  %7250 = vrcp.f32 %v5151_v50  ;;  %v5201_v47 = vadd.f32 1.0, %v7229_v7 }
 0x974   :  { %v7233_v34 = vpop.eup %7232  ;;  %7252 = vpow2.f32 %v6001_v62  ;;  %v5202_v18 = vadd.f32 1.0, %v7231_v46 }
 0x975   :  { %v7235_v27 = vpop.eup %7234  ;;  %7254 = vpow2.f32 %v6002_v40  ;;  %v5203_v56 = vadd.f32 1.0, %v7233_v34 }
 0x976   :  { %v7237_v4 = vpop.eup %7236  ;;  %7256 = vpow2.f32 %v6003_v60  ;;  %v5204_v16 = vadd.f32 1.0, %v7235_v27 }
 0x977   :  { %v7239_v23 = vpop.eup %7238  ;;  %v5248_v52 = vmul.f32 %v7237_v4, %v5232_v42  ;;  %7258 = vrcp.f32 %v5200_v24 }
 0x978   :  { %v7241_v2 = vpop.eup %7240  ;;  %v5249_v33 = vmul.f32 %v7239_v23, %v5233_v51  ;;  %7260 = vrcp.f32 %v5201_v47 }
 0x979   :  { %v7243_v9 = vpop.eup %7242  ;;  %v5250_v14 = vmul.f32 %v7241_v2, %v5234_v20  ;;  %v5264_v17 = vadd.f32 %v9273_v15, %v5248_v52  ;;  %7262 = vrcp.f32 %v5202_v18 }
 0x97a   :  { %v7245_v6 = vpop.eup %7244  ;;  %v5251_v3 = vmul.f32 %v7243_v9, %v5235_v5  ;;  %v5265_v49 = vadd.f32 %v9276_v31, %v5249_v33  ;;  %7264 = vrcp.f32 %v5203_v56 }
 0x97b   :  { %v7247_v54 = vpop.eup %7246  ;;  %v5252_v13 = vmul.f32 %v7245_v6, %v5236_v36  ;;  %v5266_v22 = vadd.f32 %v9279_v63, %v5250_v14  ;;  %7266 = vtanh.f32 %v5264_v17  ;;  %v6004_v14 = vld [vmem:[%s9379_s5] ss:$0 sm:$0xff] }
 0x97c   :  { %v7249_v59 = vpop.eup %7248  ;;  %v5253_v21 = vmul.f32 %v7247_v54, %v5237_v19  ;;  %v5267_v15 = vadd.f32 %v9282_v53, %v5251_v3  ;;  %7268 = vtanh.f32 %v5265_v49 }
 0x97d   :  { %v7251_v11 = vpop.eup %7250  ;;  %v5254_v38 = vmul.f32 %v7249_v59, %v5238_v55  ;;  %v5268_v30 = vadd.f32 %v9285_v48, %v5252_v13  ;;  %7270 = vtanh.f32 %v5266_v22 }
 0x97e   :  { %v7253_v31 = vpop.eup %7252  ;;  %v5255_v43 = vmul.f32 %v7251_v11, %v5239_v8  ;;  %v5269_v25 = vadd.f32 %v9287_v44, %v5253_v21  ;;  %7272 = vtanh.f32 %v5267_v15 }
 0x97f   :  { %v7255_v12 = vpop.eup %7254  ;;  %v5270_v63 = vadd.f32 %v9289_v0, %v5254_v38  ;;  %7274 = vtanh.f32 %v5268_v30  ;;  %v5205_v53 = vadd.f32 1.0, %v7253_v31 }
 0x980   :  { %v7257_v61 = vpop.eup %7256  ;;  %v5271_v37 = vadd.f32 %v9292_v26, %v5255_v43  ;;  %7276 = vtanh.f32 %v5269_v25  ;;  %v5206_v41 = vadd.f32 1.0, %v7255_v12 }
 0x981   :  { %v7259_v28 = vpop.eup %7258  ;;  %7278 = vtanh.f32 %v5270_v63  ;;  %v5207_v35 = vadd.f32 1.0, %v7257_v61 }
 0x982   :  { %v7261_v48 = vpop.eup %7260  ;;  %7280 = vtanh.f32 %v5271_v37 }
 0x983   :  { %v7263_v1 = vpop.eup %7262  ;;  %7282 = vrcp.f32 %v5204_v16 }
 0x984   :  { %v7265_v44 = vpop.eup %7264  ;;  %7284 = vrcp.f32 %v5205_v53 }
 0x985   :  { %v7267_v39 = vpop.eup %7266  ;;  %7286 = vrcp.f32 %v5206_v41 }
 0x986   :  { %v7269_v0 = vpop.eup %7268  ;;  %7288 = vrcp.f32 %v5207_v35  ;;  %v5280_v45 = vmul.f32 %v7267_v39, %v7259_v28 }
 0x987   :  { %v7271_v32 = vpop.eup %7270  ;;  %v5281_v10 = vmul.f32 %v7269_v0, %v7261_v48 }
 0x988   :  { %v7273_v26 = vpop.eup %7272  ;;  %v5282_v57 = vmul.f32 %v7271_v32, %v7263_v1  ;;  %5288 = vst [vmem:[#allocation2] sm:$0x80] %v5280_v45 }
 0x989   :  { %v7275_v29 = vpop.eup %7274  ;;  %v5283_v62 = vmul.f32 %v7273_v26, %v7265_v44  ;;  %5289 = vst [vmem:[#allocation2 + $0x8] sm:$0x80] %v5281_v10 }
 0x98a   :  { %v7277_v58 = vpop.eup %7276  ;;  %5290 = vst [vmem:[#allocation2 + $0x10] sm:$0x80] %v5282_v57 }
 0x98b   :  { %v7279_v50 = vpop.eup %7278  ;;  %5291 = vst [vmem:[#allocation2 + $0x18] sm:$0x80] %v5283_v62 }
 0x98c   :  { %v7281_v40 = vpop.eup %7280 }
 0x98d   :  { %v7283_v7 = vpop.eup %7282 }
 0x98e   :  { %v7285_v60 = vpop.eup %7284  ;;  %v5284_v46 = vmul.f32 %v7283_v7, %v7275_v29 }
 0x98f   :  { %v7287_v24 = vpop.eup %7286  ;;  %v5285_v34 = vmul.f32 %v7285_v60, %v7277_v58  ;;  %v5296_v47 = vld [vmem:[#allocation2] sm:$0xff] }
 0x990   :  { %v7289_v27 = vpop.eup %7288  ;;  %v5286_v42 = vmul.f32 %v7287_v24, %v7279_v50  ;;  %5292 = vst [vmem:[#allocation2 + $0x20] sm:$0x80] %v5284_v46  ;;  %v5297_v18 = vld [vmem:[#allocation2 + $0x8] sm:$0xff] }
 0x991   :  { %v5287_v4 = vmul.f32 %v7289_v27, %v7281_v40  ;;  %5293 = vst [vmem:[#allocation2 + $0x28] sm:$0x80] %v5285_v34  ;;  %v5304_v51 = vpack.c.bf16 %v5297_v18, %v5296_v47  ;;  %v5298_v56 = vld [vmem:[#allocation2 + $0x10] sm:$0xff] }
 0x992   :  { %5294 = vst [vmem:[#allocation2 + $0x30] sm:$0x80] %v5286_v42  ;;  %v5299_v23 = vld [vmem:[#allocation2 + $0x18] sm:$0xff] }
 0x993   :  { %5295 = vst [vmem:[#allocation2 + $0x38] sm:$0x80] %v5287_v4  ;;  %6041 = vmatprep.mubr.bf16.mxu0 %v5304_v51  ;;  %v5305_v20 = vpack.c.bf16 %v5299_v23, %v5298_v56 }
 0x995   :  { %6042 = vmatmul.mubr.bf16.vlgmr.msra.gmra.mrb[32].mxu0 %v5305_v20 }
 0x997   :  { %v5300_v52 = vld [vmem:[#allocation2 + $0x20] sm:$0xff] }
 0x998   :  { %v5301_v2 = vld [vmem:[#allocation2 + $0x28] sm:$0xff] }
 0x999   :  { %v5306_v5 = vpack.c.bf16 %v5301_v2, %v5300_v52  ;;  %v5302_v33 = vld [vmem:[#allocation2 + $0x30] sm:$0xff] }
 0x99a   :  { %v5303_v9 = vld [vmem:[#allocation2 + $0x38] sm:$0xff] }
 0x99b   :  { %6045 = vmatprep.mubr.bf16.mxu0 %v5306_v5  ;;  %v5307_v36 = vpack.c.bf16 %v5303_v9, %v5302_v33 }
 0x99d   :  { %6046 = vmatmul.mubr.bf16.gmra.mrb[36].mxu0 %v5307_v36 }
 0xa68   :  { %v6043_v17 = vpop.f32.mrb[32].mxu0 }
 0xa69   :  { %v5422_v6 = vadd.f32 %v6043_v17, %v6004_v14  ;;  %v5413_v19 = vpop.f32.mrb[33].mxu0 }
 0xa6a   :  { %v5414_v3 = vadd.f32 %v6004_v14, %v5413_v19  ;;  %v6044_v49 = vpop.f32.mrb[34].mxu0 }
 0xa6b   :  { %5448 = vmax.xlane.f32.xlu1 %v5422_v6  ;;  %v5416_v54 = vpop.f32.mrb[35].mxu0  ;;  %v5425_v55 = vadd.f32 %v6044_v49, %v6004_v14 }
 0xa6c   :  { %5444 = vmax.xlane.f32.xlu0 %v5414_v3  ;;  %v5417_v13 = vadd.f32 %v6004_v14, %v5416_v54 }
 0xa6f   :  { %5450 = vmax.xlane.f32.xlu1 %v5425_v55 }
 0xa70   :  { %v6047_v22 = vpop.f32.mrb[36].mxu0  ;;  %5446 = vmax.xlane.f32.xlu0 %v5417_v13 }
 0xa71   :  { %v5429_v59 = vpop.f32.mrb[37].mxu0  ;;  %v5438_v38 = vadd.f32 %v6047_v22, %v6004_v14 }
 0xa72   :  { %v5430_v8 = vadd.f32 %v6004_v14, %v5429_v59  ;;  %v6048_v21 = vpop.f32.mrb[38].mxu0 }
 0xa73   :  { %v5432_v15 = vpop.f32.mrb[39].mxu0  ;;  %v5441_v30 = vadd.f32 %v6048_v21, %v6004_v14 }
 0xa74   :  { %v5433_v11 = vadd.f32 %v6004_v14, %v5432_v15  ;;  %5452 = vmax.xlane.f32.xlu0 %v5430_v8 }
 0xa76   :  { %5454 = vmax.xlane.f32.xlu1 %v5433_v11 }
 0xa78   :  { %5456 = vmax.xlane.f32.xlu0 %v5438_v38 }
 0xa7a   :  { %5458 = vmax.xlane.f32.xlu1 %v5441_v30 }
 0xaf8   :  { %v5449_v31 = vpop.xlane.xlu1 %5448 }
 0xaf9   :  { %v9318_v43 = vsub.f32 %v5422_v6, %v5449_v31  ;;  %v5445_v25 = vpop.xlane.xlu0 %5444 }
 0xafa   :  { %v9320_v12 = vsub.f32 %v5414_v3, %v5445_v25 }
 0xafb   :  { %v5472_v63 = vmul.f32 1.442695, %v9318_v43 }
 0xafc   :  { %v5468_v16 = vmul.f32 1.442695, %v9320_v12  ;;  %v5451_v61 = vpop.xlane.xlu1 %5450 }
 0xafd   :  { %7290 = vpow2.f32 %v5472_v63  ;;  %v9324_v37 = vsub.f32 %v5425_v55, %v5451_v61  ;;  %v5447_v53 = vpop.xlane.xlu0 %5446 }
 0xafe   :  { %v9326_v28 = vsub.f32 %v5417_v13, %v5447_v53  ;;  %7292 = vpow2.f32 %v5468_v16 }
 0xaff   :  { %v5474_v41 = vmul.f32 1.442695, %v9324_v37 }
 0xb00   :  { %v5470_v48 = vmul.f32 1.442695, %v9326_v28 }
 0xb01   :  { %7294 = vpow2.f32 %v5474_v41  ;;  %v5453_v35 = vpop.xlane.xlu0 %5452 }
 0xb02   :  { %v9330_v1 = vsub.f32 %v5430_v8, %v5453_v35  ;;  %7296 = vpow2.f32 %v5470_v48 }
 0xb03   :  { %v5455_v44 = vpop.xlane.xlu1 %5454 }
 0xb04   :  { %v5476_v39 = vmul.f32 1.442695, %v9330_v1  ;;  %v9333_v0 = vsub.f32 %v5433_v11, %v5455_v44 }
 0xb05   :  { %v5457_v45 = vpop.xlane.xlu0 %5456 }
 0xb06   :  { %7298 = vpow2.f32 %v5476_v39  ;;  %v5478_v32 = vmul.f32 1.442695, %v9333_v0  ;;  %v9336_v10 = vsub.f32 %v5438_v38, %v5457_v45 }
 0xb07   :  { %v7291_v26 = vpop.eup %7290  ;;  %v5459_v57 = vpop.xlane.xlu1 %5458 }
 0xb08   :  { %7300 = vpow2.f32 %v5478_v32  ;;  %v5480_v29 = vmul.f32 1.442695, %v9336_v10  ;;  %v9339_v62 = vsub.f32 %v5441_v30, %v5459_v57  ;;  %5488 = vadd.xlane.f32.xlu0 %v7291_v26  ;;  %v7293_v58 = vpop.eup %7292 }
 0xb0a   :  { %7302 = vpow2.f32 %v5480_v29  ;;  %v5482_v50 = vmul.f32 1.442695, %v9339_v62 }
 0xb0b   :  { %v7295_v40 = vpop.eup %7294 }
 0xb0c   :  { %7304 = vpow2.f32 %v5482_v50  ;;  %5490 = vadd.xlane.f32.xlu1 %v7295_v40  ;;  %5484 = vadd.xlane.f32.xlu0 %v7293_v58  ;;  %v7297_v7 = vpop.eup %7296 }
 0xb10   :  { %v7299_v60 = vpop.eup %7298  ;;  %5486 = vadd.xlane.f32.xlu1 %v7297_v7 }
 0xb11   :  { %5492 = vadd.xlane.f32.xlu0 %v7299_v60 }
 0xb12   :  { %v7301_v46 = vpop.eup %7300 }
 0xb14   :  { %v7303_v24 = vpop.eup %7302  ;;  %5494 = vadd.xlane.f32.xlu1 %v7301_v46 }
 0xb15   :  { %5496 = vadd.xlane.f32.xlu0 %v7303_v24 }
 0xb16   :  { %v7305_v34 = vpop.eup %7304 }
 0xb18   :  { %5498 = vadd.xlane.f32.xlu1 %v7305_v34 }
 0xb95   :  { %v5489_v47 = vpop.xlane.xlu0 %5488 }
 0xb96   :  { %7306 = vlog2.f32 %v5489_v47 }
 0xb99   :  { %v5491_v27 = vpop.xlane.xlu1 %5490  ;;  %v5485_v42 = vpop.xlane.xlu0 %5484 }
 0xb9a   :  { %7308 = vlog2.f32 %v5491_v27 }
 0xb9b   :  { %7310 = vlog2.f32 %v5485_v42 }
 0xb9d   :  { %v5487_v18 = vpop.xlane.xlu1 %5486 }
 0xb9e   :  { %7312 = vlog2.f32 %v5487_v18  ;;  %v5493_v4 = vpop.xlane.xlu0 %5492 }
 0xb9f   :  { %7314 = vlog2.f32 %v5493_v4 }
 0xba0   :  { %v7307_v51 = vpop.eup %7306 }
 0xba1   :  { %v5505_v56 = vmul.f32 0.6931472, %v7307_v51  ;;  %v5495_v23 = vpop.xlane.xlu1 %5494 }
 0xba2   :  { %7316 = vlog2.f32 %v5495_v23  ;;  %v5497_v20 = vpop.xlane.xlu0 %5496 }
 0xba3   :  { %v5518_v52 = vsub.f32 %v9318_v43, %v5505_v56  ;;  %7318 = vlog2.f32 %v5497_v20 }
 0xba4   :  { %v7309_v2 = vpop.eup %7308 }
 0xba5   :  { %v7311_v5 = vpop.eup %7310  ;;  %5526 = vst [vmem:[%s9380_s6 + $0x10] sm:$0xff] %v5518_v52  ;;  %v5507_v33 = vmul.f32 0.6931472, %v7309_v2  ;;  %v5499_v9 = vpop.xlane.xlu1 %5498 }
 0xba6   :  { %v5501_v36 = vmul.f32 0.6931472, %v7311_v5  ;;  %7320 = vlog2.f32 %v5499_v9 }
 0xba7   :  { %v5519_v14 = vsub.f32 %v9324_v37, %v5507_v33 }
 0xba8   :  { %v7313_v17 = vpop.eup %7312  ;;  %v5516_v6 = vsub.f32 %v9320_v12, %v5501_v36 }
 0xba9   :  { %v7315_v19 = vpop.eup %7314  ;;  %5527 = vst [vmem:[%s9380_s6 + $0x18] sm:$0xff] %v5519_v14  ;;  %v5503_v3 = vmul.f32 0.6931472, %v7313_v17 }
 0xbaa   :  { %5524 = vst [vmem:[%s9380_s6] sm:$0xff] %v5516_v6  ;;  %v5509_v49 = vmul.f32 0.6931472, %v7315_v19 }
 0xbab   :  { %v5517_v54 = vsub.f32 %v9326_v28, %v5503_v3 }
 0xbac   :  { %v7317_v55 = vpop.eup %7316  ;;  %v5520_v13 = vsub.f32 %v9330_v1, %v5509_v49 }
 0xbad   :  { %v7319_v22 = vpop.eup %7318  ;;  %5525 = vst [vmem:[%s9380_s6 + $0x8] sm:$0xff] %v5517_v54  ;;  %v5511_v59 = vmul.f32 0.6931472, %v7317_v55 }
 0xbae   :  { %5528 = vst [vmem:[%s9380_s6 + $0x20] sm:$0xff] %v5520_v13  ;;  %v5513_v8 = vmul.f32 0.6931472, %v7319_v22 }
 0xbaf   :  { %v5521_v21 = vsub.f32 %v9333_v0, %v5511_v59 }
 0xbb0   :  { %v7321_v15 = vpop.eup %7320  ;;  %v5522_v11 = vsub.f32 %v9336_v10, %v5513_v8 }
 0xbb1   :  { %5529 = vst [vmem:[%s9380_s6 + $0x28] sm:$0xff] %v5521_v21  ;;  %v5515_v38 = vmul.f32 0.6931472, %v7321_v15 }
 0xbb2   :  { %5530 = vst [vmem:[%s9380_s6 + $0x30] sm:$0xff] %v5522_v11 }
 0xbb3   :  { %v5523_v30 = vsub.f32 %v9339_v62, %v5515_v38 }
 0xbb5   :  { %5531 = vst [vmem:[%s9380_s6 + $0x38] sm:$0xff] %v5523_v30 }

</bundles_post_ra>
